<compile_context>
chip_gen: v7x
topology: tpu7x:2x2x1
jax: 0.10.0
libtpu: 0.0.40
codegen_flags: <defaults>
</compile_context>

<pallas_src>
import math

import jax
import jax.numpy as jnp
from jax import lax
from jax.experimental import pallas as pl
from jax.experimental.pallas import tpu as pltpu

# ----------------------------------------------------------------------------
# Module-level "config" constants (mirroring the torch script globals)
# ----------------------------------------------------------------------------
PREV_SLOT = 2            # loop body is iteration-invariant, collapsed (see above)
MEO = 4                  # len(meo_col)
ST9 = 18                 # len(st_col) * 9
NUM_STATION = 10
HIDDEN = 32              # hidden_lstm = hidden_linear = hidden_gru = hidden_gnn
OUT_SIZE = 1
VIEW_NUM = 3
NODE_NUM = 12            # nodes per temporal slice
N_NODES = 3 * NODE_NUM   # graph stacks 3 time slices (fusion keeps last third)
GAT_IN = ST9 + MEO       # 22
ALPHA_FUSION = 0.8
T_SEQ = 6
BATCH = 2
ADD_LABELED_EMBED = True  # TODO(synk): False path (label_linear_3) not fused here.


# ----------------------------------------------------------------------------
# Weight-slab layouts (pieces 8-row aligned so in-kernel ref slices are clean)
# ----------------------------------------------------------------------------
def _layout(entries, align=8):
    offs = {}
    off = 0
    for name, rows in entries:
        offs[name] = (off, off + rows)
        off = -(-(off + rows) // align) * align
    return offs, off


_H = HIDDEN
_L4, _R4 = _layout([("ul_wih", MEO), ("ul_whh", _H), ("ul_b", 1),
                    ("ll_wih", MEO + 1), ("ll_whh", _H), ("ll_b", 1)])
_L3, _R3 = _layout([("qkv_w", _H), ("qkv_b", 1),
                    ("gru_wih", 2 * _H), ("gru_bih", 1), ("gru_bhh", 1)])
_L2, _R2 = _layout([("ul2_w", 2 * _H), ("ul2_b", 1),
                    ("ll2_w", 3 * _H), ("ll2_b", 1)])
_LH, _RH = _layout([("gat_w", GAT_IN), ("gat_a1", 1), ("gat_a2", 1),
                    ("o_w", _H), ("o_b", 1), ("fuse_w", _H), ("fuse_b", 1),
                    ("ul1_w", ST9), ("ul1_b", 1), ("ll1_w", ST9 + 1), ("ll1_b", 1),
                    ("att1_w", 4 * _H), ("att1_b", 1), ("att2_w", 1), ("att2_b", 1),
                    ("fc_w", _H), ("fc_b", 1)])


def _pack(layout, rows, width, pieces):
    slab = jnp.zeros((rows, width), jnp.float32)
    for name, arr in pieces.items():
        s, e = layout[name]
        arr = jnp.asarray(arr, jnp.float32)
        slab = slab.at[s:e, :arr.shape[1]].set(arr)   # narrower pieces zero-padded
    return slab


# ----------------------------------------------------------------------------
# In-kernel helpers
# ----------------------------------------------------------------------------
def _seg(ref, layout, name):
    s, e = layout[name]
    return ref[s:e, :]


def _sigmoid(x):
    return 1.0 / (1.0 + jnp.exp(-x))


def _softmax(x):
    # last-dim softmax; reciprocal goes to the EUP approximate path
    m = jnp.max(x, axis=-1, keepdims=True)
    e = jnp.exp(x - m)
    return e * pl.reciprocal(jnp.sum(e, axis=-1, keepdims=True), approx=True)


def _nan_to_num(x):
    # torch.nan_to_num defaults: nan -> 0, +/-inf -> +/- float32 max
    big = jnp.float32(3.4028235e38)
    x = jnp.where(jnp.isnan(x), 0.0, x)
    return jnp.clip(x, -big, big)


def _lstm_step(gates, c, H):
    i = _sigmoid(gates[:, :H])
    f = _sigmoid(gates[:, H:2 * H])
    g = jnp.tanh(gates[:, 2 * H:3 * H])
    o = _sigmoid(gates[:, 3 * H:])
    c_new = f * c + i * g
    h_new = o * jnp.tanh(c_new)
    return h_new, c_new


# ----------------------------------------------------------------------------
# ONE fused kernel, grid over batch ("parallel" so v7x's 2 TCs split it):
#   GAT (all views) -> multi-view fusion -> station gather -> unlabel/label
#   LSTM branches -> IDW attention -> GRUCell(h=0) -> output fc.
# ----------------------------------------------------------------------------
def fused_kernel(feat_ref, adj_ref, oh_ref, mu_ref, fu_ref, lab_ref, fl_ref,
                 dis_ref, s4_ref, s3_ref, s2_ref, sh_ref, out_ref):
    H = HIDDEN
    N = feat_ref.shape[1]               # 36
    node_num = N // 3                   # 12
    ns = oh_ref.shape[1]                # 10
    T = mu_ref.shape[1]                 # 6
    D = 2 * H

    # ---------------- GAT: projection hoisted out of the per-view loop -------
    gat_w = _seg(sh_ref, _LH, "gat_w")                                     # (F, H)
    a1 = _seg(sh_ref, _LH, "gat_a1")                                       # (1, H)
    a2 = _seg(sh_ref, _LH, "gat_a2")                                       # (1, H)

    feat = feat_ref[0]                                                     # (N, F)
    wh = jnp.dot(feat, gat_w, preferred_element_type=jnp.float32)          # (N, H)
    wh1 = lax.dot_general(wh, a1, (((1,), (1,)), ((), ())),
                          preferred_element_type=jnp.float32)              # (N, 1)
    wh2 = lax.dot_general(a2, wh, (((1,), (1,)), ((), ())),
                          preferred_element_type=jnp.float32)              # (1, N)
    e = wh1 + wh2                                                          # (N, N)
    e = jnp.where(e > 0, e, 0.2 * e)                                       # LeakyReLU(0.2)

    views = []
    for v in range(VIEW_NUM):                                              # static unroll
        logits = jnp.where(adj_ref[0, v] > 0, e, jnp.float32(-9e15))
        attn_v = _softmax(logits)
        hp = jnp.dot(attn_v, wh, preferred_element_type=jnp.float32)       # (N, H)
        hp = jnp.where(hp > 0, hp, jnp.exp(hp) - 1.0)                      # ELU (concat=True)
        views.append(_nan_to_num(hp))                                      # torch.nan_to_num
    x = jnp.concatenate(views, axis=0)                                     # (V*N, H)

    # ---------------- MultiView_GNN: 1-head self-attn + sigmoid-gated fusion -
    qkv_w = _seg(s3_ref, _L3, "qkv_w")                                     # (H, 3H)
    qkv_b = _seg(s3_ref, _L3, "qkv_b")
    o_w = _seg(sh_ref, _LH, "o_w")
    o_b = _seg(sh_ref, _LH, "o_b")
    fuse_w = _seg(sh_ref, _LH, "fuse_w")
    fuse_b = _seg(sh_ref, _LH, "fuse_b")

    qkv = jnp.dot(x, qkv_w, preferred_element_type=jnp.float32) + qkv_b    # (VN, 3H)
    q = qkv[:, :H]
    k = qkv[:, H:2 * H]
    val = qkv[:, 2 * H:]
    att_logits = lax.dot_general(q, k, (((1,), (1,)), ((), ())),
                                 preferred_element_type=jnp.float32)
    att_logits = att_logits * (1.0 / math.sqrt(H))
    attn = _softmax(att_logits)
    vals = jnp.dot(attn, val, preferred_element_type=jnp.float32)
    att_o = jnp.dot(vals, o_w, preferred_element_type=jnp.float32) + o_b   # (VN, H)
    fuse1 = ALPHA_FUSION * att_o + (1.0 - ALPHA_FUSION) * x

    # gated sum over views; only the last `node_num` nodes are kept downstream,
    # and the gate is row-wise, so slice first.
    acc = jnp.zeros((node_num, H), jnp.float32)
    for v in range(VIEW_NUM):
        hv = fuse1[v * N + 2 * node_num: v * N + 3 * node_num, :]          # (node_num, H)
        gate = _sigmoid(jnp.dot(hv, fuse_w, preferred_element_type=jnp.float32)
                        + fuse_b)
        acc = acc + gate * hv

    # labelled-station gather via precomputed one-hot matmul
    stf = jnp.dot(oh_ref[0], acc, preferred_element_type=jnp.float32)      # (ns, H)

    # ---------------- unlabelled-site branch ----------------------------------
    ul_wih = _seg(s4_ref, _L4, "ul_wih")                                   # (MEO, 4H)
    ul_whh = _seg(s4_ref, _L4, "ul_whh")                                   # (H, 4H)
    ul_b = _seg(s4_ref, _L4, "ul_b")                                       # (1, 4H)
    mu = mu_ref[0]                                                         # (T, MEO)
    gin_u = jnp.dot(mu, ul_wih, preferred_element_type=jnp.float32) + ul_b  # (T, 4H)
    h_u = jnp.zeros((1, H), jnp.float32)
    c_u = jnp.zeros((1, H), jnp.float32)
    for t in range(T):                                                     # static unroll
        gates = gin_u[t:t + 1] + jnp.dot(h_u, ul_whh,
                                         preferred_element_type=jnp.float32)
        h_u, c_u = _lstm_step(gates, c_u, H)

    ul1_w = _seg(sh_ref, _LH, "ul1_w")
    ul1_b = _seg(sh_ref, _LH, "ul1_b")
    un_fea = jnp.maximum(
        jnp.dot(fu_ref[0], ul1_w, preferred_element_type=jnp.float32) + ul1_b, 0.0)

    s2o = _L2["ul2_w"][0]
    ul2_w_t = s2_ref[s2o:s2o + H, :]                                       # rows: un_time
    ul2_w_f = s2_ref[s2o + H:s2o + 2 * H, :]                               # rows: un_fea
    ul2_b = _seg(s2_ref, _L2, "ul2_b")
    unlabel_data = jnp.maximum(
        jnp.dot(h_u, ul2_w_t, preferred_element_type=jnp.float32)
        + jnp.dot(un_fea, ul2_w_f, preferred_element_type=jnp.float32)
        + ul2_b, 0.0)                                                      # (1, 2H)

    # ---------------- labelled-station branch ---------------------------------
    ll_wih = _seg(s4_ref, _L4, "ll_wih")                                   # (MEO+1, 4H)
    ll_whh = _seg(s4_ref, _L4, "ll_whh")
    ll_b = _seg(s4_ref, _L4, "ll_b")
    lab_in = lab_ref[0]                                                    # (T, ns, MEO+1)
    gin_l = (jnp.dot(lab_in.reshape(T * ns, MEO + 1), ll_wih,
                     preferred_element_type=jnp.float32)
             + ll_b).reshape(T, ns, 4 * H)
    h_l = jnp.zeros((ns, H), jnp.float32)
    c_l = jnp.zeros((ns, H), jnp.float32)
    for t in range(T):                                                     # static unroll
        gates = gin_l[t] + jnp.dot(h_l, ll_whh,
                                   preferred_element_type=jnp.float32)
        h_l, c_l = _lstm_step(gates, c_l, H)

    ll1_w = _seg(sh_ref, _LH, "ll1_w")
    ll1_b = _seg(sh_ref, _LH, "ll1_b")
    lab_fea = jnp.maximum(
        jnp.dot(fl_ref[0], ll1_w, preferred_element_type=jnp.float32) + ll1_b, 0.0)

    l2o = _L2["ll2_w"][0]
    ll2_w_t = s2_ref[l2o:l2o + H, :]                                       # rows: lab_time
    ll2_w_f = s2_ref[l2o + H:l2o + 2 * H, :]                               # rows: lab_fea
    ll2_w_g = s2_ref[l2o + 2 * H:l2o + 3 * H, :]                           # rows: stfgn
    ll2_b = _seg(s2_ref, _L2, "ll2_b")
    label_data = jnp.maximum(
        jnp.dot(h_l, ll2_w_t, preferred_element_type=jnp.float32)
        + jnp.dot(lab_fea, ll2_w_f, preferred_element_type=jnp.float32)
        + jnp.dot(stf, ll2_w_g, preferred_element_type=jnp.float32)
        + ll2_b, 0.0)                                                      # (ns, 2H)

    # ---------------- IDW attention --------------------------------------------
    a1o = _LH["att1_w"][0]
    att1_w_lab = sh_ref[a1o:a1o + D, :]                                    # (2H, 32) zero-padded past 16
    att1_w_un = sh_ref[a1o + D:a1o + 2 * D, :]
    att1_b = _seg(sh_ref, _LH, "att1_b")
    att2_w = _seg(sh_ref, _LH, "att2_w")                                   # (1, 32) zero-padded past 16
    att2_b = _seg(sh_ref, _LH, "att2_b")
    lab_part = jnp.dot(label_data, att1_w_lab, preferred_element_type=jnp.float32)
    un_part = jnp.dot(unlabel_data, att1_w_un, preferred_element_type=jnp.float32)
    hid = jnp.maximum(lab_part + un_part + att1_b, 0.0)                    # (ns, 32)
    logits = lax.dot_general(att2_w, hid, (((1,), (1,)), ((), ())),
                             preferred_element_type=jnp.float32)           # (1, ns)
    logits = logits + att2_b[0:1, 0:1]
    scores = logits * dis_ref[0]                                           # (1, ns)
    attn_s = _softmax(scores)                                              # (1, ns)
    att_out = jnp.dot(attn_s, label_data,
                      preferred_element_type=jnp.float32)                  # (1, 2H)

    # ---------------- ReLU -> GRUCell(h=0) -> output fc -------------------------
    gru_wih = _seg(s3_ref, _L3, "gru_wih")                                 # (2H, 3H)
    gru_bih = _seg(s3_ref, _L3, "gru_bih")
    gru_bhh = _seg(s3_ref, _L3, "gru_bhh")
    sp = jnp.maximum(att_out, 0.0)
    gi = jnp.dot(sp, gru_wih, preferred_element_type=jnp.float32) + gru_bih
    r = _sigmoid(gi[:, :H] + gru_bhh[:, :H])
    z = _sigmoid(gi[:, H:2 * H] + gru_bhh[:, H:2 * H])
    n = jnp.tanh(gi[:, 2 * H:] + r * gru_bhh[:, 2 * H:])
    h_t = (1.0 - z) * n                                                    # + z * 0

    fc_w = _seg(sh_ref, _LH, "fc_w")                                       # (H, 32) col-0 real
    fc_b = _seg(sh_ref, _LH, "fc_b")
    out = jnp.dot(h_t, fc_w, preferred_element_type=jnp.float32) + fc_b    # (1, 32)
    out_ref[0] = out[:, :OUT_SIZE]


# ----------------------------------------------------------------------------
# Full forward: exactly ONE pallas_call (plus trivial host-side packing)
# ----------------------------------------------------------------------------
def mvgfrnn_forward(params, meo_unlabel, feature_unlabel, ovi_label, meo_label,
                    feature_label, dis_label, h_t, node_feat, adj, gid_idx):
    # TODO(synk): read_fusion_graph loads adjacencies/features from .npy files
    # keyed on `timestamp`; here (node_feat, adj, gid_idx) are passed directly.
    del h_t  # GRU2 is called without a hidden state in the original forward.

    B = meo_unlabel.shape[0]
    N = node_feat.shape[1]
    V = adj.shape[1]
    ns = NUM_STATION

    # host-side prep (cheap, lane-friendly):
    onehot = jax.nn.one_hot(gid_idx, NODE_NUM, dtype=jnp.float32)          # (B, ns, node_num)
    lab_in = jnp.concatenate([ovi_label[..., None], meo_label], axis=-1)   # (B, ns, T, MEO+1)
    lab_in = jnp.transpose(lab_in, (0, 2, 1, 3))                           # (B, T, ns, MEO+1)
    fu3 = feature_unlabel[:, None, :]                                      # (B, 1, ST9)
    dis3 = dis_label[:, None, :]                                           # (B, 1, ns)

    out3 = pl.pallas_call(
        fused_kernel,
        out_shape=jax.ShapeDtypeStruct((B, 1, OUT_SIZE), jnp.float32),
        grid=(B,),
        in_specs=[
            pl.BlockSpec((1, N, GAT_IN), lambda b: (b, 0, 0)),
            pl.BlockSpec((1, V, N, N), lambda b: (b, 0, 0, 0)),
            pl.BlockSpec((1, ns, NODE_NUM), lambda b: (b, 0, 0)),
            pl.BlockSpec((1, T_SEQ, MEO), lambda b: (b, 0, 0)),
            pl.BlockSpec((1, 1, ST9), lambda b: (b, 0, 0)),
            pl.BlockSpec((1, T_SEQ, ns, MEO + 1), lambda b: (b, 0, 0, 0)),
            pl.BlockSpec((1, ns, ST9 + 1), lambda b: (b, 0, 0)),
            pl.BlockSpec((1, 1, ns), lambda b: (b, 0, 0)),
            # weight slabs: constant block index -> DMA'd once for the whole grid
            pl.BlockSpec((_R4, 4 * HIDDEN), lambda b: (0, 0)),
            pl.BlockSpec((_R3, 3 * HIDDEN), lambda b: (0, 0)),
            pl.BlockSpec((_R2, 2 * HIDDEN), lambda b: (0, 0)),
            pl.BlockSpec((_RH, HIDDEN), lambda b: (0, 0)),
        ],
        out_specs=pl.BlockSpec((1, 1, OUT_SIZE), lambda b: (b, 0, 0)),
        compiler_params=pltpu.CompilerParams(dimension_semantics=("parallel",)),
    )(node_feat, adj, onehot, meo_unlabel, fu3, lab_in, feature_label, dis3,
      params["slab4h"], params["slab3h"], params["slab2h"], params["slabh"])

    # The original `for j in range(PREV_SLOT)` loop recomputes an identical
    # result every iteration (no state carried), so a single pass suffices.
    return out3.reshape(B, OUT_SIZE)


# ----------------------------------------------------------------------------
# Deterministic parameter init (same layer shapes as the torch module; dense
# weights stored pre-transposed as (in, out), LSTM biases pre-summed), packed
# into four width-grouped slabs.
# ----------------------------------------------------------------------------
def init_params(key):
    keys = jax.random.split(key, 32)
    ki = iter(keys)
    H = HIDDEN

    def w(shape, scale=0.1):
        return jax.random.normal(next(ki), shape, jnp.float32) * scale

    pieces_4h = {
        "ul_wih": w((MEO, 4 * H)),        # unlabel LSTM(4, 32)
        "ul_whh": w((H, 4 * H)),
        "ul_b": w((1, 4 * H)),            # b_ih + b_hh pre-summed
        "ll_wih": w((MEO + 1, 4 * H)),    # label LSTM(5, 32); row 0 = ovi column
        "ll_whh": w((H, 4 * H)),
        "ll_b": w((1, 4 * H)),
    }
    pieces_3h = {
        "qkv_w": w((H, 3 * H)),           # MultiheadAttention qkv_proj
        "qkv_b": jnp.zeros((1, 3 * H), jnp.float32),
        "gru_wih": w((2 * H, 3 * H)),     # GRUCell(64, 32) (W_hh unused: h=0)
        "gru_bih": w((1, 3 * H)),
        "gru_bhh": w((1, 3 * H)),
    }
    pieces_2h = {
        "ul2_w": w((2 * H, 2 * H)),       # rows: [un_time | un_fea]
        "ul2_b": w((1, 2 * H)),
        "ll2_w": w((3 * H, 2 * H)),       # rows: [lab_time | lab_fea | stfgn]
        "ll2_b": w((1, 2 * H)),
    }
    pieces_h = {
        "gat_w": w((GAT_IN, H)),          # GraphAttentionLayer(22 -> 32)
        "gat_a1": w((1, H)),              # a[:H]  stored as a row
        "gat_a2": w((1, H)),              # a[H:]  stored as a row
        "o_w": w((H, H)),                 # MultiheadAttention o_proj
        "o_b": jnp.zeros((1, H), jnp.float32),
        "fuse_w": w((H, H)),              # linear_fusion(32, 32)
        "fuse_b": w((1, H)),
        "ul1_w": w((ST9, H)),             # unlabel_linear_1
        "ul1_b": w((1, H)),
        "ll1_w": w((ST9 + 1, H)),         # label_linear_1
        "ll1_b": w((1, H)),
        "att1_w": w((4 * H, 16)),         # Attention_layer linear_1; rows [label|unlabel]
        "att1_b": w((1, 16)),
        "att2_w": w((1, 16)),             # Attention_layer linear_2
        "att2_b": w((1, 1)),
        "fc_w": w((H, OUT_SIZE)),         # output_fc(32, 1)
        "fc_b": jnp.zeros((1, OUT_SIZE), jnp.float32),
    }
    return {
        "slab4h": _pack(_L4, _R4, 4 * H, pieces_4h),
        "slab3h": _pack(_L3, _R3, 3 * H, pieces_3h),
        "slab2h": _pack(_L2, _R2, 2 * H, pieces_2h),
        "slabh": _pack(_LH, _RH, H, pieces_h),
    }


# ----------------------------------------------------------------------------
# Main
# ----------------------------------------------------------------------------
if __name__ == "__main__":
    key = jax.random.PRNGKey(0)
    pkey, dkey = jax.random.split(key)
    params = init_params(pkey)

    ks = jax.random.split(dkey, 10)
    meo_unlabel = jax.random.normal(ks[0], (BATCH, T_SEQ, MEO), jnp.float32)
    feature_unlabel = jax.random.normal(ks[1], (BATCH, ST9), jnp.float32)
    ovi_label = jax.random.normal(ks[2], (BATCH, NUM_STATION, T_SEQ), jnp.float32)
    meo_label = jax.random.normal(ks[3], (BATCH, NUM_STATION, T_SEQ, MEO),
                                  jnp.float32)
    feature_label = jax.random.normal(ks[4], (BATCH, NUM_STATION, ST9 + 1),
                                      jnp.float32)
    dis_label = jax.random.uniform(ks[5], (BATCH, NUM_STATION), jnp.float32,
                                   0.1, 1.0)
    h_t = jnp.zeros((BATCH, HIDDEN), jnp.float32)

    # synthetic graph data (stands in for read_fusion_graph's .npy loads);
    # eye(N) guarantees every adjacency row has at least one unmasked entry.
    node_feat = jax.random.normal(ks[6], (BATCH, N_NODES, GAT_IN), jnp.float32)
    adj_rand = (jax.random.uniform(ks[7], (BATCH, VIEW_NUM, N_NODES, N_NODES))
                > 0.5).astype(jnp.float32)
    adj = jnp.maximum(adj_rand, jnp.eye(N_NODES, dtype=jnp.float32))
    gid_idx = jnp.stack([
        jax.random.permutation(k, NODE_NUM)[:NUM_STATION]
        for k in jax.random.split(ks[8], BATCH)
    ]).astype(jnp.int32)                                   # (B, num_station)

    fwd = jax.jit(mvgfrnn_forward)
    out = fwd(params, meo_unlabel, feature_unlabel, ovi_label, meo_label,
              feature_label, dis_label, h_t, node_feat, adj, gid_idx)
    out = jax.block_until_ready(out)
    assert out.shape == (BATCH, OUT_SIZE)
    assert not bool(jnp.isnan(out).any())
    print("KERNEL_OK")
</pallas_src>

<mosaic_0001>
module attributes {stable_mosaic.version = 11 : i64} {
  func.func @fused_kernel(%arg0: i32, %arg1: memref<1x36x22xf32, #tpu.memory_space<vmem>>, %arg2: memref<1x3x36x36xf32, #tpu.memory_space<vmem>>, %arg3: memref<1x10x12xf32, #tpu.memory_space<vmem>>, %arg4: memref<1x6x4xf32, #tpu.memory_space<vmem>>, %arg5: memref<1x1x18xf32, #tpu.memory_space<vmem>>, %arg6: memref<1x6x10x5xf32, #tpu.memory_space<vmem>>, %arg7: memref<1x10x19xf32, #tpu.memory_space<vmem>>, %arg8: memref<1x1x10xf32, #tpu.memory_space<vmem>>, %arg9: memref<96x128xf32, #tpu.memory_space<vmem>>, %arg10: memref<120x96xf32, #tpu.memory_space<vmem>>, %arg11: memref<176x64xf32, #tpu.memory_space<vmem>>, %arg12: memref<376x32xf32, #tpu.memory_space<vmem>>, %arg13: memref<1x1x1xf32, #tpu.memory_space<vmem>>) attributes {dimension_semantics = [#tpu.dimension_semantics<parallel>], iteration_bounds = array<i64: 2>, scalar_prefetch = 0 : i64, scratch_operands = 0 : i64, tpu.core_type = #tpu.core_type<tc>, window_params = [{transform_indices = @transform_0, window_bounds = array<i64: 1, 36, 22>}, {transform_indices = @transform_1, window_bounds = array<i64: 1, 3, 36, 36>}, {transform_indices = @transform_2, window_bounds = array<i64: 1, 10, 12>}, {transform_indices = @transform_3, window_bounds = array<i64: 1, 6, 4>}, {transform_indices = @transform_4, window_bounds = array<i64: 1, 1, 18>}, {transform_indices = @transform_5, window_bounds = array<i64: 1, 6, 10, 5>}, {transform_indices = @transform_6, window_bounds = array<i64: 1, 10, 19>}, {transform_indices = @transform_7, window_bounds = array<i64: 1, 1, 10>}, {pipeline_mode = #tpu.pipeline_mode<synchronous>, transform_indices = @transform_8, window_bounds = array<i64: 96, 128>}, {pipeline_mode = #tpu.pipeline_mode<synchronous>, transform_indices = @transform_9, window_bounds = array<i64: 120, 96>}, {pipeline_mode = #tpu.pipeline_mode<synchronous>, transform_indices = @transform_10, window_bounds = array<i64: 176, 64>}, {pipeline_mode = #tpu.pipeline_mode<synchronous>, transform_indices = @transform_11, window_bounds = array<i64: 376, 32>}, {transform_indices = @transform_12, window_bounds = array<i64: 1, 1, 1>}]} {
    %c0 = arith.constant 0 : index
    %c0_0 = arith.constant 0 : index
    %0 = vector.load %arg12[%c0, %c0_0] : memref<376x32xf32, #tpu.memory_space<vmem>>, vector<22x32xf32>
    %c24 = arith.constant 24 : index
    %c0_1 = arith.constant 0 : index
    %1 = vector.load %arg12[%c24, %c0_1] : memref<376x32xf32, #tpu.memory_space<vmem>>, vector<1x32xf32>
    %c32 = arith.constant 32 : index
    %c0_2 = arith.constant 0 : index
    %2 = vector.load %arg12[%c32, %c0_2] : memref<376x32xf32, #tpu.memory_space<vmem>>, vector<1x32xf32>
    %c0_3 = arith.constant 0 : index
    %c0_4 = arith.constant 0 : index
    %c0_5 = arith.constant 0 : index
    %3 = vector.load %arg1[%c0_3, %c0_4, %c0_5] : memref<1x36x22xf32, #tpu.memory_space<vmem>>, vector<1x36x22xf32>
    %4 = vector.shape_cast %3 : vector<1x36x22xf32> to vector<36x22xf32>
    %cst = arith.constant dense<0.000000e+00> : vector<36x32xf32>
    %5 = tpu.matmul %4, %0, %cst {dimension_numbers = #tpu.dot_dimension_numbers<[1], [0], [0], [1], [0, 0, 1, 1], [], []>} : vector<36x22xf32>, vector<22x32xf32>, vector<36x32xf32> -> vector<36x32xf32>
    %cst_6 = arith.constant dense<0.000000e+00> : vector<36x1xf32>
    %6 = tpu.matmul %5, %1, %cst_6 {dimension_numbers = #tpu.dot_dimension_numbers<[1], [1], [0], [0], [0, 0, 1, 0], [], []>} : vector<36x32xf32>, vector<1x32xf32>, vector<36x1xf32> -> vector<36x1xf32>
    %cst_7 = arith.constant dense<0.000000e+00> : vector<1x36xf32>
    %7 = tpu.matmul %2, %5, %cst_7 {dimension_numbers = #tpu.dot_dimension_numbers<[1], [1], [0], [0], [0, 0, 1, 0], [], []>} : vector<1x32xf32>, vector<36x32xf32>, vector<1x36xf32> -> vector<1x36xf32>
    %8 = vector.broadcast %6 : vector<36x1xf32> to vector<36x36xf32>
    %9 = vector.broadcast %7 : vector<1x36xf32> to vector<36x36xf32>
    %10 = arith.addf %8, %9 : vector<36x36xf32>
    %cst_8 = arith.constant 0.000000e+00 : f32
    %11 = vector.broadcast %cst_8 : f32 to vector<36x36xf32>
    %12 = arith.cmpf ogt, %10, %11 : vector<36x36xf32>
    %cst_9 = arith.constant 2.000000e-01 : f32
    %13 = vector.broadcast %cst_9 : f32 to vector<36x36xf32>
    %14 = arith.mulf %13, %10 : vector<36x36xf32>
    %15 = arith.select %12, %10, %14 : vector<36x36xi1>, vector<36x36xf32>
    %c0_10 = arith.constant 0 : index
    %c0_11 = arith.constant 0 : index
    %c0_12 = arith.constant 0 : index
    %c0_13 = arith.constant 0 : index
    %16 = vector.load %arg2[%c0_10, %c0_11, %c0_12, %c0_13] : memref<1x3x36x36xf32, #tpu.memory_space<vmem>>, vector<1x1x36x36xf32>
    %17 = vector.shape_cast %16 : vector<1x1x36x36xf32> to vector<36x36xf32>
    %cst_14 = arith.constant 0.000000e+00 : f32
    %18 = vector.broadcast %cst_14 : f32 to vector<36x36xf32>
    %19 = arith.cmpf ogt, %17, %18 : vector<36x36xf32>
    %cst_15 = arith.constant -9.000000e+15 : f32
    %20 = vector.broadcast %cst_15 : f32 to vector<36x36xf32>
    %21 = arith.select %19, %15, %20 : vector<36x36xi1>, vector<36x36xf32>
    %cst_16 = arith.constant dense<0xFF800000> : vector<36xf32>
    %22 = vector.multi_reduction <maximumf>, %21, %cst_16 [1] : vector<36x36xf32> to vector<36xf32>
    %23 = vector.shape_cast %22 : vector<36xf32> to vector<36x1xf32>
    %24 = vector.broadcast %23 : vector<36x1xf32> to vector<36x36xf32>
    %25 = arith.subf %21, %24 : vector<36x36xf32>
    %26 = math.exp %25 : vector<36x36xf32>
    %cst_17 = arith.constant dense<0.000000e+00> : vector<36xf32>
    %27 = vector.multi_reduction <add>, %26, %cst_17 [1] : vector<36x36xf32> to vector<36xf32>
    %28 = vector.shape_cast %27 : vector<36xf32> to vector<36x1xf32>
    %29 = tpu.reciprocal %28 {approx = true} : vector<36x1xf32> -> vector<36x1xf32>
    %30 = vector.broadcast %29 : vector<36x1xf32> to vector<36x36xf32>
    %31 = arith.mulf %26, %30 : vector<36x36xf32>
    %cst_18 = arith.constant dense<0.000000e+00> : vector<36x32xf32>
    %32 = tpu.matmul %31, %5, %cst_18 {dimension_numbers = #tpu.dot_dimension_numbers<[1], [0], [0], [1], [0, 0, 1, 1], [], []>} : vector<36x36xf32>, vector<36x32xf32>, vector<36x32xf32> -> vector<36x32xf32>
    %cst_19 = arith.constant 0.000000e+00 : f32
    %33 = vector.broadcast %cst_19 : f32 to vector<36x32xf32>
    %34 = arith.cmpf ogt, %32, %33 : vector<36x32xf32>
    %35 = math.exp %32 : vector<36x32xf32>
    %cst_20 = arith.constant 1.000000e+00 : f32
    %36 = vector.broadcast %cst_20 : f32 to vector<36x32xf32>
    %37 = arith.subf %35, %36 : vector<36x32xf32>
    %38 = arith.select %34, %32, %37 : vector<36x32xi1>, vector<36x32xf32>
    %39 = arith.cmpf one, %38, %38 : vector<36x32xf32>
    %cst_21 = arith.constant 0.000000e+00 : f32
    %40 = vector.broadcast %cst_21 : f32 to vector<36x32xf32>
    %41 = arith.select %39, %40, %38 : vector<36x32xi1>, vector<36x32xf32>
    %cst_22 = arith.constant 0.000000e+00 : f32
    %cst_23 = arith.constant 3.40282347E+38 : f32
    %42 = arith.subf %cst_22, %cst_23 : f32
    %cst_24 = arith.constant 3.40282347E+38 : f32
    %43 = vector.broadcast %42 : f32 to vector<36x32xf32>
    %44 = arith.maximumf %43, %41 : vector<36x32xf32>
    %45 = vector.broadcast %cst_24 : f32 to vector<36x32xf32>
    %46 = arith.minimumf %45, %44 : vector<36x32xf32>
    %c0_25 = arith.constant 0 : index
    %c1 = arith.constant 1 : index
    %c0_26 = arith.constant 0 : index
    %c0_27 = arith.constant 0 : index
    %47 = vector.load %arg2[%c0_25, %c1, %c0_26, %c0_27] : memref<1x3x36x36xf32, #tpu.memory_space<vmem>>, vector<1x1x36x36xf32>
    %48 = vector.shape_cast %47 : vector<1x1x36x36xf32> to vector<36x36xf32>
    %cst_28 = arith.constant 0.000000e+00 : f32
    %49 = vector.broadcast %cst_28 : f32 to vector<36x36xf32>
    %50 = arith.cmpf ogt, %48, %49 : vector<36x36xf32>
    %cst_29 = arith.constant -9.000000e+15 : f32
    %51 = vector.broadcast %cst_29 : f32 to vector<36x36xf32>
    %52 = arith.select %50, %15, %51 : vector<36x36xi1>, vector<36x36xf32>
    %cst_30 = arith.constant dense<0xFF800000> : vector<36xf32>
    %53 = vector.multi_reduction <maximumf>, %52, %cst_30 [1] : vector<36x36xf32> to vector<36xf32>
    %54 = vector.shape_cast %53 : vector<36xf32> to vector<36x1xf32>
    %55 = vector.broadcast %54 : vector<36x1xf32> to vector<36x36xf32>
    %56 = arith.subf %52, %55 : vector<36x36xf32>
    %57 = math.exp %56 : vector<36x36xf32>
    %cst_31 = arith.constant dense<0.000000e+00> : vector<36xf32>
    %58 = vector.multi_reduction <add>, %57, %cst_31 [1] : vector<36x36xf32> to vector<36xf32>
    %59 = vector.shape_cast %58 : vector<36xf32> to vector<36x1xf32>
    %60 = tpu.reciprocal %59 {approx = true} : vector<36x1xf32> -> vector<36x1xf32>
    %61 = vector.broadcast %60 : vector<36x1xf32> to vector<36x36xf32>
    %62 = arith.mulf %57, %61 : vector<36x36xf32>
    %cst_32 = arith.constant dense<0.000000e+00> : vector<36x32xf32>
    %63 = tpu.matmul %62, %5, %cst_32 {dimension_numbers = #tpu.dot_dimension_numbers<[1], [0], [0], [1], [0, 0, 1, 1], [], []>} : vector<36x36xf32>, vector<36x32xf32>, vector<36x32xf32> -> vector<36x32xf32>
    %cst_33 = arith.constant 0.000000e+00 : f32
    %64 = vector.broadcast %cst_33 : f32 to vector<36x32xf32>
    %65 = arith.cmpf ogt, %63, %64 : vector<36x32xf32>
    %66 = math.exp %63 : vector<36x32xf32>
    %cst_34 = arith.constant 1.000000e+00 : f32
    %67 = vector.broadcast %cst_34 : f32 to vector<36x32xf32>
    %68 = arith.subf %66, %67 : vector<36x32xf32>
    %69 = arith.select %65, %63, %68 : vector<36x32xi1>, vector<36x32xf32>
    %70 = arith.cmpf one, %69, %69 : vector<36x32xf32>
    %cst_35 = arith.constant 0.000000e+00 : f32
    %71 = vector.broadcast %cst_35 : f32 to vector<36x32xf32>
    %72 = arith.select %70, %71, %69 : vector<36x32xi1>, vector<36x32xf32>
    %cst_36 = arith.constant 0.000000e+00 : f32
    %cst_37 = arith.constant 3.40282347E+38 : f32
    %73 = arith.subf %cst_36, %cst_37 : f32
    %cst_38 = arith.constant 3.40282347E+38 : f32
    %74 = vector.broadcast %73 : f32 to vector<36x32xf32>
    %75 = arith.maximumf %74, %72 : vector<36x32xf32>
    %76 = vector.broadcast %cst_38 : f32 to vector<36x32xf32>
    %77 = arith.minimumf %76, %75 : vector<36x32xf32>
    %c0_39 = arith.constant 0 : index
    %c2 = arith.constant 2 : index
    %c0_40 = arith.constant 0 : index
    %c0_41 = arith.constant 0 : index
    %78 = vector.load %arg2[%c0_39, %c2, %c0_40, %c0_41] : memref<1x3x36x36xf32, #tpu.memory_space<vmem>>, vector<1x1x36x36xf32>
    %79 = vector.shape_cast %78 : vector<1x1x36x36xf32> to vector<36x36xf32>
    %cst_42 = arith.constant 0.000000e+00 : f32
    %80 = vector.broadcast %cst_42 : f32 to vector<36x36xf32>
    %81 = arith.cmpf ogt, %79, %80 : vector<36x36xf32>
    %cst_43 = arith.constant -9.000000e+15 : f32
    %82 = vector.broadcast %cst_43 : f32 to vector<36x36xf32>
    %83 = arith.select %81, %15, %82 : vector<36x36xi1>, vector<36x36xf32>
    %cst_44 = arith.constant dense<0xFF800000> : vector<36xf32>
    %84 = vector.multi_reduction <maximumf>, %83, %cst_44 [1] : vector<36x36xf32> to vector<36xf32>
    %85 = vector.shape_cast %84 : vector<36xf32> to vector<36x1xf32>
    %86 = vector.broadcast %85 : vector<36x1xf32> to vector<36x36xf32>
    %87 = arith.subf %83, %86 : vector<36x36xf32>
    %88 = math.exp %87 : vector<36x36xf32>
    %cst_45 = arith.constant dense<0.000000e+00> : vector<36xf32>
    %89 = vector.multi_reduction <add>, %88, %cst_45 [1] : vector<36x36xf32> to vector<36xf32>
    %90 = vector.shape_cast %89 : vector<36xf32> to vector<36x1xf32>
    %91 = tpu.reciprocal %90 {approx = true} : vector<36x1xf32> -> vector<36x1xf32>
    %92 = vector.broadcast %91 : vector<36x1xf32> to vector<36x36xf32>
    %93 = arith.mulf %88, %92 : vector<36x36xf32>
    %cst_46 = arith.constant dense<0.000000e+00> : vector<36x32xf32>
    %94 = tpu.matmul %93, %5, %cst_46 {dimension_numbers = #tpu.dot_dimension_numbers<[1], [0], [0], [1], [0, 0, 1, 1], [], []>} : vector<36x36xf32>, vector<36x32xf32>, vector<36x32xf32> -> vector<36x32xf32>
    %cst_47 = arith.constant 0.000000e+00 : f32
    %95 = vector.broadcast %cst_47 : f32 to vector<36x32xf32>
    %96 = arith.cmpf ogt, %94, %95 : vector<36x32xf32>
    %97 = math.exp %94 : vector<36x32xf32>
    %cst_48 = arith.constant 1.000000e+00 : f32
    %98 = vector.broadcast %cst_48 : f32 to vector<36x32xf32>
    %99 = arith.subf %97, %98 : vector<36x32xf32>
    %100 = arith.select %96, %94, %99 : vector<36x32xi1>, vector<36x32xf32>
    %101 = arith.cmpf one, %100, %100 : vector<36x32xf32>
    %cst_49 = arith.constant 0.000000e+00 : f32
    %102 = vector.broadcast %cst_49 : f32 to vector<36x32xf32>
    %103 = arith.select %101, %102, %100 : vector<36x32xi1>, vector<36x32xf32>
    %cst_50 = arith.constant 0.000000e+00 : f32
    %cst_51 = arith.constant 3.40282347E+38 : f32
    %104 = arith.subf %cst_50, %cst_51 : f32
    %cst_52 = arith.constant 3.40282347E+38 : f32
    %105 = vector.broadcast %104 : f32 to vector<36x32xf32>
    %106 = arith.maximumf %105, %103 : vector<36x32xf32>
    %107 = vector.broadcast %cst_52 : f32 to vector<36x32xf32>
    %108 = arith.minimumf %107, %106 : vector<36x32xf32>
    %109 = tpu.concatenate %46, %77, %108 in 0 : vector<36x32xf32>, vector<36x32xf32>, vector<36x32xf32> -> vector<108x32xf32>
    %c0_53 = arith.constant 0 : index
    %c0_54 = arith.constant 0 : index
    %110 = vector.load %arg10[%c0_53, %c0_54] : memref<120x96xf32, #tpu.memory_space<vmem>>, vector<32x96xf32>
    %c32_55 = arith.constant 32 : index
    %c0_56 = arith.constant 0 : index
    %111 = vector.load %arg10[%c32_55, %c0_56] : memref<120x96xf32, #tpu.memory_space<vmem>>, vector<1x96xf32>
    %c40 = arith.constant 40 : index
    %c0_57 = arith.constant 0 : index
    %112 = vector.load %arg12[%c40, %c0_57] : memref<376x32xf32, #tpu.memory_space<vmem>>, vector<32x32xf32>
    %c72 = arith.constant 72 : index
    %c0_58 = arith.constant 0 : index
    %113 = vector.load %arg12[%c72, %c0_58] : memref<376x32xf32, #tpu.memory_space<vmem>>, vector<1x32xf32>
    %c80 = arith.constant 80 : index
    %c0_59 = arith.constant 0 : index
    %114 = vector.load %arg12[%c80, %c0_59] : memref<376x32xf32, #tpu.memory_space<vmem>>, vector<32x32xf32>
    %c112 = arith.constant 112 : index
    %c0_60 = arith.constant 0 : index
    %115 = vector.load %arg12[%c112, %c0_60] : memref<376x32xf32, #tpu.memory_space<vmem>>, vector<1x32xf32>
    %cst_61 = arith.constant dense<0.000000e+00> : vector<108x96xf32>
    %116 = tpu.matmul %109, %110, %cst_61 {dimension_numbers = #tpu.dot_dimension_numbers<[1], [0], [0], [1], [0, 0, 1, 1], [], []>} : vector<108x32xf32>, vector<32x96xf32>, vector<108x96xf32> -> vector<108x96xf32>
    %117 = vector.broadcast %111 : vector<1x96xf32> to vector<108x96xf32>
    %118 = arith.addf %116, %117 : vector<108x96xf32>
    %119 = vector.extract_strided_slice %118 {offsets = [0, 0], sizes = [108, 32], strides = [1, 1]} : vector<108x96xf32> to vector<108x32xf32>
    %120 = vector.extract_strided_slice %118 {offsets = [0, 32], sizes = [108, 32], strides = [1, 1]} : vector<108x96xf32> to vector<108x32xf32>
    %121 = vector.extract_strided_slice %118 {offsets = [0, 64], sizes = [108, 32], strides = [1, 1]} : vector<108x96xf32> to vector<108x32xf32>
    %cst_62 = arith.constant dense<0.000000e+00> : vector<108x108xf32>
    %122 = tpu.matmul %119, %120, %cst_62 {dimension_numbers = #tpu.dot_dimension_numbers<[1], [1], [0], [0], [0, 0, 1, 0], [], []>} : vector<108x32xf32>, vector<108x32xf32>, vector<108x108xf32> -> vector<108x108xf32>
    %cst_63 = arith.constant 0.176776692 : f32
    %123 = vector.broadcast %cst_63 : f32 to vector<108x108xf32>
    %124 = arith.mulf %122, %123 : vector<108x108xf32>
    %cst_64 = arith.constant dense<0xFF800000> : vector<108xf32>
    %125 = vector.multi_reduction <maximumf>, %124, %cst_64 [1] : vector<108x108xf32> to vector<108xf32>
    %126 = vector.shape_cast %125 : vector<108xf32> to vector<108x1xf32>
    %127 = vector.broadcast %126 : vector<108x1xf32> to vector<108x108xf32>
    %128 = arith.subf %124, %127 : vector<108x108xf32>
    %129 = math.exp %128 : vector<108x108xf32>
    %cst_65 = arith.constant dense<0.000000e+00> : vector<108xf32>
    %130 = vector.multi_reduction <add>, %129, %cst_65 [1] : vector<108x108xf32> to vector<108xf32>
    %131 = vector.shape_cast %130 : vector<108xf32> to vector<108x1xf32>
    %132 = tpu.reciprocal %131 {approx = true} : vector<108x1xf32> -> vector<108x1xf32>
    %133 = vector.broadcast %132 : vector<108x1xf32> to vector<108x108xf32>
    %134 = arith.mulf %129, %133 : vector<108x108xf32>
    %cst_66 = arith.constant dense<0.000000e+00> : vector<108x32xf32>
    %135 = tpu.matmul %134, %121, %cst_66 {dimension_numbers = #tpu.dot_dimension_numbers<[1], [0], [0], [1], [0, 0, 1, 1], [], []>} : vector<108x108xf32>, vector<108x32xf32>, vector<108x32xf32> -> vector<108x32xf32>
    %cst_67 = arith.constant dense<0.000000e+00> : vector<108x32xf32>
    %136 = tpu.matmul %135, %112, %cst_67 {dimension_numbers = #tpu.dot_dimension_numbers<[1], [0], [0], [1], [0, 0, 1, 1], [], []>} : vector<108x32xf32>, vector<32x32xf32>, vector<108x32xf32> -> vector<108x32xf32>
    %137 = vector.broadcast %113 : vector<1x32xf32> to vector<108x32xf32>
    %138 = arith.addf %136, %137 : vector<108x32xf32>
    %cst_68 = arith.constant 8.000000e-01 : f32
    %139 = vector.broadcast %cst_68 : f32 to vector<108x32xf32>
    %140 = arith.mulf %139, %138 : vector<108x32xf32>
    %cst_69 = arith.constant 2.000000e-01 : f32
    %141 = vector.broadcast %cst_69 : f32 to vector<108x32xf32>
    %142 = arith.mulf %141, %109 : vector<108x32xf32>
    %143 = arith.addf %140, %142 : vector<108x32xf32>
    %cst_70 = arith.constant 0.000000e+00 : f32
    %144 = vector.broadcast %cst_70 : f32 to vector<12x32xf32>
    %145 = vector.extract_strided_slice %143 {offsets = [24, 0], sizes = [12, 32], strides = [1, 1]} : vector<108x32xf32> to vector<12x32xf32>
    %cst_71 = arith.constant dense<0.000000e+00> : vector<12x32xf32>
    %146 = tpu.matmul %145, %114, %cst_71 {dimension_numbers = #tpu.dot_dimension_numbers<[1], [0], [0], [1], [0, 0, 1, 1], [], []>} : vector<12x32xf32>, vector<32x32xf32>, vector<12x32xf32> -> vector<12x32xf32>
    %147 = vector.broadcast %115 : vector<1x32xf32> to vector<12x32xf32>
    %148 = arith.addf %146, %147 : vector<12x32xf32>
    %cst_72 = arith.constant 0.000000e+00 : f32
    %149 = vector.broadcast %cst_72 : f32 to vector<12x32xf32>
    %150 = arith.subf %149, %148 : vector<12x32xf32>
    %151 = math.exp %150 : vector<12x32xf32>
    %cst_73 = arith.constant 1.000000e+00 : f32
    %152 = vector.broadcast %cst_73 : f32 to vector<12x32xf32>
    %153 = arith.addf %152, %151 : vector<12x32xf32>
    %cst_74 = arith.constant 1.000000e+00 : f32
    %154 = vector.broadcast %cst_74 : f32 to vector<12x32xf32>
    %155 = arith.divf %154, %153 : vector<12x32xf32>
    %156 = arith.mulf %155, %145 : vector<12x32xf32>
    %157 = arith.addf %144, %156 : vector<12x32xf32>
    %158 = vector.extract_strided_slice %143 {offsets = [60, 0], sizes = [12, 32], strides = [1, 1]} : vector<108x32xf32> to vector<12x32xf32>
    %cst_75 = arith.constant dense<0.000000e+00> : vector<12x32xf32>
    %159 = tpu.matmul %158, %114, %cst_75 {dimension_numbers = #tpu.dot_dimension_numbers<[1], [0], [0], [1], [0, 0, 1, 1], [], []>} : vector<12x32xf32>, vector<32x32xf32>, vector<12x32xf32> -> vector<12x32xf32>
    %160 = vector.broadcast %115 : vector<1x32xf32> to vector<12x32xf32>
    %161 = arith.addf %159, %160 : vector<12x32xf32>
    %cst_76 = arith.constant 0.000000e+00 : f32
    %162 = vector.broadcast %cst_76 : f32 to vector<12x32xf32>
    %163 = arith.subf %162, %161 : vector<12x32xf32>
    %164 = math.exp %163 : vector<12x32xf32>
    %cst_77 = arith.constant 1.000000e+00 : f32
    %165 = vector.broadcast %cst_77 : f32 to vector<12x32xf32>
    %166 = arith.addf %165, %164 : vector<12x32xf32>
    %cst_78 = arith.constant 1.000000e+00 : f32
    %167 = vector.broadcast %cst_78 : f32 to vector<12x32xf32>
    %168 = arith.divf %167, %166 : vector<12x32xf32>
    %169 = arith.mulf %168, %158 : vector<12x32xf32>
    %170 = arith.addf %157, %169 : vector<12x32xf32>
    %171 = vector.extract_strided_slice %143 {offsets = [96, 0], sizes = [12, 32], strides = [1, 1]} : vector<108x32xf32> to vector<12x32xf32>
    %cst_79 = arith.constant dense<0.000000e+00> : vector<12x32xf32>
    %172 = tpu.matmul %171, %114, %cst_79 {dimension_numbers = #tpu.dot_dimension_numbers<[1], [0], [0], [1], [0, 0, 1, 1], [], []>} : vector<12x32xf32>, vector<32x32xf32>, vector<12x32xf32> -> vector<12x32xf32>
    %173 = vector.broadcast %115 : vector<1x32xf32> to vector<12x32xf32>
    %174 = arith.addf %172, %173 : vector<12x32xf32>
    %cst_80 = arith.constant 0.000000e+00 : f32
    %175 = vector.broadcast %cst_80 : f32 to vector<12x32xf32>
    %176 = arith.subf %175, %174 : vector<12x32xf32>
    %177 = math.exp %176 : vector<12x32xf32>
    %cst_81 = arith.constant 1.000000e+00 : f32
    %178 = vector.broadcast %cst_81 : f32 to vector<12x32xf32>
    %179 = arith.addf %178, %177 : vector<12x32xf32>
    %cst_82 = arith.constant 1.000000e+00 : f32
    %180 = vector.broadcast %cst_82 : f32 to vector<12x32xf32>
    %181 = arith.divf %180, %179 : vector<12x32xf32>
    %182 = arith.mulf %181, %171 : vector<12x32xf32>
    %183 = arith.addf %170, %182 : vector<12x32xf32>
    %c0_83 = arith.constant 0 : index
    %c0_84 = arith.constant 0 : index
    %c0_85 = arith.constant 0 : index
    %184 = vector.load %arg3[%c0_83, %c0_84, %c0_85] : memref<1x10x12xf32, #tpu.memory_space<vmem>>, vector<1x10x12xf32>
    %185 = vector.shape_cast %184 : vector<1x10x12xf32> to vector<10x12xf32>
    %cst_86 = arith.constant dense<0.000000e+00> : vector<10x32xf32>
    %186 = tpu.matmul %185, %183, %cst_86 {dimension_numbers = #tpu.dot_dimension_numbers<[1], [0], [0], [1], [0, 0, 1, 1], [], []>} : vector<10x12xf32>, vector<12x32xf32>, vector<10x32xf32> -> vector<10x32xf32>
    %c0_87 = arith.constant 0 : index
    %c0_88 = arith.constant 0 : index
    %187 = vector.load %arg9[%c0_87, %c0_88] : memref<96x128xf32, #tpu.memory_space<vmem>>, vector<4x128xf32>
    %c8 = arith.constant 8 : index
    %c0_89 = arith.constant 0 : index
    %188 = vector.load %arg9[%c8, %c0_89] : memref<96x128xf32, #tpu.memory_space<vmem>>, vector<32x128xf32>
    %c40_90 = arith.constant 40 : index
    %c0_91 = arith.constant 0 : index
    %189 = vector.load %arg9[%c40_90, %c0_91] : memref<96x128xf32, #tpu.memory_space<vmem>>, vector<1x128xf32>
    %c0_92 = arith.constant 0 : index
    %c0_93 = arith.constant 0 : index
    %c0_94 = arith.constant 0 : index
    %190 = vector.load %arg4[%c0_92, %c0_93, %c0_94] : memref<1x6x4xf32, #tpu.memory_space<vmem>>, vector<1x6x4xf32>
    %191 = vector.shape_cast %190 : vector<1x6x4xf32> to vector<6x4xf32>
    %cst_95 = arith.constant dense<0.000000e+00> : vector<6x128xf32>
    %192 = tpu.matmul %191, %187, %cst_95 {dimension_numbers = #tpu.dot_dimension_numbers<[1], [0], [0], [1], [0, 0, 1, 1], [], []>} : vector<6x4xf32>, vector<4x128xf32>, vector<6x128xf32> -> vector<6x128xf32>
    %193 = vector.broadcast %189 : vector<1x128xf32> to vector<6x128xf32>
    %194 = arith.addf %192, %193 : vector<6x128xf32>
    %cst_96 = arith.constant 0.000000e+00 : f32
    %195 = vector.broadcast %cst_96 : f32 to vector<1x32xf32>
    %cst_97 = arith.constant 0.000000e+00 : f32
    %196 = vector.broadcast %cst_97 : f32 to vector<1x32xf32>
    %197 = vector.extract_strided_slice %194 {offsets = [0, 0], sizes = [1, 128], strides = [1, 1]} : vector<6x128xf32> to vector<1x128xf32>
    %cst_98 = arith.constant dense<0.000000e+00> : vector<1x128xf32>
    %198 = tpu.matmul %195, %188, %cst_98 {dimension_numbers = #tpu.dot_dimension_numbers<[1], [0], [0], [1], [0, 0, 1, 1], [], []>} : vector<1x32xf32>, vector<32x128xf32>, vector<1x128xf32> -> vector<1x128xf32>
    %199 = arith.addf %197, %198 : vector<1x128xf32>
    %200 = vector.extract_strided_slice %199 {offsets = [0, 0], sizes = [1, 32], strides = [1, 1]} : vector<1x128xf32> to vector<1x32xf32>
    %cst_99 = arith.constant 0.000000e+00 : f32
    %201 = vector.broadcast %cst_99 : f32 to vector<1x32xf32>
    %202 = arith.subf %201, %200 : vector<1x32xf32>
    %203 = math.exp %202 : vector<1x32xf32>
    %cst_100 = arith.constant 1.000000e+00 : f32
    %204 = vector.broadcast %cst_100 : f32 to vector<1x32xf32>
    %205 = arith.addf %204, %203 : vector<1x32xf32>
    %cst_101 = arith.constant 1.000000e+00 : f32
    %206 = vector.broadcast %cst_101 : f32 to vector<1x32xf32>
    %207 = arith.divf %206, %205 : vector<1x32xf32>
    %208 = vector.extract_strided_slice %199 {offsets = [0, 32], sizes = [1, 32], strides = [1, 1]} : vector<1x128xf32> to vector<1x32xf32>
    %cst_102 = arith.constant 0.000000e+00 : f32
    %209 = vector.broadcast %cst_102 : f32 to vector<1x32xf32>
    %210 = arith.subf %209, %208 : vector<1x32xf32>
    %211 = math.exp %210 : vector<1x32xf32>
    %cst_103 = arith.constant 1.000000e+00 : f32
    %212 = vector.broadcast %cst_103 : f32 to vector<1x32xf32>
    %213 = arith.addf %212, %211 : vector<1x32xf32>
    %cst_104 = arith.constant 1.000000e+00 : f32
    %214 = vector.broadcast %cst_104 : f32 to vector<1x32xf32>
    %215 = arith.divf %214, %213 : vector<1x32xf32>
    %216 = vector.extract_strided_slice %199 {offsets = [0, 64], sizes = [1, 32], strides = [1, 1]} : vector<1x128xf32> to vector<1x32xf32>
    %217 = math.tanh %216 : vector<1x32xf32>
    %218 = vector.extract_strided_slice %199 {offsets = [0, 96], sizes = [1, 32], strides = [1, 1]} : vector<1x128xf32> to vector<1x32xf32>
    %cst_105 = arith.constant 0.000000e+00 : f32
    %219 = vector.broadcast %cst_105 : f32 to vector<1x32xf32>
    %220 = arith.subf %219, %218 : vector<1x32xf32>
    %221 = math.exp %220 : vector<1x32xf32>
    %cst_106 = arith.constant 1.000000e+00 : f32
    %222 = vector.broadcast %cst_106 : f32 to vector<1x32xf32>
    %223 = arith.addf %222, %221 : vector<1x32xf32>
    %cst_107 = arith.constant 1.000000e+00 : f32
    %224 = vector.broadcast %cst_107 : f32 to vector<1x32xf32>
    %225 = arith.divf %224, %223 : vector<1x32xf32>
    %226 = arith.mulf %215, %196 : vector<1x32xf32>
    %227 = arith.mulf %207, %217 : vector<1x32xf32>
    %228 = arith.addf %226, %227 : vector<1x32xf32>
    %229 = math.tanh %228 : vector<1x32xf32>
    %230 = arith.mulf %225, %229 : vector<1x32xf32>
    %231 = vector.extract_strided_slice %194 {offsets = [1, 0], sizes = [1, 128], strides = [1, 1]} : vector<6x128xf32> to vector<1x128xf32>
    %cst_108 = arith.constant dense<0.000000e+00> : vector<1x128xf32>
    %232 = tpu.matmul %230, %188, %cst_108 {dimension_numbers = #tpu.dot_dimension_numbers<[1], [0], [0], [1], [0, 0, 1, 1], [], []>} : vector<1x32xf32>, vector<32x128xf32>, vector<1x128xf32> -> vector<1x128xf32>
    %233 = arith.addf %231, %232 : vector<1x128xf32>
    %234 = vector.extract_strided_slice %233 {offsets = [0, 0], sizes = [1, 32], strides = [1, 1]} : vector<1x128xf32> to vector<1x32xf32>
    %cst_109 = arith.constant 0.000000e+00 : f32
    %235 = vector.broadcast %cst_109 : f32 to vector<1x32xf32>
    %236 = arith.subf %235, %234 : vector<1x32xf32>
    %237 = math.exp %236 : vector<1x32xf32>
    %cst_110 = arith.constant 1.000000e+00 : f32
    %238 = vector.broadcast %cst_110 : f32 to vector<1x32xf32>
    %239 = arith.addf %238, %237 : vector<1x32xf32>
    %cst_111 = arith.constant 1.000000e+00 : f32
    %240 = vector.broadcast %cst_111 : f32 to vector<1x32xf32>
    %241 = arith.divf %240, %239 : vector<1x32xf32>
    %242 = vector.extract_strided_slice %233 {offsets = [0, 32], sizes = [1, 32], strides = [1, 1]} : vector<1x128xf32> to vector<1x32xf32>
    %cst_112 = arith.constant 0.000000e+00 : f32
    %243 = vector.broadcast %cst_112 : f32 to vector<1x32xf32>
    %244 = arith.subf %243, %242 : vector<1x32xf32>
    %245 = math.exp %244 : vector<1x32xf32>
    %cst_113 = arith.constant 1.000000e+00 : f32
    %246 = vector.broadcast %cst_113 : f32 to vector<1x32xf32>
    %247 = arith.addf %246, %245 : vector<1x32xf32>
    %cst_114 = arith.constant 1.000000e+00 : f32
    %248 = vector.broadcast %cst_114 : f32 to vector<1x32xf32>
    %249 = arith.divf %248, %247 : vector<1x32xf32>
    %250 = vector.extract_strided_slice %233 {offsets = [0, 64], sizes = [1, 32], strides = [1, 1]} : vector<1x128xf32> to vector<1x32xf32>
    %251 = math.tanh %250 : vector<1x32xf32>
    %252 = vector.extract_strided_slice %233 {offsets = [0, 96], sizes = [1, 32], strides = [1, 1]} : vector<1x128xf32> to vector<1x32xf32>
    %cst_115 = arith.constant 0.000000e+00 : f32
    %253 = vector.broadcast %cst_115 : f32 to vector<1x32xf32>
    %254 = arith.subf %253, %252 : vector<1x32xf32>
    %255 = math.exp %254 : vector<1x32xf32>
    %cst_116 = arith.constant 1.000000e+00 : f32
    %256 = vector.broadcast %cst_116 : f32 to vector<1x32xf32>
    %257 = arith.addf %256, %255 : vector<1x32xf32>
    %cst_117 = arith.constant 1.000000e+00 : f32
    %258 = vector.broadcast %cst_117 : f32 to vector<1x32xf32>
    %259 = arith.divf %258, %257 : vector<1x32xf32>
    %260 = arith.mulf %249, %228 : vector<1x32xf32>
    %261 = arith.mulf %241, %251 : vector<1x32xf32>
    %262 = arith.addf %260, %261 : vector<1x32xf32>
    %263 = math.tanh %262 : vector<1x32xf32>
    %264 = arith.mulf %259, %263 : vector<1x32xf32>
    %265 = vector.extract_strided_slice %194 {offsets = [2, 0], sizes = [1, 128], strides = [1, 1]} : vector<6x128xf32> to vector<1x128xf32>
    %cst_118 = arith.constant dense<0.000000e+00> : vector<1x128xf32>
    %266 = tpu.matmul %264, %188, %cst_118 {dimension_numbers = #tpu.dot_dimension_numbers<[1], [0], [0], [1], [0, 0, 1, 1], [], []>} : vector<1x32xf32>, vector<32x128xf32>, vector<1x128xf32> -> vector<1x128xf32>
    %267 = arith.addf %265, %266 : vector<1x128xf32>
    %268 = vector.extract_strided_slice %267 {offsets = [0, 0], sizes = [1, 32], strides = [1, 1]} : vector<1x128xf32> to vector<1x32xf32>
    %cst_119 = arith.constant 0.000000e+00 : f32
    %269 = vector.broadcast %cst_119 : f32 to vector<1x32xf32>
    %270 = arith.subf %269, %268 : vector<1x32xf32>
    %271 = math.exp %270 : vector<1x32xf32>
    %cst_120 = arith.constant 1.000000e+00 : f32
    %272 = vector.broadcast %cst_120 : f32 to vector<1x32xf32>
    %273 = arith.addf %272, %271 : vector<1x32xf32>
    %cst_121 = arith.constant 1.000000e+00 : f32
    %274 = vector.broadcast %cst_121 : f32 to vector<1x32xf32>
    %275 = arith.divf %274, %273 : vector<1x32xf32>
    %276 = vector.extract_strided_slice %267 {offsets = [0, 32], sizes = [1, 32], strides = [1, 1]} : vector<1x128xf32> to vector<1x32xf32>
    %cst_122 = arith.constant 0.000000e+00 : f32
    %277 = vector.broadcast %cst_122 : f32 to vector<1x32xf32>
    %278 = arith.subf %277, %276 : vector<1x32xf32>
    %279 = math.exp %278 : vector<1x32xf32>
    %cst_123 = arith.constant 1.000000e+00 : f32
    %280 = vector.broadcast %cst_123 : f32 to vector<1x32xf32>
    %281 = arith.addf %280, %279 : vector<1x32xf32>
    %cst_124 = arith.constant 1.000000e+00 : f32
    %282 = vector.broadcast %cst_124 : f32 to vector<1x32xf32>
    %283 = arith.divf %282, %281 : vector<1x32xf32>
    %284 = vector.extract_strided_slice %267 {offsets = [0, 64], sizes = [1, 32], strides = [1, 1]} : vector<1x128xf32> to vector<1x32xf32>
    %285 = math.tanh %284 : vector<1x32xf32>
    %286 = vector.extract_strided_slice %267 {offsets = [0, 96], sizes = [1, 32], strides = [1, 1]} : vector<1x128xf32> to vector<1x32xf32>
    %cst_125 = arith.constant 0.000000e+00 : f32
    %287 = vector.broadcast %cst_125 : f32 to vector<1x32xf32>
    %288 = arith.subf %287, %286 : vector<1x32xf32>
    %289 = math.exp %288 : vector<1x32xf32>
    %cst_126 = arith.constant 1.000000e+00 : f32
    %290 = vector.broadcast %cst_126 : f32 to vector<1x32xf32>
    %291 = arith.addf %290, %289 : vector<1x32xf32>
    %cst_127 = arith.constant 1.000000e+00 : f32
    %292 = vector.broadcast %cst_127 : f32 to vector<1x32xf32>
    %293 = arith.divf %292, %291 : vector<1x32xf32>
    %294 = arith.mulf %283, %262 : vector<1x32xf32>
    %295 = arith.mulf %275, %285 : vector<1x32xf32>
    %296 = arith.addf %294, %295 : vector<1x32xf32>
    %297 = math.tanh %296 : vector<1x32xf32>
    %298 = arith.mulf %293, %297 : vector<1x32xf32>
    %299 = vector.extract_strided_slice %194 {offsets = [3, 0], sizes = [1, 128], strides = [1, 1]} : vector<6x128xf32> to vector<1x128xf32>
    %cst_128 = arith.constant dense<0.000000e+00> : vector<1x128xf32>
    %300 = tpu.matmul %298, %188, %cst_128 {dimension_numbers = #tpu.dot_dimension_numbers<[1], [0], [0], [1], [0, 0, 1, 1], [], []>} : vector<1x32xf32>, vector<32x128xf32>, vector<1x128xf32> -> vector<1x128xf32>
    %301 = arith.addf %299, %300 : vector<1x128xf32>
    %302 = vector.extract_strided_slice %301 {offsets = [0, 0], sizes = [1, 32], strides = [1, 1]} : vector<1x128xf32> to vector<1x32xf32>
    %cst_129 = arith.constant 0.000000e+00 : f32
    %303 = vector.broadcast %cst_129 : f32 to vector<1x32xf32>
    %304 = arith.subf %303, %302 : vector<1x32xf32>
    %305 = math.exp %304 : vector<1x32xf32>
    %cst_130 = arith.constant 1.000000e+00 : f32
    %306 = vector.broadcast %cst_130 : f32 to vector<1x32xf32>
    %307 = arith.addf %306, %305 : vector<1x32xf32>
    %cst_131 = arith.constant 1.000000e+00 : f32
    %308 = vector.broadcast %cst_131 : f32 to vector<1x32xf32>
    %309 = arith.divf %308, %307 : vector<1x32xf32>
    %310 = vector.extract_strided_slice %301 {offsets = [0, 32], sizes = [1, 32], strides = [1, 1]} : vector<1x128xf32> to vector<1x32xf32>
    %cst_132 = arith.constant 0.000000e+00 : f32
    %311 = vector.broadcast %cst_132 : f32 to vector<1x32xf32>
    %312 = arith.subf %311, %310 : vector<1x32xf32>
    %313 = math.exp %312 : vector<1x32xf32>
    %cst_133 = arith.constant 1.000000e+00 : f32
    %314 = vector.broadcast %cst_133 : f32 to vector<1x32xf32>
    %315 = arith.addf %314, %313 : vector<1x32xf32>
    %cst_134 = arith.constant 1.000000e+00 : f32
    %316 = vector.broadcast %cst_134 : f32 to vector<1x32xf32>
    %317 = arith.divf %316, %315 : vector<1x32xf32>
    %318 = vector.extract_strided_slice %301 {offsets = [0, 64], sizes = [1, 32], strides = [1, 1]} : vector<1x128xf32> to vector<1x32xf32>
    %319 = math.tanh %318 : vector<1x32xf32>
    %320 = vector.extract_strided_slice %301 {offsets = [0, 96], sizes = [1, 32], strides = [1, 1]} : vector<1x128xf32> to vector<1x32xf32>
    %cst_135 = arith.constant 0.000000e+00 : f32
    %321 = vector.broadcast %cst_135 : f32 to vector<1x32xf32>
    %322 = arith.subf %321, %320 : vector<1x32xf32>
    %323 = math.exp %322 : vector<1x32xf32>
    %cst_136 = arith.constant 1.000000e+00 : f32
    %324 = vector.broadcast %cst_136 : f32 to vector<1x32xf32>
    %325 = arith.addf %324, %323 : vector<1x32xf32>
    %cst_137 = arith.constant 1.000000e+00 : f32
    %326 = vector.broadcast %cst_137 : f32 to vector<1x32xf32>
    %327 = arith.divf %326, %325 : vector<1x32xf32>
    %328 = arith.mulf %317, %296 : vector<1x32xf32>
    %329 = arith.mulf %309, %319 : vector<1x32xf32>
    %330 = arith.addf %328, %329 : vector<1x32xf32>
    %331 = math.tanh %330 : vector<1x32xf32>
    %332 = arith.mulf %327, %331 : vector<1x32xf32>
    %333 = vector.extract_strided_slice %194 {offsets = [4, 0], sizes = [1, 128], strides = [1, 1]} : vector<6x128xf32> to vector<1x128xf32>
    %cst_138 = arith.constant dense<0.000000e+00> : vector<1x128xf32>
    %334 = tpu.matmul %332, %188, %cst_138 {dimension_numbers = #tpu.dot_dimension_numbers<[1], [0], [0], [1], [0, 0, 1, 1], [], []>} : vector<1x32xf32>, vector<32x128xf32>, vector<1x128xf32> -> vector<1x128xf32>
    %335 = arith.addf %333, %334 : vector<1x128xf32>
    %336 = vector.extract_strided_slice %335 {offsets = [0, 0], sizes = [1, 32], strides = [1, 1]} : vector<1x128xf32> to vector<1x32xf32>
    %cst_139 = arith.constant 0.000000e+00 : f32
    %337 = vector.broadcast %cst_139 : f32 to vector<1x32xf32>
    %338 = arith.subf %337, %336 : vector<1x32xf32>
    %339 = math.exp %338 : vector<1x32xf32>
    %cst_140 = arith.constant 1.000000e+00 : f32
    %340 = vector.broadcast %cst_140 : f32 to vector<1x32xf32>
    %341 = arith.addf %340, %339 : vector<1x32xf32>
    %cst_141 = arith.constant 1.000000e+00 : f32
    %342 = vector.broadcast %cst_141 : f32 to vector<1x32xf32>
    %343 = arith.divf %342, %341 : vector<1x32xf32>
    %344 = vector.extract_strided_slice %335 {offsets = [0, 32], sizes = [1, 32], strides = [1, 1]} : vector<1x128xf32> to vector<1x32xf32>
    %cst_142 = arith.constant 0.000000e+00 : f32
    %345 = vector.broadcast %cst_142 : f32 to vector<1x32xf32>
    %346 = arith.subf %345, %344 : vector<1x32xf32>
    %347 = math.exp %346 : vector<1x32xf32>
    %cst_143 = arith.constant 1.000000e+00 : f32
    %348 = vector.broadcast %cst_143 : f32 to vector<1x32xf32>
    %349 = arith.addf %348, %347 : vector<1x32xf32>
    %cst_144 = arith.constant 1.000000e+00 : f32
    %350 = vector.broadcast %cst_144 : f32 to vector<1x32xf32>
    %351 = arith.divf %350, %349 : vector<1x32xf32>
    %352 = vector.extract_strided_slice %335 {offsets = [0, 64], sizes = [1, 32], strides = [1, 1]} : vector<1x128xf32> to vector<1x32xf32>
    %353 = math.tanh %352 : vector<1x32xf32>
    %354 = vector.extract_strided_slice %335 {offsets = [0, 96], sizes = [1, 32], strides = [1, 1]} : vector<1x128xf32> to vector<1x32xf32>
    %cst_145 = arith.constant 0.000000e+00 : f32
    %355 = vector.broadcast %cst_145 : f32 to vector<1x32xf32>
    %356 = arith.subf %355, %354 : vector<1x32xf32>
    %357 = math.exp %356 : vector<1x32xf32>
    %cst_146 = arith.constant 1.000000e+00 : f32
    %358 = vector.broadcast %cst_146 : f32 to vector<1x32xf32>
    %359 = arith.addf %358, %357 : vector<1x32xf32>
    %cst_147 = arith.constant 1.000000e+00 : f32
    %360 = vector.broadcast %cst_147 : f32 to vector<1x32xf32>
    %361 = arith.divf %360, %359 : vector<1x32xf32>
    %362 = arith.mulf %351, %330 : vector<1x32xf32>
    %363 = arith.mulf %343, %353 : vector<1x32xf32>
    %364 = arith.addf %362, %363 : vector<1x32xf32>
    %365 = math.tanh %364 : vector<1x32xf32>
    %366 = arith.mulf %361, %365 : vector<1x32xf32>
    %367 = vector.extract_strided_slice %194 {offsets = [5, 0], sizes = [1, 128], strides = [1, 1]} : vector<6x128xf32> to vector<1x128xf32>
    %cst_148 = arith.constant dense<0.000000e+00> : vector<1x128xf32>
    %368 = tpu.matmul %366, %188, %cst_148 {dimension_numbers = #tpu.dot_dimension_numbers<[1], [0], [0], [1], [0, 0, 1, 1], [], []>} : vector<1x32xf32>, vector<32x128xf32>, vector<1x128xf32> -> vector<1x128xf32>
    %369 = arith.addf %367, %368 : vector<1x128xf32>
    %370 = vector.extract_strided_slice %369 {offsets = [0, 0], sizes = [1, 32], strides = [1, 1]} : vector<1x128xf32> to vector<1x32xf32>
    %cst_149 = arith.constant 0.000000e+00 : f32
    %371 = vector.broadcast %cst_149 : f32 to vector<1x32xf32>
    %372 = arith.subf %371, %370 : vector<1x32xf32>
    %373 = math.exp %372 : vector<1x32xf32>
    %cst_150 = arith.constant 1.000000e+00 : f32
    %374 = vector.broadcast %cst_150 : f32 to vector<1x32xf32>
    %375 = arith.addf %374, %373 : vector<1x32xf32>
    %cst_151 = arith.constant 1.000000e+00 : f32
    %376 = vector.broadcast %cst_151 : f32 to vector<1x32xf32>
    %377 = arith.divf %376, %375 : vector<1x32xf32>
    %378 = vector.extract_strided_slice %369 {offsets = [0, 32], sizes = [1, 32], strides = [1, 1]} : vector<1x128xf32> to vector<1x32xf32>
    %cst_152 = arith.constant 0.000000e+00 : f32
    %379 = vector.broadcast %cst_152 : f32 to vector<1x32xf32>
    %380 = arith.subf %379, %378 : vector<1x32xf32>
    %381 = math.exp %380 : vector<1x32xf32>
    %cst_153 = arith.constant 1.000000e+00 : f32
    %382 = vector.broadcast %cst_153 : f32 to vector<1x32xf32>
    %383 = arith.addf %382, %381 : vector<1x32xf32>
    %cst_154 = arith.constant 1.000000e+00 : f32
    %384 = vector.broadcast %cst_154 : f32 to vector<1x32xf32>
    %385 = arith.divf %384, %383 : vector<1x32xf32>
    %386 = vector.extract_strided_slice %369 {offsets = [0, 64], sizes = [1, 32], strides = [1, 1]} : vector<1x128xf32> to vector<1x32xf32>
    %387 = math.tanh %386 : vector<1x32xf32>
    %388 = vector.extract_strided_slice %369 {offsets = [0, 96], sizes = [1, 32], strides = [1, 1]} : vector<1x128xf32> to vector<1x32xf32>
    %cst_155 = arith.constant 0.000000e+00 : f32
    %389 = vector.broadcast %cst_155 : f32 to vector<1x32xf32>
    %390 = arith.subf %389, %388 : vector<1x32xf32>
    %391 = math.exp %390 : vector<1x32xf32>
    %cst_156 = arith.constant 1.000000e+00 : f32
    %392 = vector.broadcast %cst_156 : f32 to vector<1x32xf32>
    %393 = arith.addf %392, %391 : vector<1x32xf32>
    %cst_157 = arith.constant 1.000000e+00 : f32
    %394 = vector.broadcast %cst_157 : f32 to vector<1x32xf32>
    %395 = arith.divf %394, %393 : vector<1x32xf32>
    %396 = arith.mulf %385, %364 : vector<1x32xf32>
    %397 = arith.mulf %377, %387 : vector<1x32xf32>
    %398 = arith.addf %396, %397 : vector<1x32xf32>
    %399 = math.tanh %398 : vector<1x32xf32>
    %400 = arith.mulf %395, %399 : vector<1x32xf32>
    %c120 = arith.constant 120 : index
    %c0_158 = arith.constant 0 : index
    %401 = vector.load %arg12[%c120, %c0_158] : memref<376x32xf32, #tpu.memory_space<vmem>>, vector<18x32xf32>
    %c144 = arith.constant 144 : index
    %c0_159 = arith.constant 0 : index
    %402 = vector.load %arg12[%c144, %c0_159] : memref<376x32xf32, #tpu.memory_space<vmem>>, vector<1x32xf32>
    %c0_160 = arith.constant 0 : index
    %c0_161 = arith.constant 0 : index
    %c0_162 = arith.constant 0 : index
    %403 = vector.load %arg5[%c0_160, %c0_161, %c0_162] : memref<1x1x18xf32, #tpu.memory_space<vmem>>, vector<1x1x18xf32>
    %404 = vector.shape_cast %403 : vector<1x1x18xf32> to vector<1x18xf32>
    %cst_163 = arith.constant dense<0.000000e+00> : vector<1x32xf32>
    %405 = tpu.matmul %404, %401, %cst_163 {dimension_numbers = #tpu.dot_dimension_numbers<[1], [0], [0], [1], [0, 0, 1, 1], [], []>} : vector<1x18xf32>, vector<18x32xf32>, vector<1x32xf32> -> vector<1x32xf32>
    %406 = arith.addf %405, %402 : vector<1x32xf32>
    %cst_164 = arith.constant 0.000000e+00 : f32
    %407 = vector.broadcast %cst_164 : f32 to vector<1x32xf32>
    %408 = arith.maximumf %406, %407 : vector<1x32xf32>
    %c0_165 = arith.constant 0 : index
    %c0_166 = arith.constant 0 : index
    %409 = vector.load %arg11[%c0_165, %c0_166] : memref<176x64xf32, #tpu.memory_space<vmem>>, vector<32x64xf32>
    %c32_167 = arith.constant 32 : index
    %c0_168 = arith.constant 0 : index
    %410 = vector.load %arg11[%c32_167, %c0_168] : memref<176x64xf32, #tpu.memory_space<vmem>>, vector<32x64xf32>
    %c64 = arith.constant 64 : index
    %c0_169 = arith.constant 0 : index
    %411 = vector.load %arg11[%c64, %c0_169] : memref<176x64xf32, #tpu.memory_space<vmem>>, vector<1x64xf32>
    %cst_170 = arith.constant dense<0.000000e+00> : vector<1x64xf32>
    %412 = tpu.matmul %400, %409, %cst_170 {dimension_numbers = #tpu.dot_dimension_numbers<[1], [0], [0], [1], [0, 0, 1, 1], [], []>} : vector<1x32xf32>, vector<32x64xf32>, vector<1x64xf32> -> vector<1x64xf32>
    %cst_171 = arith.constant dense<0.000000e+00> : vector<1x64xf32>
    %413 = tpu.matmul %408, %410, %cst_171 {dimension_numbers = #tpu.dot_dimension_numbers<[1], [0], [0], [1], [0, 0, 1, 1], [], []>} : vector<1x32xf32>, vector<32x64xf32>, vector<1x64xf32> -> vector<1x64xf32>
    %414 = arith.addf %412, %413 : vector<1x64xf32>
    %415 = arith.addf %414, %411 : vector<1x64xf32>
    %cst_172 = arith.constant 0.000000e+00 : f32
    %416 = vector.broadcast %cst_172 : f32 to vector<1x64xf32>
    %417 = arith.maximumf %415, %416 : vector<1x64xf32>
    %c48 = arith.constant 48 : index
    %c0_173 = arith.constant 0 : index
    %418 = vector.load %arg9[%c48, %c0_173] : memref<96x128xf32, #tpu.memory_space<vmem>>, vector<5x128xf32>
    %c56 = arith.constant 56 : index
    %c0_174 = arith.constant 0 : index
    %419 = vector.load %arg9[%c56, %c0_174] : memref<96x128xf32, #tpu.memory_space<vmem>>, vector<32x128xf32>
    %c88 = arith.constant 88 : index
    %c0_175 = arith.constant 0 : index
    %420 = vector.load %arg9[%c88, %c0_175] : memref<96x128xf32, #tpu.memory_space<vmem>>, vector<1x128xf32>
    %c0_176 = arith.constant 0 : index
    %c0_177 = arith.constant 0 : index
    %c0_178 = arith.constant 0 : index
    %c0_179 = arith.constant 0 : index
    %421 = vector.load %arg6[%c0_176, %c0_177, %c0_178, %c0_179] : memref<1x6x10x5xf32, #tpu.memory_space<vmem>>, vector<1x6x10x5xf32>
    %422 = vector.shape_cast %421 : vector<1x6x10x5xf32> to vector<6x10x5xf32>
    %423 = vector.shape_cast %422 : vector<6x10x5xf32> to vector<60x5xf32>
    %cst_180 = arith.constant dense<0.000000e+00> : vector<60x128xf32>
    %424 = tpu.matmul %423, %418, %cst_180 {dimension_numbers = #tpu.dot_dimension_numbers<[1], [0], [0], [1], [0, 0, 1, 1], [], []>} : vector<60x5xf32>, vector<5x128xf32>, vector<60x128xf32> -> vector<60x128xf32>
    %425 = vector.broadcast %420 : vector<1x128xf32> to vector<60x128xf32>
    %426 = arith.addf %424, %425 : vector<60x128xf32>
    %427 = vector.shape_cast %426 : vector<60x128xf32> to vector<6x10x128xf32>
    %cst_181 = arith.constant 0.000000e+00 : f32
    %428 = vector.broadcast %cst_181 : f32 to vector<10x32xf32>
    %cst_182 = arith.constant 0.000000e+00 : f32
    %429 = vector.broadcast %cst_182 : f32 to vector<10x32xf32>
    %430 = vector.extract_strided_slice %427 {offsets = [0, 0, 0], sizes = [1, 10, 128], strides = [1, 1, 1]} : vector<6x10x128xf32> to vector<1x10x128xf32>
    %431 = vector.shape_cast %430 : vector<1x10x128xf32> to vector<10x128xf32>
    %cst_183 = arith.constant dense<0.000000e+00> : vector<10x128xf32>
    %432 = tpu.matmul %428, %419, %cst_183 {dimension_numbers = #tpu.dot_dimension_numbers<[1], [0], [0], [1], [0, 0, 1, 1], [], []>} : vector<10x32xf32>, vector<32x128xf32>, vector<10x128xf32> -> vector<10x128xf32>
    %433 = arith.addf %431, %432 : vector<10x128xf32>
    %434 = vector.extract_strided_slice %433 {offsets = [0, 0], sizes = [10, 32], strides = [1, 1]} : vector<10x128xf32> to vector<10x32xf32>
    %cst_184 = arith.constant 0.000000e+00 : f32
    %435 = vector.broadcast %cst_184 : f32 to vector<10x32xf32>
    %436 = arith.subf %435, %434 : vector<10x32xf32>
    %437 = math.exp %436 : vector<10x32xf32>
    %cst_185 = arith.constant 1.000000e+00 : f32
    %438 = vector.broadcast %cst_185 : f32 to vector<10x32xf32>
    %439 = arith.addf %438, %437 : vector<10x32xf32>
    %cst_186 = arith.constant 1.000000e+00 : f32
    %440 = vector.broadcast %cst_186 : f32 to vector<10x32xf32>
    %441 = arith.divf %440, %439 : vector<10x32xf32>
    %442 = vector.extract_strided_slice %433 {offsets = [0, 32], sizes = [10, 32], strides = [1, 1]} : vector<10x128xf32> to vector<10x32xf32>
    %cst_187 = arith.constant 0.000000e+00 : f32
    %443 = vector.broadcast %cst_187 : f32 to vector<10x32xf32>
    %444 = arith.subf %443, %442 : vector<10x32xf32>
    %445 = math.exp %444 : vector<10x32xf32>
    %cst_188 = arith.constant 1.000000e+00 : f32
    %446 = vector.broadcast %cst_188 : f32 to vector<10x32xf32>
    %447 = arith.addf %446, %445 : vector<10x32xf32>
    %cst_189 = arith.constant 1.000000e+00 : f32
    %448 = vector.broadcast %cst_189 : f32 to vector<10x32xf32>
    %449 = arith.divf %448, %447 : vector<10x32xf32>
    %450 = vector.extract_strided_slice %433 {offsets = [0, 64], sizes = [10, 32], strides = [1, 1]} : vector<10x128xf32> to vector<10x32xf32>
    %451 = math.tanh %450 : vector<10x32xf32>
    %452 = vector.extract_strided_slice %433 {offsets = [0, 96], sizes = [10, 32], strides = [1, 1]} : vector<10x128xf32> to vector<10x32xf32>
    %cst_190 = arith.constant 0.000000e+00 : f32
    %453 = vector.broadcast %cst_190 : f32 to vector<10x32xf32>
    %454 = arith.subf %453, %452 : vector<10x32xf32>
    %455 = math.exp %454 : vector<10x32xf32>
    %cst_191 = arith.constant 1.000000e+00 : f32
    %456 = vector.broadcast %cst_191 : f32 to vector<10x32xf32>
    %457 = arith.addf %456, %455 : vector<10x32xf32>
    %cst_192 = arith.constant 1.000000e+00 : f32
    %458 = vector.broadcast %cst_192 : f32 to vector<10x32xf32>
    %459 = arith.divf %458, %457 : vector<10x32xf32>
    %460 = arith.mulf %449, %429 : vector<10x32xf32>
    %461 = arith.mulf %441, %451 : vector<10x32xf32>
    %462 = arith.addf %460, %461 : vector<10x32xf32>
    %463 = math.tanh %462 : vector<10x32xf32>
    %464 = arith.mulf %459, %463 : vector<10x32xf32>
    %465 = vector.extract_strided_slice %427 {offsets = [1, 0, 0], sizes = [1, 10, 128], strides = [1, 1, 1]} : vector<6x10x128xf32> to vector<1x10x128xf32>
    %466 = vector.shape_cast %465 : vector<1x10x128xf32> to vector<10x128xf32>
    %cst_193 = arith.constant dense<0.000000e+00> : vector<10x128xf32>
    %467 = tpu.matmul %464, %419, %cst_193 {dimension_numbers = #tpu.dot_dimension_numbers<[1], [0], [0], [1], [0, 0, 1, 1], [], []>} : vector<10x32xf32>, vector<32x128xf32>, vector<10x128xf32> -> vector<10x128xf32>
    %468 = arith.addf %466, %467 : vector<10x128xf32>
    %469 = vector.extract_strided_slice %468 {offsets = [0, 0], sizes = [10, 32], strides = [1, 1]} : vector<10x128xf32> to vector<10x32xf32>
    %cst_194 = arith.constant 0.000000e+00 : f32
    %470 = vector.broadcast %cst_194 : f32 to vector<10x32xf32>
    %471 = arith.subf %470, %469 : vector<10x32xf32>
    %472 = math.exp %471 : vector<10x32xf32>
    %cst_195 = arith.constant 1.000000e+00 : f32
    %473 = vector.broadcast %cst_195 : f32 to vector<10x32xf32>
    %474 = arith.addf %473, %472 : vector<10x32xf32>
    %cst_196 = arith.constant 1.000000e+00 : f32
    %475 = vector.broadcast %cst_196 : f32 to vector<10x32xf32>
    %476 = arith.divf %475, %474 : vector<10x32xf32>
    %477 = vector.extract_strided_slice %468 {offsets = [0, 32], sizes = [10, 32], strides = [1, 1]} : vector<10x128xf32> to vector<10x32xf32>
    %cst_197 = arith.constant 0.000000e+00 : f32
    %478 = vector.broadcast %cst_197 : f32 to vector<10x32xf32>
    %479 = arith.subf %478, %477 : vector<10x32xf32>
    %480 = math.exp %479 : vector<10x32xf32>
    %cst_198 = arith.constant 1.000000e+00 : f32
    %481 = vector.broadcast %cst_198 : f32 to vector<10x32xf32>
    %482 = arith.addf %481, %480 : vector<10x32xf32>
    %cst_199 = arith.constant 1.000000e+00 : f32
    %483 = vector.broadcast %cst_199 : f32 to vector<10x32xf32>
    %484 = arith.divf %483, %482 : vector<10x32xf32>
    %485 = vector.extract_strided_slice %468 {offsets = [0, 64], sizes = [10, 32], strides = [1, 1]} : vector<10x128xf32> to vector<10x32xf32>
    %486 = math.tanh %485 : vector<10x32xf32>
    %487 = vector.extract_strided_slice %468 {offsets = [0, 96], sizes = [10, 32], strides = [1, 1]} : vector<10x128xf32> to vector<10x32xf32>
    %cst_200 = arith.constant 0.000000e+00 : f32
    %488 = vector.broadcast %cst_200 : f32 to vector<10x32xf32>
    %489 = arith.subf %488, %487 : vector<10x32xf32>
    %490 = math.exp %489 : vector<10x32xf32>
    %cst_201 = arith.constant 1.000000e+00 : f32
    %491 = vector.broadcast %cst_201 : f32 to vector<10x32xf32>
    %492 = arith.addf %491, %490 : vector<10x32xf32>
    %cst_202 = arith.constant 1.000000e+00 : f32
    %493 = vector.broadcast %cst_202 : f32 to vector<10x32xf32>
    %494 = arith.divf %493, %492 : vector<10x32xf32>
    %495 = arith.mulf %484, %462 : vector<10x32xf32>
    %496 = arith.mulf %476, %486 : vector<10x32xf32>
    %497 = arith.addf %495, %496 : vector<10x32xf32>
    %498 = math.tanh %497 : vector<10x32xf32>
    %499 = arith.mulf %494, %498 : vector<10x32xf32>
    %500 = vector.extract_strided_slice %427 {offsets = [2, 0, 0], sizes = [1, 10, 128], strides = [1, 1, 1]} : vector<6x10x128xf32> to vector<1x10x128xf32>
    %501 = vector.shape_cast %500 : vector<1x10x128xf32> to vector<10x128xf32>
    %cst_203 = arith.constant dense<0.000000e+00> : vector<10x128xf32>
    %502 = tpu.matmul %499, %419, %cst_203 {dimension_numbers = #tpu.dot_dimension_numbers<[1], [0], [0], [1], [0, 0, 1, 1], [], []>} : vector<10x32xf32>, vector<32x128xf32>, vector<10x128xf32> -> vector<10x128xf32>
    %503 = arith.addf %501, %502 : vector<10x128xf32>
    %504 = vector.extract_strided_slice %503 {offsets = [0, 0], sizes = [10, 32], strides = [1, 1]} : vector<10x128xf32> to vector<10x32xf32>
    %cst_204 = arith.constant 0.000000e+00 : f32
    %505 = vector.broadcast %cst_204 : f32 to vector<10x32xf32>
    %506 = arith.subf %505, %504 : vector<10x32xf32>
    %507 = math.exp %506 : vector<10x32xf32>
    %cst_205 = arith.constant 1.000000e+00 : f32
    %508 = vector.broadcast %cst_205 : f32 to vector<10x32xf32>
    %509 = arith.addf %508, %507 : vector<10x32xf32>
    %cst_206 = arith.constant 1.000000e+00 : f32
    %510 = vector.broadcast %cst_206 : f32 to vector<10x32xf32>
    %511 = arith.divf %510, %509 : vector<10x32xf32>
    %512 = vector.extract_strided_slice %503 {offsets = [0, 32], sizes = [10, 32], strides = [1, 1]} : vector<10x128xf32> to vector<10x32xf32>
    %cst_207 = arith.constant 0.000000e+00 : f32
    %513 = vector.broadcast %cst_207 : f32 to vector<10x32xf32>
    %514 = arith.subf %513, %512 : vector<10x32xf32>
    %515 = math.exp %514 : vector<10x32xf32>
    %cst_208 = arith.constant 1.000000e+00 : f32
    %516 = vector.broadcast %cst_208 : f32 to vector<10x32xf32>
    %517 = arith.addf %516, %515 : vector<10x32xf32>
    %cst_209 = arith.constant 1.000000e+00 : f32
    %518 = vector.broadcast %cst_209 : f32 to vector<10x32xf32>
    %519 = arith.divf %518, %517 : vector<10x32xf32>
    %520 = vector.extract_strided_slice %503 {offsets = [0, 64], sizes = [10, 32], strides = [1, 1]} : vector<10x128xf32> to vector<10x32xf32>
    %521 = math.tanh %520 : vector<10x32xf32>
    %522 = vector.extract_strided_slice %503 {offsets = [0, 96], sizes = [10, 32], strides = [1, 1]} : vector<10x128xf32> to vector<10x32xf32>
    %cst_210 = arith.constant 0.000000e+00 : f32
    %523 = vector.broadcast %cst_210 : f32 to vector<10x32xf32>
    %524 = arith.subf %523, %522 : vector<10x32xf32>
    %525 = math.exp %524 : vector<10x32xf32>
    %cst_211 = arith.constant 1.000000e+00 : f32
    %526 = vector.broadcast %cst_211 : f32 to vector<10x32xf32>
    %527 = arith.addf %526, %525 : vector<10x32xf32>
    %cst_212 = arith.constant 1.000000e+00 : f32
    %528 = vector.broadcast %cst_212 : f32 to vector<10x32xf32>
    %529 = arith.divf %528, %527 : vector<10x32xf32>
    %530 = arith.mulf %519, %497 : vector<10x32xf32>
    %531 = arith.mulf %511, %521 : vector<10x32xf32>
    %532 = arith.addf %530, %531 : vector<10x32xf32>
    %533 = math.tanh %532 : vector<10x32xf32>
    %534 = arith.mulf %529, %533 : vector<10x32xf32>
    %535 = vector.extract_strided_slice %427 {offsets = [3, 0, 0], sizes = [1, 10, 128], strides = [1, 1, 1]} : vector<6x10x128xf32> to vector<1x10x128xf32>
    %536 = vector.shape_cast %535 : vector<1x10x128xf32> to vector<10x128xf32>
    %cst_213 = arith.constant dense<0.000000e+00> : vector<10x128xf32>
    %537 = tpu.matmul %534, %419, %cst_213 {dimension_numbers = #tpu.dot_dimension_numbers<[1], [0], [0], [1], [0, 0, 1, 1], [], []>} : vector<10x32xf32>, vector<32x128xf32>, vector<10x128xf32> -> vector<10x128xf32>
    %538 = arith.addf %536, %537 : vector<10x128xf32>
    %539 = vector.extract_strided_slice %538 {offsets = [0, 0], sizes = [10, 32], strides = [1, 1]} : vector<10x128xf32> to vector<10x32xf32>
    %cst_214 = arith.constant 0.000000e+00 : f32
    %540 = vector.broadcast %cst_214 : f32 to vector<10x32xf32>
    %541 = arith.subf %540, %539 : vector<10x32xf32>
    %542 = math.exp %541 : vector<10x32xf32>
    %cst_215 = arith.constant 1.000000e+00 : f32
    %543 = vector.broadcast %cst_215 : f32 to vector<10x32xf32>
    %544 = arith.addf %543, %542 : vector<10x32xf32>
    %cst_216 = arith.constant 1.000000e+00 : f32
    %545 = vector.broadcast %cst_216 : f32 to vector<10x32xf32>
    %546 = arith.divf %545, %544 : vector<10x32xf32>
    %547 = vector.extract_strided_slice %538 {offsets = [0, 32], sizes = [10, 32], strides = [1, 1]} : vector<10x128xf32> to vector<10x32xf32>
    %cst_217 = arith.constant 0.000000e+00 : f32
    %548 = vector.broadcast %cst_217 : f32 to vector<10x32xf32>
    %549 = arith.subf %548, %547 : vector<10x32xf32>
    %550 = math.exp %549 : vector<10x32xf32>
    %cst_218 = arith.constant 1.000000e+00 : f32
    %551 = vector.broadcast %cst_218 : f32 to vector<10x32xf32>
    %552 = arith.addf %551, %550 : vector<10x32xf32>
    %cst_219 = arith.constant 1.000000e+00 : f32
    %553 = vector.broadcast %cst_219 : f32 to vector<10x32xf32>
    %554 = arith.divf %553, %552 : vector<10x32xf32>
    %555 = vector.extract_strided_slice %538 {offsets = [0, 64], sizes = [10, 32], strides = [1, 1]} : vector<10x128xf32> to vector<10x32xf32>
    %556 = math.tanh %555 : vector<10x32xf32>
    %557 = vector.extract_strided_slice %538 {offsets = [0, 96], sizes = [10, 32], strides = [1, 1]} : vector<10x128xf32> to vector<10x32xf32>
    %cst_220 = arith.constant 0.000000e+00 : f32
    %558 = vector.broadcast %cst_220 : f32 to vector<10x32xf32>
    %559 = arith.subf %558, %557 : vector<10x32xf32>
    %560 = math.exp %559 : vector<10x32xf32>
    %cst_221 = arith.constant 1.000000e+00 : f32
    %561 = vector.broadcast %cst_221 : f32 to vector<10x32xf32>
    %562 = arith.addf %561, %560 : vector<10x32xf32>
    %cst_222 = arith.constant 1.000000e+00 : f32
    %563 = vector.broadcast %cst_222 : f32 to vector<10x32xf32>
    %564 = arith.divf %563, %562 : vector<10x32xf32>
    %565 = arith.mulf %554, %532 : vector<10x32xf32>
    %566 = arith.mulf %546, %556 : vector<10x32xf32>
    %567 = arith.addf %565, %566 : vector<10x32xf32>
    %568 = math.tanh %567 : vector<10x32xf32>
    %569 = arith.mulf %564, %568 : vector<10x32xf32>
    %570 = vector.extract_strided_slice %427 {offsets = [4, 0, 0], sizes = [1, 10, 128], strides = [1, 1, 1]} : vector<6x10x128xf32> to vector<1x10x128xf32>
    %571 = vector.shape_cast %570 : vector<1x10x128xf32> to vector<10x128xf32>
    %cst_223 = arith.constant dense<0.000000e+00> : vector<10x128xf32>
    %572 = tpu.matmul %569, %419, %cst_223 {dimension_numbers = #tpu.dot_dimension_numbers<[1], [0], [0], [1], [0, 0, 1, 1], [], []>} : vector<10x32xf32>, vector<32x128xf32>, vector<10x128xf32> -> vector<10x128xf32>
    %573 = arith.addf %571, %572 : vector<10x128xf32>
    %574 = vector.extract_strided_slice %573 {offsets = [0, 0], sizes = [10, 32], strides = [1, 1]} : vector<10x128xf32> to vector<10x32xf32>
    %cst_224 = arith.constant 0.000000e+00 : f32
    %575 = vector.broadcast %cst_224 : f32 to vector<10x32xf32>
    %576 = arith.subf %575, %574 : vector<10x32xf32>
    %577 = math.exp %576 : vector<10x32xf32>
    %cst_225 = arith.constant 1.000000e+00 : f32
    %578 = vector.broadcast %cst_225 : f32 to vector<10x32xf32>
    %579 = arith.addf %578, %577 : vector<10x32xf32>
    %cst_226 = arith.constant 1.000000e+00 : f32
    %580 = vector.broadcast %cst_226 : f32 to vector<10x32xf32>
    %581 = arith.divf %580, %579 : vector<10x32xf32>
    %582 = vector.extract_strided_slice %573 {offsets = [0, 32], sizes = [10, 32], strides = [1, 1]} : vector<10x128xf32> to vector<10x32xf32>
    %cst_227 = arith.constant 0.000000e+00 : f32
    %583 = vector.broadcast %cst_227 : f32 to vector<10x32xf32>
    %584 = arith.subf %583, %582 : vector<10x32xf32>
    %585 = math.exp %584 : vector<10x32xf32>
    %cst_228 = arith.constant 1.000000e+00 : f32
    %586 = vector.broadcast %cst_228 : f32 to vector<10x32xf32>
    %587 = arith.addf %586, %585 : vector<10x32xf32>
    %cst_229 = arith.constant 1.000000e+00 : f32
    %588 = vector.broadcast %cst_229 : f32 to vector<10x32xf32>
    %589 = arith.divf %588, %587 : vector<10x32xf32>
    %590 = vector.extract_strided_slice %573 {offsets = [0, 64], sizes = [10, 32], strides = [1, 1]} : vector<10x128xf32> to vector<10x32xf32>
    %591 = math.tanh %590 : vector<10x32xf32>
    %592 = vector.extract_strided_slice %573 {offsets = [0, 96], sizes = [10, 32], strides = [1, 1]} : vector<10x128xf32> to vector<10x32xf32>
    %cst_230 = arith.constant 0.000000e+00 : f32
    %593 = vector.broadcast %cst_230 : f32 to vector<10x32xf32>
    %594 = arith.subf %593, %592 : vector<10x32xf32>
    %595 = math.exp %594 : vector<10x32xf32>
    %cst_231 = arith.constant 1.000000e+00 : f32
    %596 = vector.broadcast %cst_231 : f32 to vector<10x32xf32>
    %597 = arith.addf %596, %595 : vector<10x32xf32>
    %cst_232 = arith.constant 1.000000e+00 : f32
    %598 = vector.broadcast %cst_232 : f32 to vector<10x32xf32>
    %599 = arith.divf %598, %597 : vector<10x32xf32>
    %600 = arith.mulf %589, %567 : vector<10x32xf32>
    %601 = arith.mulf %581, %591 : vector<10x32xf32>
    %602 = arith.addf %600, %601 : vector<10x32xf32>
    %603 = math.tanh %602 : vector<10x32xf32>
    %604 = arith.mulf %599, %603 : vector<10x32xf32>
    %605 = vector.extract_strided_slice %427 {offsets = [5, 0, 0], sizes = [1, 10, 128], strides = [1, 1, 1]} : vector<6x10x128xf32> to vector<1x10x128xf32>
    %606 = vector.shape_cast %605 : vector<1x10x128xf32> to vector<10x128xf32>
    %cst_233 = arith.constant dense<0.000000e+00> : vector<10x128xf32>
    %607 = tpu.matmul %604, %419, %cst_233 {dimension_numbers = #tpu.dot_dimension_numbers<[1], [0], [0], [1], [0, 0, 1, 1], [], []>} : vector<10x32xf32>, vector<32x128xf32>, vector<10x128xf32> -> vector<10x128xf32>
    %608 = arith.addf %606, %607 : vector<10x128xf32>
    %609 = vector.extract_strided_slice %608 {offsets = [0, 0], sizes = [10, 32], strides = [1, 1]} : vector<10x128xf32> to vector<10x32xf32>
    %cst_234 = arith.constant 0.000000e+00 : f32
    %610 = vector.broadcast %cst_234 : f32 to vector<10x32xf32>
    %611 = arith.subf %610, %609 : vector<10x32xf32>
    %612 = math.exp %611 : vector<10x32xf32>
    %cst_235 = arith.constant 1.000000e+00 : f32
    %613 = vector.broadcast %cst_235 : f32 to vector<10x32xf32>
    %614 = arith.addf %613, %612 : vector<10x32xf32>
    %cst_236 = arith.constant 1.000000e+00 : f32
    %615 = vector.broadcast %cst_236 : f32 to vector<10x32xf32>
    %616 = arith.divf %615, %614 : vector<10x32xf32>
    %617 = vector.extract_strided_slice %608 {offsets = [0, 32], sizes = [10, 32], strides = [1, 1]} : vector<10x128xf32> to vector<10x32xf32>
    %cst_237 = arith.constant 0.000000e+00 : f32
    %618 = vector.broadcast %cst_237 : f32 to vector<10x32xf32>
    %619 = arith.subf %618, %617 : vector<10x32xf32>
    %620 = math.exp %619 : vector<10x32xf32>
    %cst_238 = arith.constant 1.000000e+00 : f32
    %621 = vector.broadcast %cst_238 : f32 to vector<10x32xf32>
    %622 = arith.addf %621, %620 : vector<10x32xf32>
    %cst_239 = arith.constant 1.000000e+00 : f32
    %623 = vector.broadcast %cst_239 : f32 to vector<10x32xf32>
    %624 = arith.divf %623, %622 : vector<10x32xf32>
    %625 = vector.extract_strided_slice %608 {offsets = [0, 64], sizes = [10, 32], strides = [1, 1]} : vector<10x128xf32> to vector<10x32xf32>
    %626 = math.tanh %625 : vector<10x32xf32>
    %627 = vector.extract_strided_slice %608 {offsets = [0, 96], sizes = [10, 32], strides = [1, 1]} : vector<10x128xf32> to vector<10x32xf32>
    %cst_240 = arith.constant 0.000000e+00 : f32
    %628 = vector.broadcast %cst_240 : f32 to vector<10x32xf32>
    %629 = arith.subf %628, %627 : vector<10x32xf32>
    %630 = math.exp %629 : vector<10x32xf32>
    %cst_241 = arith.constant 1.000000e+00 : f32
    %631 = vector.broadcast %cst_241 : f32 to vector<10x32xf32>
    %632 = arith.addf %631, %630 : vector<10x32xf32>
    %cst_242 = arith.constant 1.000000e+00 : f32
    %633 = vector.broadcast %cst_242 : f32 to vector<10x32xf32>
    %634 = arith.divf %633, %632 : vector<10x32xf32>
    %635 = arith.mulf %624, %602 : vector<10x32xf32>
    %636 = arith.mulf %616, %626 : vector<10x32xf32>
    %637 = arith.addf %635, %636 : vector<10x32xf32>
    %638 = math.tanh %637 : vector<10x32xf32>
    %639 = arith.mulf %634, %638 : vector<10x32xf32>
    %c152 = arith.constant 152 : index
    %c0_243 = arith.constant 0 : index
    %640 = vector.load %arg12[%c152, %c0_243] : memref<376x32xf32, #tpu.memory_space<vmem>>, vector<19x32xf32>
    %c176 = arith.constant 176 : index
    %c0_244 = arith.constant 0 : index
    %641 = vector.load %arg12[%c176, %c0_244] : memref<376x32xf32, #tpu.memory_space<vmem>>, vector<1x32xf32>
    %c0_245 = arith.constant 0 : index
    %c0_246 = arith.constant 0 : index
    %c0_247 = arith.constant 0 : index
    %642 = vector.load %arg7[%c0_245, %c0_246, %c0_247] : memref<1x10x19xf32, #tpu.memory_space<vmem>>, vector<1x10x19xf32>
    %643 = vector.shape_cast %642 : vector<1x10x19xf32> to vector<10x19xf32>
    %cst_248 = arith.constant dense<0.000000e+00> : vector<10x32xf32>
    %644 = tpu.matmul %643, %640, %cst_248 {dimension_numbers = #tpu.dot_dimension_numbers<[1], [0], [0], [1], [0, 0, 1, 1], [], []>} : vector<10x19xf32>, vector<19x32xf32>, vector<10x32xf32> -> vector<10x32xf32>
    %645 = vector.broadcast %641 : vector<1x32xf32> to vector<10x32xf32>
    %646 = arith.addf %644, %645 : vector<10x32xf32>
    %cst_249 = arith.constant 0.000000e+00 : f32
    %647 = vector.broadcast %cst_249 : f32 to vector<10x32xf32>
    %648 = arith.maximumf %646, %647 : vector<10x32xf32>
    %c72_250 = arith.constant 72 : index
    %c0_251 = arith.constant 0 : index
    %649 = vector.load %arg11[%c72_250, %c0_251] : memref<176x64xf32, #tpu.memory_space<vmem>>, vector<32x64xf32>
    %c104 = arith.constant 104 : index
    %c0_252 = arith.constant 0 : index
    %650 = vector.load %arg11[%c104, %c0_252] : memref<176x64xf32, #tpu.memory_space<vmem>>, vector<32x64xf32>
    %c136 = arith.constant 136 : index
    %c0_253 = arith.constant 0 : index
    %651 = vector.load %arg11[%c136, %c0_253] : memref<176x64xf32, #tpu.memory_space<vmem>>, vector<32x64xf32>
    %c168 = arith.constant 168 : index
    %c0_254 = arith.constant 0 : index
    %652 = vector.load %arg11[%c168, %c0_254] : memref<176x64xf32, #tpu.memory_space<vmem>>, vector<1x64xf32>
    %cst_255 = arith.constant dense<0.000000e+00> : vector<10x64xf32>
    %653 = tpu.matmul %639, %649, %cst_255 {dimension_numbers = #tpu.dot_dimension_numbers<[1], [0], [0], [1], [0, 0, 1, 1], [], []>} : vector<10x32xf32>, vector<32x64xf32>, vector<10x64xf32> -> vector<10x64xf32>
    %cst_256 = arith.constant dense<0.000000e+00> : vector<10x64xf32>
    %654 = tpu.matmul %648, %650, %cst_256 {dimension_numbers = #tpu.dot_dimension_numbers<[1], [0], [0], [1], [0, 0, 1, 1], [], []>} : vector<10x32xf32>, vector<32x64xf32>, vector<10x64xf32> -> vector<10x64xf32>
    %655 = arith.addf %653, %654 : vector<10x64xf32>
    %cst_257 = arith.constant dense<0.000000e+00> : vector<10x64xf32>
    %656 = tpu.matmul %186, %651, %cst_257 {dimension_numbers = #tpu.dot_dimension_numbers<[1], [0], [0], [1], [0, 0, 1, 1], [], []>} : vector<10x32xf32>, vector<32x64xf32>, vector<10x64xf32> -> vector<10x64xf32>
    %657 = arith.addf %655, %656 : vector<10x64xf32>
    %658 = vector.broadcast %652 : vector<1x64xf32> to vector<10x64xf32>
    %659 = arith.addf %657, %658 : vector<10x64xf32>
    %cst_258 = arith.constant 0.000000e+00 : f32
    %660 = vector.broadcast %cst_258 : f32 to vector<10x64xf32>
    %661 = arith.maximumf %659, %660 : vector<10x64xf32>
    %c184 = arith.constant 184 : index
    %c0_259 = arith.constant 0 : index
    %662 = vector.load %arg12[%c184, %c0_259] : memref<376x32xf32, #tpu.memory_space<vmem>>, vector<64x32xf32>
    %c248 = arith.constant 248 : index
    %c0_260 = arith.constant 0 : index
    %663 = vector.load %arg12[%c248, %c0_260] : memref<376x32xf32, #tpu.memory_space<vmem>>, vector<64x32xf32>
    %c312 = arith.constant 312 : index
    %c0_261 = arith.constant 0 : index
    %664 = vector.load %arg12[%c312, %c0_261] : memref<376x32xf32, #tpu.memory_space<vmem>>, vector<1x32xf32>
    %c320 = arith.constant 320 : index
    %c0_262 = arith.constant 0 : index
    %665 = vector.load %arg12[%c320, %c0_262] : memref<376x32xf32, #tpu.memory_space<vmem>>, vector<1x32xf32>
    %c328 = arith.constant 328 : index
    %c0_263 = arith.constant 0 : index
    %666 = vector.load %arg12[%c328, %c0_263] : memref<376x32xf32, #tpu.memory_space<vmem>>, vector<1x32xf32>
    %cst_264 = arith.constant dense<0.000000e+00> : vector<10x32xf32>
    %667 = tpu.matmul %661, %662, %cst_264 {dimension_numbers = #tpu.dot_dimension_numbers<[1], [0], [0], [1], [0, 0, 1, 1], [], []>} : vector<10x64xf32>, vector<64x32xf32>, vector<10x32xf32> -> vector<10x32xf32>
    %cst_265 = arith.constant dense<0.000000e+00> : vector<1x32xf32>
    %668 = tpu.matmul %417, %663, %cst_265 {dimension_numbers = #tpu.dot_dimension_numbers<[1], [0], [0], [1], [0, 0, 1, 1], [], []>} : vector<1x64xf32>, vector<64x32xf32>, vector<1x32xf32> -> vector<1x32xf32>
    %669 = vector.broadcast %668 : vector<1x32xf32> to vector<10x32xf32>
    %670 = arith.addf %667, %669 : vector<10x32xf32>
    %671 = vector.broadcast %664 : vector<1x32xf32> to vector<10x32xf32>
    %672 = arith.addf %670, %671 : vector<10x32xf32>
    %cst_266 = arith.constant 0.000000e+00 : f32
    %673 = vector.broadcast %cst_266 : f32 to vector<10x32xf32>
    %674 = arith.maximumf %672, %673 : vector<10x32xf32>
    %cst_267 = arith.constant dense<0.000000e+00> : vector<1x10xf32>
    %675 = tpu.matmul %665, %674, %cst_267 {dimension_numbers = #tpu.dot_dimension_numbers<[1], [1], [0], [0], [0, 0, 1, 0], [], []>} : vector<1x32xf32>, vector<10x32xf32>, vector<1x10xf32> -> vector<1x10xf32>
    %676 = vector.extract_strided_slice %666 {offsets = [0, 0], sizes = [1, 1], strides = [1, 1]} : vector<1x32xf32> to vector<1x1xf32>
    %677 = vector.broadcast %676 : vector<1x1xf32> to vector<1x10xf32>
    %678 = arith.addf %675, %677 : vector<1x10xf32>
    %c0_268 = arith.constant 0 : index
    %c0_269 = arith.constant 0 : index
    %c0_270 = arith.constant 0 : index
    %679 = vector.load %arg8[%c0_268, %c0_269, %c0_270] : memref<1x1x10xf32, #tpu.memory_space<vmem>>, vector<1x1x10xf32>
    %680 = vector.shape_cast %679 : vector<1x1x10xf32> to vector<1x10xf32>
    %681 = arith.mulf %678, %680 : vector<1x10xf32>
    %cst_271 = arith.constant dense<0xFF800000> : vector<1xf32>
    %682 = vector.multi_reduction <maximumf>, %681, %cst_271 [1] : vector<1x10xf32> to vector<1xf32>
    %683 = vector.shape_cast %682 : vector<1xf32> to vector<1x1xf32>
    %684 = vector.broadcast %683 : vector<1x1xf32> to vector<1x10xf32>
    %685 = arith.subf %681, %684 : vector<1x10xf32>
    %686 = math.exp %685 : vector<1x10xf32>
    %cst_272 = arith.constant dense<0.000000e+00> : vector<1xf32>
    %687 = vector.multi_reduction <add>, %686, %cst_272 [1] : vector<1x10xf32> to vector<1xf32>
    %688 = vector.shape_cast %687 : vector<1xf32> to vector<1x1xf32>
    %689 = tpu.reciprocal %688 {approx = true} : vector<1x1xf32> -> vector<1x1xf32>
    %690 = vector.broadcast %689 : vector<1x1xf32> to vector<1x10xf32>
    %691 = arith.mulf %686, %690 : vector<1x10xf32>
    %cst_273 = arith.constant dense<0.000000e+00> : vector<1x64xf32>
    %692 = tpu.matmul %691, %661, %cst_273 {dimension_numbers = #tpu.dot_dimension_numbers<[1], [0], [0], [1], [0, 0, 1, 1], [], []>} : vector<1x10xf32>, vector<10x64xf32>, vector<1x64xf32> -> vector<1x64xf32>
    %c40_274 = arith.constant 40 : index
    %c0_275 = arith.constant 0 : index
    %693 = vector.load %arg10[%c40_274, %c0_275] : memref<120x96xf32, #tpu.memory_space<vmem>>, vector<64x96xf32>
    %c104_276 = arith.constant 104 : index
    %c0_277 = arith.constant 0 : index
    %694 = vector.load %arg10[%c104_276, %c0_277] : memref<120x96xf32, #tpu.memory_space<vmem>>, vector<1x96xf32>
    %c112_278 = arith.constant 112 : index
    %c0_279 = arith.constant 0 : index
    %695 = vector.load %arg10[%c112_278, %c0_279] : memref<120x96xf32, #tpu.memory_space<vmem>>, vector<1x96xf32>
    %cst_280 = arith.constant 0.000000e+00 : f32
    %696 = vector.broadcast %cst_280 : f32 to vector<1x64xf32>
    %697 = arith.maximumf %692, %696 : vector<1x64xf32>
    %cst_281 = arith.constant dense<0.000000e+00> : vector<1x96xf32>
    %698 = tpu.matmul %697, %693, %cst_281 {dimension_numbers = #tpu.dot_dimension_numbers<[1], [0], [0], [1], [0, 0, 1, 1], [], []>} : vector<1x64xf32>, vector<64x96xf32>, vector<1x96xf32> -> vector<1x96xf32>
    %699 = arith.addf %698, %694 : vector<1x96xf32>
    %700 = vector.extract_strided_slice %699 {offsets = [0, 0], sizes = [1, 32], strides = [1, 1]} : vector<1x96xf32> to vector<1x32xf32>
    %701 = vector.extract_strided_slice %695 {offsets = [0, 0], sizes = [1, 32], strides = [1, 1]} : vector<1x96xf32> to vector<1x32xf32>
    %702 = arith.addf %700, %701 : vector<1x32xf32>
    %cst_282 = arith.constant 0.000000e+00 : f32
    %703 = vector.broadcast %cst_282 : f32 to vector<1x32xf32>
    %704 = arith.subf %703, %702 : vector<1x32xf32>
    %705 = math.exp %704 : vector<1x32xf32>
    %cst_283 = arith.constant 1.000000e+00 : f32
    %706 = vector.broadcast %cst_283 : f32 to vector<1x32xf32>
    %707 = arith.addf %706, %705 : vector<1x32xf32>
    %cst_284 = arith.constant 1.000000e+00 : f32
    %708 = vector.broadcast %cst_284 : f32 to vector<1x32xf32>
    %709 = arith.divf %708, %707 : vector<1x32xf32>
    %710 = vector.extract_strided_slice %699 {offsets = [0, 32], sizes = [1, 32], strides = [1, 1]} : vector<1x96xf32> to vector<1x32xf32>
    %711 = vector.extract_strided_slice %695 {offsets = [0, 32], sizes = [1, 32], strides = [1, 1]} : vector<1x96xf32> to vector<1x32xf32>
    %712 = arith.addf %710, %711 : vector<1x32xf32>
    %cst_285 = arith.constant 0.000000e+00 : f32
    %713 = vector.broadcast %cst_285 : f32 to vector<1x32xf32>
    %714 = arith.subf %713, %712 : vector<1x32xf32>
    %715 = math.exp %714 : vector<1x32xf32>
    %cst_286 = arith.constant 1.000000e+00 : f32
    %716 = vector.broadcast %cst_286 : f32 to vector<1x32xf32>
    %717 = arith.addf %716, %715 : vector<1x32xf32>
    %cst_287 = arith.constant 1.000000e+00 : f32
    %718 = vector.broadcast %cst_287 : f32 to vector<1x32xf32>
    %719 = arith.divf %718, %717 : vector<1x32xf32>
    %720 = vector.extract_strided_slice %699 {offsets = [0, 64], sizes = [1, 32], strides = [1, 1]} : vector<1x96xf32> to vector<1x32xf32>
    %721 = vector.extract_strided_slice %695 {offsets = [0, 64], sizes = [1, 32], strides = [1, 1]} : vector<1x96xf32> to vector<1x32xf32>
    %722 = arith.mulf %709, %721 : vector<1x32xf32>
    %723 = arith.addf %720, %722 : vector<1x32xf32>
    %724 = math.tanh %723 : vector<1x32xf32>
    %cst_288 = arith.constant 1.000000e+00 : f32
    %725 = vector.broadcast %cst_288 : f32 to vector<1x32xf32>
    %726 = arith.subf %725, %719 : vector<1x32xf32>
    %727 = arith.mulf %726, %724 : vector<1x32xf32>
    %c336 = arith.constant 336 : index
    %c0_289 = arith.constant 0 : index
    %728 = vector.load %arg12[%c336, %c0_289] : memref<376x32xf32, #tpu.memory_space<vmem>>, vector<32x32xf32>
    %c368 = arith.constant 368 : index
    %c0_290 = arith.constant 0 : index
    %729 = vector.load %arg12[%c368, %c0_290] : memref<376x32xf32, #tpu.memory_space<vmem>>, vector<1x32xf32>
    %cst_291 = arith.constant dense<0.000000e+00> : vector<1x32xf32>
    %730 = tpu.matmul %727, %728, %cst_291 {dimension_numbers = #tpu.dot_dimension_numbers<[1], [0], [0], [1], [0, 0, 1, 1], [], []>} : vector<1x32xf32>, vector<32x32xf32>, vector<1x32xf32> -> vector<1x32xf32>
    %731 = arith.addf %730, %729 : vector<1x32xf32>
    %732 = vector.extract_strided_slice %731 {offsets = [0, 0], sizes = [1, 1], strides = [1, 1]} : vector<1x32xf32> to vector<1x1xf32>
    %c0_292 = arith.constant 0 : index
    %c0_293 = arith.constant 0 : index
    %c0_294 = arith.constant 0 : index
    %733 = vector.load %arg13[%c0_292, %c0_293, %c0_294] : memref<1x1x1xf32, #tpu.memory_space<vmem>>, vector<1x1x1xf32>
    %734 = vector.shape_cast %733 : vector<1x1x1xf32> to vector<1x1xf32>
    %735 = vector.shape_cast %732 : vector<1x1xf32> to vector<1x1x1xf32>
    tpu.vector_store %arg13[%c0_292, %c0_293, %c0_294], %735 {strides = array<i32>} : memref<1x1x1xf32, #tpu.memory_space<vmem>>, vector<1x1x1xf32>,
    return
  }
  func.func @transform_0(%arg0: i32) -> (i32, i32, i32) {
    %c0_i32 = arith.constant 0 : i32
    %c0_i32_0 = arith.constant 0 : i32
    %c0_i32_1 = arith.constant 0 : i32
    return %arg0, %c0_i32, %c0_i32_0 : i32, i32, i32
  }
  func.func @transform_1(%arg0: i32) -> (i32, i32, i32, i32) {
    %c0_i32 = arith.constant 0 : i32
    %c0_i32_0 = arith.constant 0 : i32
    %c0_i32_1 = arith.constant 0 : i32
    %c0_i32_2 = arith.constant 0 : i32
    return %arg0, %c0_i32, %c0_i32_0, %c0_i32_1 : i32, i32, i32, i32
  }
  func.func @transform_2(%arg0: i32) -> (i32, i32, i32) {
    %c0_i32 = arith.constant 0 : i32
    %c0_i32_0 = arith.constant 0 : i32
    %c0_i32_1 = arith.constant 0 : i32
    return %arg0, %c0_i32, %c0_i32_0 : i32, i32, i32
  }
  func.func @transform_3(%arg0: i32) -> (i32, i32, i32) {
    %c0_i32 = arith.constant 0 : i32
    %c0_i32_0 = arith.constant 0 : i32
    %c0_i32_1 = arith.constant 0 : i32
    return %arg0, %c0_i32, %c0_i32_0 : i32, i32, i32
  }
  func.func @transform_4(%arg0: i32) -> (i32, i32, i32) {
    %c0_i32 = arith.constant 0 : i32
    %c0_i32_0 = arith.constant 0 : i32
    %c0_i32_1 = arith.constant 0 : i32
    return %arg0, %c0_i32, %c0_i32_0 : i32, i32, i32
  }
  func.func @transform_5(%arg0: i32) -> (i32, i32, i32, i32) {
    %c0_i32 = arith.constant 0 : i32
    %c0_i32_0 = arith.constant 0 : i32
    %c0_i32_1 = arith.constant 0 : i32
    %c0_i32_2 = arith.constant 0 : i32
    return %arg0, %c0_i32, %c0_i32_0, %c0_i32_1 : i32, i32, i32, i32
  }
  func.func @transform_6(%arg0: i32) -> (i32, i32, i32) {
    %c0_i32 = arith.constant 0 : i32
    %c0_i32_0 = arith.constant 0 : i32
    %c0_i32_1 = arith.constant 0 : i32
    return %arg0, %c0_i32, %c0_i32_0 : i32, i32, i32
  }
  func.func @transform_7(%arg0: i32) -> (i32, i32, i32) {
    %c0_i32 = arith.constant 0 : i32
    %c0_i32_0 = arith.constant 0 : i32
    %c0_i32_1 = arith.constant 0 : i32
    return %arg0, %c0_i32, %c0_i32_0 : i32, i32, i32
  }
  func.func @transform_8(%arg0: i32) -> (i32, i32) {
    %c0_i32 = arith.constant 0 : i32
    %c0_i32_0 = arith.constant 0 : i32
    %c0_i32_1 = arith.constant 0 : i32
    return %c0_i32, %c0_i32_0 : i32, i32
  }
  func.func @transform_9(%arg0: i32) -> (i32, i32) {
    %c0_i32 = arith.constant 0 : i32
    %c0_i32_0 = arith.constant 0 : i32
    %c0_i32_1 = arith.constant 0 : i32
    return %c0_i32, %c0_i32_0 : i32, i32
  }
  func.func @transform_10(%arg0: i32) -> (i32, i32) {
    %c0_i32 = arith.constant 0 : i32
    %c0_i32_0 = arith.constant 0 : i32
    %c0_i32_1 = arith.constant 0 : i32
    return %c0_i32, %c0_i32_0 : i32, i32
  }
  func.func @transform_11(%arg0: i32) -> (i32, i32) {
    %c0_i32 = arith.constant 0 : i32
    %c0_i32_0 = arith.constant 0 : i32
    %c0_i32_1 = arith.constant 0 : i32
    return %c0_i32, %c0_i32_0 : i32, i32
  }
  func.func @transform_12(%arg0: i32) -> (i32, i32, i32) {
    %c0_i32 = arith.constant 0 : i32
    %c0_i32_0 = arith.constant 0 : i32
    %c0_i32_1 = arith.constant 0 : i32
    return %arg0, %c0_i32, %c0_i32_0 : i32, i32, i32
  }
}

</mosaic_0001>

<bundles_post_ra>
// kernel: mvgfrnn_forward.1
= control target key start
LH: loop header
LB: loop body
LE: loop exit
PB: predicated region body
PF: predicated region fallthrough
CT: control target
= control target key end

     0   :  { %s9206_s21 = smov 0   ;;  %s10930_s0 = inlined_call_operand.vmem [shape: f32[2,36,22], index: 0, kind: input, shape index: {}]   ;;  %s10931_s1 = inlined_call_operand.vmem [shape: f32[2,3,36,36], index: 1, kind: input, shape index: {}]   ;;  %s10932_s2 = inlined_call_operand.vmem [shape: f32[2,10,12], index: 2, kind: input, shape index: {}]   ;;  %s10933_s3 = inlined_call_operand.vmem [shape: f32[2,6,4], index: 3, kind: input, shape index: {}]   ;;  %s10934_s4 = inlined_call_operand.vmem [shape: f32[2,1,18], index: 4, kind: input, shape index: {}]   ;;  %s10935_s5 = inlined_call_operand.vmem [shape: f32[2,6,10,5], index: 5, kind: input, shape index: {}]   ;;  %s10936_s6 = inlined_call_operand.vmem [shape: f32[2,10,19], index: 6, kind: input, shape index: {}]   ;;  %s10937_s7 = inlined_call_operand.vmem [shape: f32[2,1,10], index: 7, kind: input, shape index: {}]   ;;  %s10938_s8 = inlined_call_operand.vmem [shape: f32[96,128], index: 8, kind: input, shape index: {}]   ;;  %s10939_s9 = inlined_call_operand.vmem [shape: f32[120,96], index: 9, kind: input, shape index: {}]   ;;  %s10940_s10 = inlined_call_operand.vmem [shape: f32[176,64], index: 10, kind: input, shape index: {}]   ;;  %s10941_s11 = inlined_call_operand.vmem [shape: f32[376,32], index: 11, kind: input, shape index: {}]   ;;  %s10942_s12 = inlined_call_operand.vmem [shape: f32[2,1,1], index: 12, kind: output, shape index: {}]  }
   0x1 LB: > { %s7072_s22 = sadd.s32 4294967295, %s9130_s21   ;;  %p7076_p0 = scmp.ge.s32.totalorder %s9130_s21, 1  ;;  %s9130_s21 = sphi %s9206_s21, %s22_s21  }
   0x2   : > { %p427_p1 = scmp.lt.s32.totalorder %s9130_s21, 3 }
   0x4   : > { %p428_p2 = pnand %p7076_p0, %p427_p1 }
   0x5   : > { %v535_v0 = vld [vmem:[%s10941_s11] sm:$0xff] (!%p428_p2)  ;;  %v536_v1 = vld [vmem:[%s10941_s11 + $0x8] sm:$0xff] (!%p428_p2)  ;;  %v9132_v2 = vmov (!%p428_p2), 0.0|0.0   ;;  %p497_p3 = scmp.lt.s32.totalorder (!%p428_p2), %s7072_s22, 1  ;;  %vm9133_vm0 = vmmov (!%p428_p2), 0   ;;  %v9134_v4 = vmov (!%p428_p2), 0.0   ;;  %v769_v36 = vlaneseq (!%p428_p2) }
   0x6   : > { %431 = sbr.rel (%p428_p2) target bundleno = 13334 (0x3416), region = 68  ;;  %8225 = vmatprep.subr.bf16.mxu0 (!%p428_p2), %v9132_v2  ;;  %v8226_v3 = vpack.c.bf16 (!%p428_p2), %v536_v1, %v535_v0  ;;  %8228 = vmatprep.subr.bf16.mxu1 (!%p428_p2), %v9132_v2  ;;  %v537_v5 = vld [vmem:[%s10941_s11 + $0x10] sm:$0x3f] (!%p428_p2)  ;;  %vm561_vm1 = vcmask (!%p428_p2), 1045504   ;;  %vm545_vm2 = vcmask (!%p428_p2), 179200   ;;  %vm664_vm3 = vcmask (!%p428_p2), 261120  }
   0x7   : > { %7620 = vmatprep.mubr.msk.f32.mxu0 (!%p428_p2), %vm9133_vm0, %v9134_v4  ;;  %7645 = vmatprep.mubr.msk.f32.mxu1 (!%p428_p2), %vm9133_vm0, %v9134_v4  ;;  %v7091_v11 = vld [vmem:[%s10941_s11 + $0x18] ss:$0 sm:$0xff] (!%p428_p2)  ;;  %vm9258_vm4 = vmpackc.low (!%p428_p2), %vm664_vm3, %vm664_vm3  ;;  %vm880_vm5 = vcmask (!%p428_p2), 1043456   ;;  %vm677_vm6 = vcmask (!%p428_p2), 257024   ;;  %v539_v35 = vld [vmem:[%s10941_s11 + $0x20] sm:$0x1] (!%p428_p2) }
   0x8   : > { %8227 = vmatpush3.bf16.msra.mxu0 (!%p428_p2), %v8226_v3  ;;  %v9302_v37 = vshrl.u32 (!%p428_p2), %v769_v36, 7  ;;  %vm808_vm8 = vcmask (!%p428_p2), 293888   ;;  %s9135_s17 = smov (!%p428_p2), 96   ;;  %s9136_s18 = smov (!%p428_p2), 64  }
   0x9   : > { %7618 = vmatprep.subr.mxu0 (!%p428_p2), %v9134_v4  ;;  %s9138_s16 = smov (!%p428_p2), 32  }
   0xa   : > { %v771_v40 = vsub.s32 (!%p428_p2), 0, %v9302_v37 }
   0xc   : > { %7619 = vmatpush3.msk.msra.mxu0 (!%p428_p2), %vm561_vm1, %v537_v5 }
   0xd   : > { %s10948_s22 = smov (!%p497_p3, %s7072_s22), 1  ;;  %8236 = vmatprep.subr.bf16.mxu0 %v9132_v2 }
   0xe   : > { %s8557_s29 = smul.u32 40, %s10948_s22  ;;  %s7301_s25 = sshll.u32 %s10948_s22, 4 }
   0xf   : > { %s8558_s19 = smul.u32 120, %s10948_s22  ;;  %s10005_s28 = scalar_lea.vmem %s10932_s2, %s7301_s25 }
  0x10   : > { %s501_s14 = scalar_lea.vmem %s10930_s0, %s8557_s29  ;;  %s518_s29 = scalar_lea.vmem %s10934_s4, %s10948_s22 }
  0x11   : > { %v540_v6 = vld [vmem:[%s501_s14] sm:$0xff]  ;;  %v541_v7 = vld [vmem:[%s501_s14 + $0x8] sm:$0xff]  ;;  %v542_v8 = vld [vmem:[%s501_s14 + $0x10] sm:$0xff]  ;;  %s9309_s24 = scalar_lea.vmem %s10931_s1, %s8558_s19  ;;  %s7081_s19 = sshll.u32 %s10948_s22, 3 }
  0x12   : > { %7621 = vmatmul.mubr.msk.f32.vlgmr.msra.gmra.mrb[0].mxu0 %vm545_vm2, %v540_v6  ;;  %v543_v9 = vld [vmem:[%s501_s14 + $0x18] sm:$0xff]  ;;  %v544_v10 = vld [vmem:[%s501_s14 + $0x20] sm:$0xf]  ;;  %v794_v45 = vld [vmem:[%s9309_s24 + $0x8] sm:$0xff]  ;;  %s8559_s30 = smul.u32 96, %s10948_s22  ;;  %s528_s14 = scalar_lea.vmem %s10936_s6, %s7301_s25 }
  0x13   : > { %7623 = vmatprep.mubr.msk.f32.mxu0 %vm9133_vm0, %v9134_v4  ;;  %v793_v44 = vld [vmem:[%s9309_s24] sm:$0xff]  ;;  %v795_v46 = vld [vmem:[%s9309_s24 + $0x10] sm:$0xff]  ;;  %vm799_vm9 = vcmp.gt.f32.partialorder %v794_v45, 0.0  ;;  %v796_v53 = vld [vmem:[%s9309_s24 + $0x18] sm:$0xff]  ;;  %s534_s20 = scalar_lea.vmem %s10942_s12, %s10948_s22 }
  0x14   : > { %vm798_vm7 = vcmp.gt.f32.partialorder %v793_v44, 0.0  ;;  %vm800_vm10 = vcmp.gt.f32.partialorder %v795_v46, 0.0  ;;  %vm801_vm15 = vcmp.gt.f32.partialorder %v796_v53, 0.0  ;;  %v7114_v3 = vld [vmem:[%s9309_s24 + $0x28] sm:$0xff]  ;;  %v7115_v5 = vld [vmem:[%s9309_s24 + $0x30] sm:$0xff] }
  0x15   : > { %vm1024_vm1 = vcmp.gt.f32.partialorder %v7114_v3, 0.0 }
  0x16   : > { %7624 = vmatmul.mubr.msk.f32.gmra.mrb[2].mxu0 %vm545_vm2, %v541_v7 }
  0x17   : > { %7626 = vmatprep.mubr.msk.f32.mxu0 %vm9133_vm0, %v9134_v4 }
  0x1a   : > { %7627 = vmatmul.mubr.msk.f32.gmra.mrb[4].mxu0 %vm545_vm2, %v542_v8 }
  0x1b   : > { %7629 = vmatprep.mubr.msk.f32.mxu0 %vm9133_vm0, %v9134_v4 }
  0x1e   : > { %7630 = vmatmul.mubr.msk.f32.gmra.mrb[6].mxu0 %vm545_vm2, %v543_v9 }
  0x1f   : > { %7632 = vmatprep.mubr.msk.f32.mxu0 %vm9133_vm0, %v9134_v4 }
  0x22   : > { %7633 = vmatmul.mubr.msk.f32.gmra.mrb[8].mxu0 %vm545_vm2, %v544_v10  ;;  %vm1025_vm2 = vcmp.gt.f32.partialorder %v7115_v5, 0.0 }
  0x23   : > { %7658 = vmatprep.mubr.msk.f32.mxu0 %vm9133_vm0, %v9134_v4 }
  0xe5   : > { %v631_v12 = vpop.f32.mrb[0].mxu0 }
  0xe6   : > { %v7622_v13 = vpop.f32.mrb[1].mxu0  ;;  %v659_v14 = vmul.f32 %v7091_v11, %v631_v12 }
  0xe8   : > { %v665_v15 = vsel %vm664_vm3, %v659_v14, 0.0 }
  0xe9   : > { %666 = vadd.xlane.f32.xlu0 %v665_v15  ;;  %v636_v16 = vpop.f32.mrb[2].mxu0 }
  0xea   : > { %v660_v18 = vmul.f32 %v7091_v11, %v636_v16  ;;  %v9262_v19 = vpack.c.bf16 %v636_v16, %v631_v12  ;;  %v7625_v20 = vpop.f32.mrb[3].mxu0  ;;  %v797_v12 = vld [vmem:[%s9309_s24 + $0x20] sm:$0xf] }
  0xeb   : > { %v7118_v20 = vld [vmem:[%s9309_s24 + $0x48] sm:$0xf] }
  0xec   : > { %8231 = vmatpush3.bf16.xpose.msk.msra.mxu1 %vm9258_vm4, %v9262_v19  ;;  %8238 = vmatpush3.bf16.msra.mxu0 %v9262_v19  ;;  %v668_v21 = vsel %vm664_vm3, %v660_v18, 0.0 }
  0xed   : > { %669 = vadd.xlane.f32.xlu0 %v668_v21  ;;  %v641_v22 = vpop.f32.mrb[4].mxu0  ;;  %8232 = vmatprep.subr.bf16.mxu1 %v9132_v2  ;;  %v7117_v21 = vld [vmem:[%s9309_s24 + $0x40] sm:$0xff] }
  0xee   : > { %v7628_v23 = vpop.f32.mrb[5].mxu0  ;;  %v661_v24 = vmul.f32 %v7091_v11, %v641_v22  ;;  %8239 = vmatprep.subr.bf16.mxu0 %v9132_v2 }
  0xf0   : > { %v671_v25 = vsel %vm664_vm3, %v661_v24, 0.0 }
  0xf1   : > { %672 = vadd.xlane.f32.xlu1 %v671_v25  ;;  %v646_v26 = vpop.f32.mrb[6].mxu0 }
  0xf2   : > { %v662_v27 = vmul.f32 %v7091_v11, %v646_v26  ;;  %v9272_v28 = vpack.c.bf16 %v646_v26, %v641_v22  ;;  %v7631_v29 = vpop.f32.mrb[7].mxu0  ;;  %v7136_v26 = vld [vmem:[%s9309_s24 + $0x58] sm:$0xff] }
  0xf4   : > { %8235 = vmatpush3.bf16.xpose.msk.msra.mxu1 %vm9258_vm4, %v9272_v28  ;;  %8241 = vmatpush3.bf16.msra.mxu0 %v9272_v28  ;;  %v674_v30 = vsel %vm664_vm3, %v662_v27, 0.0  ;;  %v7135_v27 = vld [vmem:[%s9309_s24 + $0x50] sm:$0xff] }
  0xf5   : > { %675 = vadd.xlane.f32.xlu1 %v674_v30  ;;  %v9279_v31 = vpop.f32.mrb[8].mxu0  ;;  %7643 = vmatprep.subr.mxu1 %v9134_v4 }
  0xf6   : > { %v7634_v32 = vpop.f32.mrb[9].mxu0  ;;  %7656 = vmatprep.subr.mxu0 %v9134_v4  ;;  %v663_v33 = vmul.f32 %v7091_v11, %v9279_v31  ;;  %v7116_v11 = vld [vmem:[%s9309_s24 + $0x38] sm:$0xff] }
  0xf8   : > { %7657 = vmatpush3.msk.msra.mxu0 %vm880_vm5, %v9279_v31  ;;  %v678_v34 = vsel %vm677_vm6, %v663_v33, 0.0 }
  0xf9   : > { %679 = vadd.xlane.f32.xlu0 %v678_v34  ;;  %8248 = vmatprep.subr.bf16.mxu0 %v9132_v2  ;;  %v7138_v34 = vld [vmem:[%s9309_s24 + $0x68] sm:$0xff] }
  0xfc   : > { %7644 = vmatpush3.xpose.msk.msra.mxu1 %vm664_vm3, %v9279_v31 }
  0xfd   : > { %8242 = vmatprep.subr.bf16.mxu1 %v9132_v2 }
  0xff   : > { %7646 = vmatmul.mubr.msk.f32.vlgmr.msra.gmra.mrb[0].mxu1 %vm664_vm3, %v539_v35  ;;  %v7137_v35 = vld [vmem:[%s9309_s24 + $0x60] sm:$0xff] }
 0x100   : > { %8244 = vmatpush3.bf16.msra.mxu1 %v9262_v19  ;;  %7683 = vmatprep.mubr.msk.f32.mxu1 %vm9133_vm0, %v9134_v4 }
 0x101   : > { %8245 = vmatprep.subr.bf16.mxu1 %v9132_v2 }
 0x104   : > { %8247 = vmatpush3.bf16.msra.mxu1 %v9272_v28 }
 0x105   : > { %7681 = vmatprep.subr.mxu1 %v9134_v4 }
 0x108   : > { %7682 = vmatpush3.msk.msra.mxu1 %vm880_vm5, %v9279_v31 }
 0x176   : > { %v667_v38 = vpop.xlane.xlu0 %666 }
 0x17a   : > { %v670_v47 = vpop.xlane.xlu0 %669 }
 0x17e   : > { %v673_v39 = vpop.xlane.xlu1 %672 }
 0x182   : > { %v676_v48 = vpop.xlane.xlu1 %675 }
 0x186   : > { %v680_v56 = vpop.xlane.xlu0 %679 }
 0x1d2   : > { %v765_v41 = vpop.f32.mrb[0].mxu1 }
 0x1d3   : > { %v772_v42 = vrot.slane %v765_v41, %v771_v40  ;;  %v7647_v43 = vpop.f32.mrb[1].mxu1 }
 0x1d5   : > { %v773_v49 = vadd.f32 %v772_v42, %v667_v38  ;;  %v774_v50 = vadd.f32 %v772_v42, %v670_v47  ;;  %v775_v51 = vadd.f32 %v772_v42, %v673_v39  ;;  %v776_v52 = vadd.f32 %v772_v42, %v676_v48 }
 0x1d6   : > { %v777_v61 = vadd.f32 %v772_v42, %v680_v56  ;;  %v7139_v42 = vld [vmem:[%s9309_s24 + $0x70] sm:$0xf]  ;;  %s515_s24 = scalar_lea.vmem %s10933_s3, %s7081_s19 }
 0x1d7   : > { %vm778_vm11 = vcmp.gt.f32.partialorder %v773_v49, 0.0  ;;  %v783_v54 = vmul.f32 0.2, %v773_v49  ;;  %vm779_vm12 = vcmp.gt.f32.partialorder %v774_v50, 0.0  ;;  %v784_v55 = vmul.f32 0.2, %v774_v50 }
 0x1d8   : > { %vm780_vm13 = vcmp.gt.f32.partialorder %v775_v51, 0.0  ;;  %v785_v57 = vmul.f32 0.2, %v775_v51  ;;  %vm781_vm14 = vcmp.gt.f32.partialorder %v776_v52, 0.0  ;;  %v786_v58 = vmul.f32 0.2, %v776_v52 }
 0x1d9   : > { %v788_v59 = vsel %vm778_vm11, %v773_v49, %v783_v54  ;;  %v789_v60 = vsel %vm779_vm12, %v774_v50, %v784_v55  ;;  %v787_v10 = vmul.f32 0.2, %v777_v61  ;;  %vm782_vm6 = vcmp.gt.f32.partialorder %v777_v61, 0.0 }
 0x1da   : > { %v9318_v62 = vsel %vm798_vm7, %v788_v59, -9e+15  ;;  %v9321_v63 = vsel %vm799_vm9, %v789_v60, -9e+15  ;;  %v790_v0 = vsel %vm780_vm13, %v775_v51, %v785_v57  ;;  %v791_v1 = vsel %vm781_vm14, %v776_v52, %v786_v58 }
 0x1db   : > { %v809_v6 = vsel %vm808_vm8, %v9318_v62, -inf  ;;  %v812_v7 = vsel %vm808_vm8, %v9321_v63, -inf  ;;  %v9330_v8 = vsel %vm800_vm10, %v790_v0, -9e+15  ;;  %v9332_v9 = vsel %vm801_vm15, %v791_v1, -9e+15 }
 0x1dc   : > { %810 = vmax.xlane.f32.xlu1 %v809_v6  ;;  %813 = vmax.xlane.f32.xlu0 %v812_v7  ;;  %v815_v13 = vsel %vm808_vm8, %v9330_v8, -inf  ;;  %v818_v14 = vsel %vm808_vm8, %v9332_v9, -inf  ;;  %v9340_v15 = vsel %vm1024_vm1, %v788_v59, -9e+15  ;;  %v9342_v16 = vsel %vm1025_vm2, %v789_v60, -9e+15 }
 0x1dd   : > { %vm1026_vm7 = vcmp.gt.f32.partialorder %v7116_v11, 0.0  ;;  %v792_v18 = vsel %vm782_vm6, %v777_v61, %v787_v10  ;;  %vm802_vm9 = vcmp.gt.f32.partialorder %v797_v12, 0.0  ;;  %v1034_v22 = vsel %vm808_vm8, %v9340_v15, -inf }
 0x1de   : > { %v1037_v23 = vsel %vm808_vm8, %v9342_v16, -inf  ;;  %v9350_v24 = vsel %vm1026_vm7, %v790_v0, -9e+15  ;;  %v9352_v25 = vsel %vm802_vm9, %v792_v18, -9e+15  ;;  %vm821_vm10 = vcmask 289792  }
 0x1df   : > { %vm1028_vm11 = vcmp.gt.f32.partialorder %v7118_v20, 0.0  ;;  %vm1027_vm12 = vcmp.gt.f32.partialorder %v7117_v21, 0.0  ;;  %v1040_v29 = vsel %vm808_vm8, %v9350_v24, -inf  ;;  %v822_v30 = vsel %vm821_vm10, %v9352_v25, -inf }
 0x1e0   : > { %816 = vmax.xlane.f32.xlu1 %v815_v13  ;;  %819 = vmax.xlane.f32.xlu0 %v818_v14  ;;  %v9360_v32 = vsel %vm1028_vm11, %v792_v18, -9e+15  ;;  %v9362_v33 = vsel %vm1027_vm12, %v791_v1, -9e+15  ;;  %vm1246_vm13 = vcmp.gt.f32.partialorder %v7136_v26, 0.0  ;;  %vm1245_vm14 = vcmp.gt.f32.partialorder %v7135_v27, 0.0 }
 0x1e1   : > { %v1046_v36 = vsel %vm821_vm10, %v9360_v32, -inf  ;;  %v1043_v38 = vsel %vm808_vm8, %v9362_v33, -inf  ;;  %v9370_v39 = vsel %vm1246_vm13, %v789_v60, -9e+15  ;;  %v9372_v41 = vsel %vm1245_vm14, %v788_v59, -9e+15 }
 0x1e2   : > { %vm1248_vm15 = vcmp.gt.f32.partialorder %v7138_v34, 0.0  ;;  %vm1247_vm1 = vcmp.gt.f32.partialorder %v7137_v35, 0.0  ;;  %v1258_v43 = vsel %vm808_vm8, %v9370_v39, -inf  ;;  %v1255_v44 = vsel %vm808_vm8, %v9372_v41, -inf }
 0x1e3   : > { %v9379_v45 = vsel %vm1248_vm15, %v791_v1, -9e+15  ;;  %v9381_v46 = vsel %vm1247_vm1, %v790_v0, -9e+15  ;;  %vm1249_vm2 = vcmp.gt.f32.partialorder %v7139_v42, 0.0 }
 0x1e4   : > { %1035 = vmax.xlane.f32.xlu1 %v1034_v22  ;;  %1038 = vmax.xlane.f32.xlu0 %v1037_v23  ;;  %v1264_v47 = vsel %vm808_vm8, %v9379_v45, -inf  ;;  %v1261_v48 = vsel %vm808_vm8, %v9381_v46, -inf  ;;  %v9387_v49 = vsel %vm1249_vm2, %v792_v18, -9e+15 }
 0x1e5   : > { %v1267_v50 = vsel %vm821_vm10, %v9387_v49, -inf }
 0x1e8   : > { %1041 = vmax.xlane.f32.xlu0 %v1040_v29  ;;  %823 = vmax.xlane.f32.xlu1 %v822_v30 }
 0x1ec   : > { %1047 = vmax.xlane.f32.xlu0 %v1046_v36  ;;  %1044 = vmax.xlane.f32.xlu1 %v1043_v38 }
 0x1f0   : > { %1259 = vmax.xlane.f32.xlu0 %v1258_v43  ;;  %1256 = vmax.xlane.f32.xlu1 %v1255_v44 }
 0x1f4   : > { %1265 = vmax.xlane.f32.xlu0 %v1264_v47  ;;  %1262 = vmax.xlane.f32.xlu1 %v1261_v48 }
 0x1f8   : > { %1268 = vmax.xlane.f32.xlu1 %v1267_v50 }
 0x269   : > { %v811_v51 = vpop.xlane.xlu1 %810  ;;  %v814_v52 = vpop.xlane.xlu0 %813 }
 0x26a   : > { %v825_v53 = vsub.f32 %v9318_v62, %v811_v51  ;;  %v826_v54 = vsub.f32 %v9321_v63, %v814_v52 }
 0x26c   : > { %v830_v55 = vmul.f32 1.442695, %v825_v53  ;;  %v832_v56 = vmul.f32 1.442695, %v826_v54 }
 0x26d   : > { %v817_v57 = vpop.xlane.xlu1 %816  ;;  %v820_v58 = vpop.xlane.xlu0 %819 }
 0x26e   : > { %8655 = vpow2.f32 %v830_v55  ;;  %v827_v59 = vsub.f32 %v9330_v8, %v817_v57  ;;  %v828_v60 = vsub.f32 %v9332_v9, %v820_v58 }
 0x26f   : > { %8657 = vpow2.f32 %v832_v56 }
 0x270   : > { %v834_v61 = vmul.f32 1.442695, %v827_v59  ;;  %v836_v0 = vmul.f32 1.442695, %v828_v60 }
 0x271   : > { %v1036_v1 = vpop.xlane.xlu1 %1035  ;;  %v1039_v3 = vpop.xlane.xlu0 %1038 }
 0x272   : > { %8659 = vpow2.f32 %v834_v61  ;;  %v1049_v5 = vsub.f32 %v9340_v15, %v1036_v1  ;;  %v1050_v62 = vsub.f32 %v9342_v16, %v1039_v3 }
 0x273   : > { %8661 = vpow2.f32 %v836_v0 }
 0x274   : > { %v1054_v63 = vmul.f32 1.442695, %v1049_v5  ;;  %v1056_v6 = vmul.f32 1.442695, %v1050_v62 }
 0x275   : > { %v824_v7 = vpop.xlane.xlu1 %823  ;;  %v1042_v10 = vpop.xlane.xlu0 %1041 }
 0x276   : > { %8663 = vpow2.f32 %v1054_v63  ;;  %v829_v8 = vsub.f32 %v9352_v25, %v824_v7  ;;  %v1051_v9 = vsub.f32 %v9350_v24, %v1042_v10 }
 0x277   : > { %8665 = vpow2.f32 %v1056_v6 }
 0x278   : > { %v9399_v11 = vpop.eup %8655  ;;  %v838_v12 = vmul.f32 1.442695, %v829_v8  ;;  %v1058_v13 = vmul.f32 1.442695, %v1051_v9 }
 0x279   : > { %v9401_v14 = vpop.eup %8657  ;;  %v1045_v15 = vpop.xlane.xlu1 %1044  ;;  %v840_v16 = vsel %vm808_vm8, %v9399_v11, 0.0 }
 0x27a   : > { %v1048_v18 = vpop.xlane.xlu0 %1047  ;;  %8667 = vpow2.f32 %v838_v12  ;;  %v1052_v20 = vsub.f32 %v9362_v33, %v1045_v15  ;;  %841 = vadd.xlane.f32.xlu0 %v840_v16  ;;  %v843_v22 = vsel %vm808_vm8, %v9401_v14, 0.0 }
 0x27b   : > { %v1053_v21 = vsub.f32 %v9360_v32, %v1048_v18  ;;  %8669 = vpow2.f32 %v1058_v13  ;;  %844 = vadd.xlane.f32.xlu1 %v843_v22 }
 0x27c   : > { %v9409_v23 = vpop.eup %8659  ;;  %v1060_v24 = vmul.f32 1.442695, %v1052_v20 }
 0x27d   : > { %v1062_v25 = vmul.f32 1.442695, %v1053_v21  ;;  %v9411_v26 = vpop.eup %8661  ;;  %v1257_v27 = vpop.xlane.xlu1 %1256  ;;  %v846_v30 = vsel %vm808_vm8, %v9409_v23, 0.0 }
 0x27e   : > { %v1260_v29 = vpop.xlane.xlu0 %1259  ;;  %8671 = vpow2.f32 %v1060_v24  ;;  %v1270_v32 = vsub.f32 %v9372_v41, %v1257_v27  ;;  %847 = vadd.xlane.f32.xlu0 %v846_v30  ;;  %v849_v34 = vsel %vm808_vm8, %v9411_v26, 0.0 }
 0x27f   : > { %v1271_v33 = vsub.f32 %v9370_v39, %v1260_v29  ;;  %8673 = vpow2.f32 %v1062_v25  ;;  %850 = vadd.xlane.f32.xlu1 %v849_v34 }
 0x280   : > { %v9419_v35 = vpop.eup %8663  ;;  %v1275_v36 = vmul.f32 1.442695, %v1270_v32 }
 0x281   : > { %v1277_v38 = vmul.f32 1.442695, %v1271_v33  ;;  %v9421_v42 = vpop.eup %8665  ;;  %v1263_v43 = vpop.xlane.xlu1 %1262  ;;  %v1064_v47 = vsel %vm808_vm8, %v9419_v35, 0.0 }
 0x282   : > { %v1266_v44 = vpop.xlane.xlu0 %1265  ;;  %8675 = vpow2.f32 %v1275_v36  ;;  %v1272_v39 = vsub.f32 %v9381_v46, %v1263_v43  ;;  %1065 = vadd.xlane.f32.xlu0 %v1064_v47  ;;  %v1067_v48 = vsel %vm808_vm8, %v9421_v42, 0.0 }
 0x283   : > { %v1273_v41 = vsub.f32 %v9379_v45, %v1266_v44  ;;  %8677 = vpow2.f32 %v1277_v38  ;;  %1068 = vadd.xlane.f32.xlu1 %v1067_v48 }
 0x284   : > { %v9429_v50 = vpop.eup %8667  ;;  %v1279_v51 = vmul.f32 1.442695, %v1272_v39 }
 0x285   : > { %v1281_v52 = vmul.f32 1.442695, %v1273_v41  ;;  %v9431_v53 = vpop.eup %8669  ;;  %v1269_v54 = vpop.xlane.xlu1 %1268  ;;  %v852_v55 = vsel %vm821_vm10, %v9429_v50, 0.0 }
 0x286   : > { %8679 = vpow2.f32 %v1279_v51  ;;  %v1274_v46 = vsub.f32 %v9387_v49, %v1269_v54  ;;  %853 = vadd.xlane.f32.xlu0 %v852_v55  ;;  %v1070_v45 = vsel %vm808_vm8, %v9431_v53, 0.0 }
 0x287   : > { %8681 = vpow2.f32 %v1281_v52  ;;  %1071 = vadd.xlane.f32.xlu1 %v1070_v45 }
 0x288   : > { %v9438_v56 = vpop.eup %8671  ;;  %v1283_v57 = vmul.f32 1.442695, %v1274_v46 }
 0x289   : > { %v9440_v58 = vpop.eup %8673  ;;  %v1073_v59 = vsel %vm808_vm8, %v9438_v56, 0.0 }
 0x28a   : > { %8683 = vpow2.f32 %v1283_v57  ;;  %1074 = vadd.xlane.f32.xlu0 %v1073_v59  ;;  %v1076_v60 = vsel %vm821_vm10, %v9440_v58, 0.0  ;;  %v1478_v57 = vld [vmem:[%s10939_s9] sm:$0xff] }
 0x28b   : > { %1077 = vadd.xlane.f32.xlu1 %v1076_v60  ;;  %v1480_v60 = vld [vmem:[%s10939_s9 + $0x10] sm:$0xff] }
 0x28c   : > { %v9446_v49 = vpop.eup %8675 }
 0x28d   : > { %v9448_v61 = vpop.eup %8677  ;;  %v1285_v0 = vsel %vm808_vm8, %v9446_v49, 0.0 }
 0x28e   : > { %1286 = vadd.xlane.f32.xlu0 %v1285_v0  ;;  %v1288_v1 = vsel %vm808_vm8, %v9448_v61, 0.0 }
 0x28f   : > { %1289 = vadd.xlane.f32.xlu1 %v1288_v1 }
 0x290   : > { %v9454_v3 = vpop.eup %8679 }
 0x291   : > { %v9456_v5 = vpop.eup %8681  ;;  %v1291_v62 = vsel %vm808_vm8, %v9454_v3, 0.0 }
 0x292   : > { %1292 = vadd.xlane.f32.xlu0 %v1291_v62  ;;  %v1294_v63 = vsel %vm808_vm8, %v9456_v5, 0.0 }
 0x293   : > { %1295 = vadd.xlane.f32.xlu1 %v1294_v63 }
 0x294   : > { %v9462_v6 = vpop.eup %8683 }
 0x295   : > { %v1297_v7 = vsel %vm821_vm10, %v9462_v6, 0.0 }
 0x296   : > { %1298 = vadd.xlane.f32.xlu0 %v1297_v7 }
 0x307   : > { %v842_v10 = vpop.xlane.xlu0 %841 }
 0x308   : > { %v845_v8 = vpop.xlane.xlu1 %844  ;;  %8685 = vrcp.f32 %v842_v10 }
 0x309   : > { %8687 = vrcp.f32 %v845_v8 }
 0x30b   : > { %v848_v9 = vpop.xlane.xlu0 %847 }
 0x30c   : > { %v851_v12 = vpop.xlane.xlu1 %850  ;;  %8689 = vrcp.f32 %v848_v9 }
 0x30f   : > { %v1066_v13 = vpop.xlane.xlu0 %1065 }
 0x310   : > { %v1069_v15 = vpop.xlane.xlu1 %1068  ;;  %8691 = vrcp.f32 %v1066_v13 }
 0x311   : > { %8693 = vrcp.f32 %v851_v12 }
 0x312   : > { %v8686_v18 = vpop.eup %8685  ;;  %8695 = vrcp.f32 %v1069_v15 }
 0x313   : > { %v860_v16 = vmul.f32 %v8686_v18, %v9399_v11  ;;  %v854_v20 = vpop.xlane.xlu0 %853  ;;  %v8688_v21 = vpop.eup %8687 }
 0x314   : > { %v1072_v22 = vpop.xlane.xlu1 %1071  ;;  %8697 = vrcp.f32 %v854_v20  ;;  %v861_v25 = vmul.f32 %v8688_v21, %v9401_v14 }
 0x315   : > { %7659 = vmatmul.mubr.msk.f32.vlgmr.msra.gmra.mrb[10].mxu0 %vm808_vm8, %v860_v16  ;;  %8699 = vrcp.f32 %v1072_v22 }
 0x316   : > { %8250 = vmatpush3.bf16.msra.mxu0 %v9262_v19  ;;  %7661 = vmatprep.mubr.msk.f32.mxu0 %vm9133_vm0, %v9134_v4  ;;  %v8690_v27 = vpop.eup %8689 }
 0x317   : > { %v1075_v24 = vpop.xlane.xlu0 %1074  ;;  %8251 = vmatprep.subr.bf16.mxu0 %v9132_v2  ;;  %v862_v32 = vmul.f32 %v8690_v27, %v9409_v23 }
 0x318   : > { %v1078_v29 = vpop.xlane.xlu1 %1077  ;;  %8701 = vrcp.f32 %v1075_v24 }
 0x319   : > { %7662 = vmatmul.mubr.msk.f32.gmra.mrb[12].mxu0 %vm808_vm8, %v861_v25 }
 0x31a   : > { %v8692_v11 = vpop.eup %8691  ;;  %8253 = vmatpush3.bf16.msra.mxu0 %v9272_v28  ;;  %7664 = vmatprep.mubr.msk.f32.mxu0 %vm9133_vm0, %v9134_v4 }
 0x31b   : > { %v8694_v19 = vpop.eup %8693  ;;  %v1287_v30 = vpop.xlane.xlu0 %1286  ;;  %7706 = vmatprep.subr.mxu0 %v9134_v4  ;;  %v1084_v33 = vmul.f32 %v8692_v11, %v9419_v35 }
 0x31c   : > { %v8696_v14 = vpop.eup %8695  ;;  %v1290_v34 = vpop.xlane.xlu1 %1289  ;;  %8703 = vrcp.f32 %v1287_v30  ;;  %v863_v23 = vmul.f32 %v8694_v19, %v9411_v26 }
 0x31d   : > { %8705 = vrcp.f32 %v1078_v29  ;;  %7665 = vmatmul.mubr.msk.f32.gmra.mrb[14].mxu0 %vm808_vm8, %v862_v32  ;;  %7684 = vmatmul.mubr.msk.f32.vlgmr.msra.gmra.mrb[2].mxu1 %vm808_vm8, %v1084_v33  ;;  %v1085_v35 = vmul.f32 %v8696_v14, %v9421_v42 }
 0x31e   : > { %8707 = vrcp.f32 %v1290_v34  ;;  %7707 = vmatpush3.msk.msra.mxu0 %vm880_vm5, %v9279_v31  ;;  %7667 = vmatprep.mubr.msk.f32.mxu0 %vm9133_vm0, %v9134_v4  ;;  %v8698_v28 = vpop.eup %8697 }
 0x31f   : > { %v1293_v36 = vpop.xlane.xlu0 %1292  ;;  %7686 = vmatprep.mubr.msk.f32.mxu1 %vm9133_vm0, %v9134_v4  ;;  %v8700_v38 = vpop.eup %8699  ;;  %v864_v43 = vmul.f32 %v8698_v28, %v9429_v50 }
 0x320   : > { %8709 = vrcp.f32 %v1293_v36  ;;  %v1296_v31 = vpop.xlane.xlu1 %1295  ;;  %v1086_v44 = vmul.f32 %v8700_v38, %v9431_v53 }
 0x321   : > { %7668 = vmatmul.mubr.msk.f32.gmra.mrb[16].mxu0 %vm808_vm8, %v863_v23  ;;  %7687 = vmatmul.mubr.msk.f32.gmra.mrb[4].mxu1 %vm808_vm8, %v1085_v35  ;;  %8711 = vrcp.f32 %v1296_v31 }
 0x322   : > { %7670 = vmatprep.mubr.msk.f32.mxu0 %vm9133_vm0, %v9134_v4  ;;  %7689 = vmatprep.mubr.msk.f32.mxu1 %vm9133_vm0, %v9134_v4  ;;  %v8702_v26 = vpop.eup %8701 }
 0x323   : > { %v1299_v41 = vpop.xlane.xlu0 %1298  ;;  %v1087_v48 = vmul.f32 %v8702_v26, %v9438_v56 }
 0x324   : > { %8713 = vrcp.f32 %v1299_v41 }
 0x325   : > { %7671 = vmatmul.mubr.msk.f32.gmra.mrb[18].mxu0 %vm808_vm8, %v864_v43  ;;  %7690 = vmatmul.mubr.msk.f32.gmra.mrb[6].mxu1 %vm808_vm8, %v1086_v44 }
 0x326   : > { %v8704_v42 = vpop.eup %8703  ;;  %7692 = vmatprep.mubr.msk.f32.mxu1 %vm9133_vm0, %v9134_v4  ;;  %7708 = vmatprep.mubr.msk.f32.mxu0 %vm9133_vm0, %v9134_v4 }
 0x327   : > { %v8706_v47 = vpop.eup %8705  ;;  %v1305_v39 = vmul.f32 %v8704_v42, %v9446_v49  ;;  %v1481_v49 = vld [vmem:[%s10939_s9 + $0x18] sm:$0xff] }
 0x328   : > { %v8708_v50 = vpop.eup %8707  ;;  %v1088_v51 = vmul.f32 %v8706_v47, %v9440_v58  ;;  %v1479_v58 = vld [vmem:[%s10939_s9 + $0x8] sm:$0xff] }
 0x329   : > { %7693 = vmatmul.mubr.msk.f32.gmra.mrb[8].mxu1 %vm808_vm8, %v1087_v48  ;;  %7709 = vmatmul.mubr.msk.f32.vlgmr.msra.gmra.mrb[20].mxu0 %vm808_vm8, %v1305_v39  ;;  %v1306_v52 = vmul.f32 %v8708_v50, %v9448_v61  ;;  %v8254_v59 = vpack.c.bf16 %v1479_v58, %v1478_v57  ;;  %v8258_v61 = vpack.c.bf16 %v1481_v49, %v1480_v60 }
 0x32a   : > { %7695 = vmatprep.mubr.msk.f32.mxu1 %vm9133_vm0, %v9134_v4  ;;  %7711 = vmatprep.mubr.msk.f32.mxu0 %vm9133_vm0, %v9134_v4  ;;  %v8710_v53 = vpop.eup %8709 }
 0x32b   : > { %v1307_v54 = vmul.f32 %v8710_v53, %v9454_v3  ;;  %v8712_v55 = vpop.eup %8711  ;;  %8255 = vmatprep.subr.bf16.mxu1 %v8254_v59 }
 0x32c   : > { %v1308_v46 = vmul.f32 %v8712_v55, %v9456_v5  ;;  %8257 = vmatpush3.bf16.msra.mxu1 %v8254_v59 }
 0x32d   : > { %7696 = vmatmul.mubr.msk.f32.gmra.mrb[10].mxu1 %vm808_vm8, %v1088_v51  ;;  %7712 = vmatmul.mubr.msk.f32.gmra.mrb[22].mxu0 %vm808_vm8, %v1306_v52 }
 0x32e   : > { %7714 = vmatprep.mubr.msk.f32.mxu0 %vm9133_vm0, %v9134_v4  ;;  %v8714_v45 = vpop.eup %8713  ;;  %8259 = vmatprep.subr.bf16.mxu1 %v8258_v61 }
 0x32f   : > { %v1309_v56 = vmul.f32 %v8714_v45, %v9462_v6 }
 0x330   : > { %8261 = vmatpush3.bf16.msra.mxu1 %v8258_v61 }
 0x331   : > { %7715 = vmatmul.mubr.msk.f32.gmra.mrb[24].mxu0 %vm808_vm8, %v1307_v54 }
 0x332   : > { %7717 = vmatprep.mubr.msk.f32.mxu0 %vm9133_vm0, %v9134_v4 }
 0x335   : > { %7718 = vmatmul.mubr.msk.f32.gmra.mrb[26].mxu0 %vm808_vm8, %v1308_v46 }
 0x336   : > { %7720 = vmatprep.mubr.msk.f32.mxu0 %vm9133_vm0, %v9134_v4 }
 0x339   : > { %7721 = vmatmul.mubr.msk.f32.gmra.mrb[28].mxu0 %vm808_vm8, %v1309_v56 }
 0x3e8   : > { %v949_v0 = vpop.f32.mrb[10].mxu0 }
 0x3e9   : > { %v978_v1 = vmul.f32 1.442695, %v949_v0  ;;  %v7660_v3 = vpop.f32.mrb[11].mxu0  ;;  %vm973_vm8 = vcmp.gt.f32.partialorder %v949_v0, 0.0 }
 0x3eb   : > { %8715 = vpow2.f32 %v978_v1 }
 0x3ec   : > { %v954_v5 = vpop.f32.mrb[12].mxu0 }
 0x3ed   : > { %v980_v62 = vmul.f32 1.442695, %v954_v5  ;;  %v7663_v63 = vpop.f32.mrb[13].mxu0  ;;  %vm974_vm7 = vcmp.gt.f32.partialorder %v954_v5, 0.0 }
 0x3ef   : > { %8717 = vpow2.f32 %v980_v62 }
 0x3f0   : > { %v959_v6 = vpop.f32.mrb[14].mxu0  ;;  %v1170_v7 = vpop.f32.mrb[2].mxu1 }
 0x3f1   : > { %v982_v10 = vmul.f32 1.442695, %v959_v6  ;;  %v1199_v8 = vmul.f32 1.442695, %v1170_v7  ;;  %v7666_v9 = vpop.f32.mrb[15].mxu0  ;;  %v7685_v12 = vpop.f32.mrb[3].mxu1 }
 0x3f2   : > { %vm975_vm10 = vcmp.gt.f32.partialorder %v959_v6, 0.0  ;;  %vm1194_vm11 = vcmp.gt.f32.partialorder %v1170_v7, 0.0 }
 0x3f3   : > { %8719 = vpow2.f32 %v982_v10 }
 0x3f4   : > { %8721 = vpow2.f32 %v1199_v8  ;;  %v9540_v13 = vpop.f32.mrb[16].mxu0  ;;  %v9542_v15 = vpop.f32.mrb[4].mxu1 }
 0x3f5   : > { %v8716_v18 = vpop.eup %8715  ;;  %v984_v16 = vmul.f32 1.442695, %v9540_v13  ;;  %v1201_v20 = vmul.f32 1.442695, %v9542_v15  ;;  %v7669_v22 = vpop.f32.mrb[17].mxu0  ;;  %vm976_vm14 = vcmp.gt.f32.partialorder %v9540_v13, 0.0 }
 0x3f6   : > { %v7104_v21 = vadd.f32 -1.0, %v8716_v18  ;;  %v7688_v24 = vpop.f32.mrb[5].mxu1  ;;  %vm1195_vm15 = vcmp.gt.f32.partialorder %v9542_v15, 0.0 }
 0x3f7   : > { %8723 = vpow2.f32 %v984_v16 }
 0x3f8   : > { %v993_v25 = vsel %vm973_vm8, %v949_v0, %v7104_v21  ;;  %8725 = vpow2.f32 %v1201_v20  ;;  %v9546_v27 = vpop.f32.mrb[18].mxu0  ;;  %v9548_v29 = vpop.f32.mrb[6].mxu1 }
 0x3f9   : > { %v8718_v11 = vpop.eup %8717  ;;  %vm998_vm6 = vcmp.ne.f32.partialorder %v993_v25, %v993_v25  ;;  %v986_v19 = vmul.f32 1.442695, %v9546_v27  ;;  %v7672_v30 = vpop.f32.mrb[19].mxu0  ;;  %v1203_v34 = vmul.f32 1.442695, %v9548_v29  ;;  %vm977_vm1 = vcmp.gt.f32.partialorder %v9546_v27, 0.0 }
 0x3fa   : > { %v7691_v32 = vpop.f32.mrb[7].mxu1  ;;  %v1003_v33 = vsel %vm998_vm6, 0.0, %v993_v25  ;;  %v7105_v14 = vadd.f32 -1.0, %v8718_v11  ;;  %vm1196_vm6 = vcmp.gt.f32.partialorder %v9548_v29, 0.0 }
 0x3fb   : > { %v7109_v28 = vclamps-f32 %v1003_v33, 3.4028235e+38  ;;  %8727 = vpow2.f32 %v986_v19 }
 0x3fc   : > { %v994_v36 = vsel %vm974_vm7, %v954_v5, %v7105_v14  ;;  %8729 = vpow2.f32 %v1203_v34  ;;  %v9552_v23 = vpop.f32.mrb[8].mxu1  ;;  %v9554_v35 = vpop.f32.mrb[20].mxu0 }
 0x3fd   : > { %v8720_v38 = vpop.eup %8719  ;;  %vm999_vm9 = vcmp.ne.f32.partialorder %v994_v36, %v994_v36  ;;  %v1205_v31 = vmul.f32 1.442695, %v9552_v23  ;;  %v7694_v43 = vpop.f32.mrb[9].mxu1  ;;  %7731 = vmatprep.mubr.msk.f32.mxu1 %vm664_vm3, %v7109_v28  ;;  %v1420_v39 = vmul.f32 1.442695, %v9554_v35  ;;  %vm1197_vm7 = vcmp.gt.f32.partialorder %v9552_v23, 0.0 }
 0x3fe   : > { %v7710_v44 = vpop.f32.mrb[21].mxu0  ;;  %v8722_v26 = vpop.eup %8721  ;;  %v1004_v42 = vsel %vm999_vm9, 0.0, %v994_v36  ;;  %v7106_v47 = vadd.f32 -1.0, %v8720_v38 }
 0x3ff   : > { %v7110_v41 = vclamps-f32 %v1004_v42, 3.4028235e+38  ;;  %v7125_v48 = vadd.f32 -1.0, %v8722_v26  ;;  %8731 = vpow2.f32 %v1205_v31 }
 0x400   : > { %v995_v50 = vsel %vm975_vm10, %v959_v6, %v7106_v47  ;;  %8733 = vpow2.f32 %v1420_v39  ;;  %v9559_v51 = vpop.f32.mrb[10].mxu1  ;;  %v9561_v52 = vpop.f32.mrb[22].mxu0 }
 0x401   : > { %v8724_v53 = vpop.eup %8723  ;;  %vm1000_vm12 = vcmp.ne.f32.partialorder %v995_v50, %v995_v50  ;;  %v1214_v54 = vsel %vm1194_vm11, %v1170_v7, %v7125_v48  ;;  %v1207_v55 = vmul.f32 1.442695, %v9559_v51  ;;  %v7697_v46 = vpop.f32.mrb[11].mxu1  ;;  %7732 = vmatmul.mubr.msk.f32.vlgmr.msra.gmra.mrb[12].mxu1 %vm664_vm3, %v7110_v41  ;;  %v1422_v0 = vmul.f32 1.442695, %v9561_v52 }
 0x402   : > { %v7713_v45 = vpop.f32.mrb[23].mxu0  ;;  %v8726_v56 = vpop.eup %8725  ;;  %v1005_v57 = vsel %vm1000_vm12, 0.0, %v995_v50  ;;  %vm1219_vm13 = vcmp.ne.f32.partialorder %v1214_v54, %v1214_v54  ;;  %v7107_v58 = vadd.f32 -1.0, %v8724_v53  ;;  %vm1415_vm12 = vcmp.gt.f32.partialorder %v9554_v35, 0.0 }
 0x403   : > { %v7111_v59 = vclamps-f32 %v1005_v57, 3.4028235e+38  ;;  %v1224_v60 = vsel %vm1219_vm13, 0.0, %v1214_v54  ;;  %v7126_v49 = vadd.f32 -1.0, %v8726_v56  ;;  %8735 = vpow2.f32 %v1207_v55 }
 0x404   : > { %v996_v61 = vsel %vm976_vm14, %v9540_v13, %v7107_v58  ;;  %v9570_v1 = vpop.f32.mrb[24].mxu0  ;;  %v7130_v5 = vclamps-f32 %v1224_v60, 3.4028235e+38  ;;  %8737 = vpow2.f32 %v1422_v0  ;;  %vm1198_vm13 = vcmp.gt.f32.partialorder %v9559_v51, 0.0 }
 0x405   : > { %v8728_v3 = vpop.eup %8727  ;;  %vm1001_vm2 = vcmp.ne.f32.partialorder %v996_v61, %v996_v61  ;;  %v1215_v62 = vsel %vm1195_vm15, %v9542_v15, %v7126_v49  ;;  %v1424_v63 = vmul.f32 1.442695, %v9570_v1  ;;  %v7716_v6 = vpop.f32.mrb[25].mxu0  ;;  %7734 = vmatprep.mubr.msk.f32.mxu1 %vm664_vm3, %v7111_v59 }
 0x406   : > { %v8730_v7 = vpop.eup %8729  ;;  %v9575_v10 = vsel %vm1001_vm2, 0.0, %v996_v61  ;;  %vm1220_vm8 = vcmp.ne.f32.partialorder %v1215_v62, %v1215_v62  ;;  %v7108_v8 = vadd.f32 -1.0, %v8728_v3  ;;  %v1465_v21 = vrot.slane %v7130_v5, 4 }
 0x407   : > { %v7112_v9 = vclamps-f32 %v9575_v10, 3.4028235e+38  ;;  %v1225_v12 = vsel %vm1220_vm8, 0.0, %v1215_v62  ;;  %v7127_v13 = vadd.f32 -1.0, %v8730_v7  ;;  %8739 = vpow2.f32 %v1424_v63 }
 0x408   : > { %v7131_v18 = vclamps-f32 %v1225_v12, 3.4028235e+38  ;;  %v997_v15 = vsel %vm977_vm1, %v9546_v27, %v7108_v8  ;;  %v9583_v16 = vpop.f32.mrb[26].mxu0  ;;  %vm1416_vm1 = vcmp.gt.f32.partialorder %v9561_v52, 0.0  ;;  %vm1417_vm2 = vcmp.gt.f32.partialorder %v9570_v1, 0.0 }
 0x409   : > { %v8732_v20 = vpop.eup %8731  ;;  %vm1002_vm9 = vcmp.ne.f32.partialorder %v997_v15, %v997_v15  ;;  %v1216_v22 = vsel %vm1196_vm6, %v9548_v29, %v7127_v13  ;;  %v1426_v24 = vmul.f32 1.442695, %v9583_v16  ;;  %v7719_v25 = vpop.f32.mrb[27].mxu0  ;;  %7735 = vmatmul.mubr.msk.f32.gmra.mrb[14].mxu1 %vm664_vm3, %v7112_v9 }
 0x40a   : > { %v8734_v11 = vpop.eup %8733  ;;  %v1466_v19 = vrot.slane %v7131_v18, 4  ;;  %v1007_v27 = vsel %vm1002_vm9, 0.0, %v997_v15  ;;  %vm1221_vm10 = vcmp.ne.f32.partialorder %v1216_v22, %v1216_v22  ;;  %v7128_v30 = vadd.f32 -1.0, %v8732_v20  ;;  %v7156_v15 = vld [vmem:[%s10939_s9 + $0x20] ss:$0 sm:$0xff] }
 0x40b   : > { %v7113_v32 = vclamps-f32 %v1007_v27, 3.4028235e+38  ;;  %v1226_v33 = vsel %vm1221_vm10, 0.0, %v1216_v22  ;;  %v7146_v14 = vadd.f32 -1.0, %v8734_v11  ;;  %8741 = vpow2.f32 %v1426_v24 }
 0x40c   : > { %v7132_v34 = vclamps-f32 %v1226_v33, 3.4028235e+38  ;;  %v1217_v29 = vsel %vm1197_vm7, %v9552_v23, %v7128_v30  ;;  %v1411_v28 = vpop.f32.mrb[28].mxu0  ;;  %v1467_v36 = vsel %vm880_vm5, %v1465_v21, %v1466_v19  ;;  %vm1418_vm7 = vcmp.gt.f32.partialorder %v9583_v16, 0.0 }
 0x40d   : > { %v8736_v38 = vpop.eup %8735  ;;  %vm1222_vm11 = vcmp.ne.f32.partialorder %v1217_v29, %v1217_v29  ;;  %v1428_v31 = vmul.f32 1.442695, %v1411_v28  ;;  %v7722_v43 = vpop.f32.mrb[29].mxu0  ;;  %v1435_v42 = vsel %vm1415_vm12, %v9554_v35, %v7146_v14  ;;  %v9598_v23 = vsel %vm880_vm5, %v7113_v32, %v1465_v21 }
 0x40e   : > { %v1468_v44 = vrot.slane %v7132_v34, 4  ;;  %v1227_v26 = vsel %vm1222_vm11, 0.0, %v1217_v29  ;;  %v7129_v47 = vadd.f32 -1.0, %v8736_v38  ;;  %7737 = vmatprep.mubr.msk.f32.mxu1 %vm664_vm3, %v9598_v23  ;;  %v8738_v50 = vpop.eup %8737  ;;  %vm1440_vm14 = vcmp.ne.f32.partialorder %v1435_v42, %v1435_v42 }
 0x40f   : > { %v7133_v39 = vclamps-f32 %v1227_v26, 3.4028235e+38  ;;  %8743 = vpow2.f32 %v1428_v31  ;;  %7738 = vmatmul.mubr.msk.f32.gmra.mrb[16].mxu1 %vm664_vm3, %v1467_v36  ;;  %v7147_v55 = vadd.f32 -1.0, %v8738_v50  ;;  %v1445_v56 = vsel %vm1440_vm14, 0.0, %v1435_v42 }
 0x410   : > { %v1218_v41 = vsel %vm1198_vm13, %v9559_v51, %v7129_v47  ;;  %v1469_v48 = vsel %vm880_vm5, %v1466_v19, %v1468_v44  ;;  %v7151_v0 = vclamps-f32 %v1445_v56, 3.4028235e+38  ;;  %vm1419_vm10 = vcmp.gt.f32.partialorder %v1411_v28, 0.0 }
 0x411   : > { %v1470_v53 = vrot.slane %v7133_v39, 4  ;;  %vm1223_vm15 = vcmp.ne.f32.partialorder %v1218_v41, %v1218_v41  ;;  %v8740_v35 = vpop.eup %8739  ;;  %7740 = vmatprep.mubr.msk.f32.mxu1 %vm664_vm3, %v1469_v48  ;;  %v1436_v57 = vsel %vm1416_vm1, %v9561_v52, %v7147_v55  ;;  %vm1917_vm12 = vcmask 883712  }
 0x412   : > { %v1228_v54 = vsel %vm1223_vm15, 0.0, %v1218_v41  ;;  %v7148_v51 = vadd.f32 -1.0, %v8740_v35  ;;  %vm1441_vm8 = vcmp.ne.f32.partialorder %v1436_v57, %v1436_v57  ;;  %vm1957_vm13 = vcmask 879616  }
 0x413   : > { %v7134_v46 = vclamps-f32 %v1228_v54, 3.4028235e+38  ;;  %v9608_v45 = vsel %vm880_vm5, %v1468_v44, %v1470_v53  ;;  %v1446_v49 = vsel %vm1441_vm8, 0.0, %v1436_v57  ;;  %vm9137_vm14 = vmmov 1  }
 0x414   : > { %v1437_v60 = vsel %vm1417_vm2, %v9570_v1, %v7148_v51  ;;  %7741 = vmatmul.mubr.msk.f32.gmra.mrb[18].mxu1 %vm664_vm3, %v9608_v45  ;;  %v7152_v52 = vclamps-f32 %v1446_v49, 3.4028235e+38  ;;  %vm9892_vm15 = vmpackc.low %vm880_vm5, %vm9137_vm14  ;;  %vm2786_vm1 = vcmask 97280   ;;  %vm2882_vm2 = vcmask 31744  }
 0x415   : > { %v8742_v58 = vpop.eup %8741  ;;  %v1472_v59 = vrot.slane %v7134_v46, 4  ;;  %vm1442_vm6 = vcmp.ne.f32.partialorder %v1437_v60, %v1437_v60  ;;  %vm3596_vm8 = vcmask 146432  }
 0x416   : > { %v7149_v61 = vadd.f32 -1.0, %v8742_v58  ;;  %v1447_v5 = vsel %vm1442_vm6, 0.0, %v1437_v60  ;;  %vm4157_vm6 = vcmask 1044480  }
 0x417   : > { %v9617_v3 = vsel %vm880_vm5, %v1470_v53, %v1472_v59  ;;  %v7153_v7 = vclamps-f32 %v1447_v5, 3.4028235e+38 }
 0x418   : > { %v1438_v62 = vsel %vm1418_vm7, %v9583_v16, %v7149_v61  ;;  %7743 = vmatprep.mubr.msk.f32.mxu1 %vm664_vm3, %v9617_v3  ;;  %vm4140_vm7 = vcmask 39936  }
 0x419   : > { %v8744_v1 = vpop.eup %8743  ;;  %vm1443_vm9 = vcmp.ne.f32.partialorder %v1438_v62, %v1438_v62  ;;  %7744 = vmatmul.mubr.msk.f32.gmra.mrb[20].mxu1 %vm664_vm3, %v7151_v0 }
 0x41a   : > { %v9623_v63 = vsel %vm1443_vm9, 0.0, %v1438_v62  ;;  %v7150_v6 = vadd.f32 -1.0, %v8744_v1  ;;  %7746 = vmatprep.mubr.msk.f32.mxu1 %vm664_vm3, %v7152_v52  ;;  %vm6416_vm9 = vcmask 523264  }
 0x41b   : > { %v7154_v8 = vclamps-f32 %v9623_v63, 3.4028235e+38  ;;  %v2784_v63 = vld [vmem:[%s10005_s28] sm:$0xff] }
 0x41c   : > { %v1439_v12 = vsel %vm1419_vm10, %v1411_v28, %v7150_v6  ;;  %vm6012_vm10 = vcmask 154624  }
 0x41d   : > { %vm1444_vm11 = vcmp.ne.f32.partialorder %v1439_v12, %v1439_v12  ;;  %7747 = vmatmul.mubr.msk.f32.gmra.mrb[22].mxu1 %vm664_vm3, %v7153_v7 }
 0x41e   : > { %v9628_v13 = vsel %vm1444_vm11, 0.0, %v1439_v12  ;;  %7749 = vmatprep.mubr.msk.f32.mxu1 %vm664_vm3, %v7154_v8  ;;  %vm6019_vm11 = vcmask 1042432  }
 0x41f   : > { %v7155_v18 = vclamps-f32 %v9628_v13, 3.4028235e+38  ;;  %v2873_v13 = vld [vmem:[%s10938_s8 + $0x10] sm:$0xff] }
 0x421   : > { %7750 = vmatmul.mubr.msk.f32.gmra.mrb[24].mxu1 %vm664_vm3, %v7155_v18 }
 0x4d4   : > { %v7733_v16 = vpop.f32.mrb[12].mxu1 }
 0x4d5   : > { %v9640_v20 = vadd.f32 %v7733_v16, %v7156_v15  ;;  %v1601_v21 = vpop.f32.mrb[13].mxu1 }
 0x4d6   : > { %v1602_v22 = vadd.f32 %v7156_v15, %v1601_v21 }
 0x4d8   : > { %7780 = vmatprep.mubr.msk.f32.mxu0 %vm664_vm3, %v1602_v22  ;;  %v8577_v24 = vpack.i.bf16 %v9640_v20, %v1602_v22 }
 0x4da   : > { %8578 = vrot.lane.b32.xlu1 %v8577_v24, %s9135_s17 }
 0x4dc   : > { %v7736_v25 = vpop.f32.mrb[14].mxu1 }
 0x4dd   : > { %v9645_v11 = vadd.f32 %v7736_v25, %v7156_v15  ;;  %v1611_v19 = vpop.f32.mrb[15].mxu1 }
 0x4de   : > { %v9647_v27 = vadd.f32 %v7156_v15, %v1611_v19 }
 0x4e0   : > { %v8582_v30 = vpack.i.bf16 %v9645_v11, %v9647_v27 }
 0x4e2   : > { %8583 = vrot.lane.b32.xlu0 %v8582_v30, %s9135_s17  ;;  %v7739_v32 = vpop.f32.mrb[16].mxu1 }
 0x4e3   : > { %v9652_v33 = vadd.f32 %v7739_v32, %v7156_v15  ;;  %v1621_v14 = vpop.f32.mrb[17].mxu1 }
 0x4e4   : > { %v9654_v34 = vadd.f32 %v7156_v15, %v1621_v14 }
 0x4e6   : > { %v8587_v28 = vpack.i.bf16 %v9652_v33, %v9654_v34 }
 0x4e7   : > { %v7742_v29 = vpop.f32.mrb[18].mxu1 }
 0x4e8   : > { %v9658_v36 = vadd.f32 %v7742_v29, %v7156_v15  ;;  %v1631_v38 = vpop.f32.mrb[19].mxu1  ;;  %8588 = vrot.lane.b32.xlu1 %v8587_v28, %s9135_s17 }
 0x4e9   : > { %v9660_v31 = vadd.f32 %v7156_v15, %v1631_v38 }
 0x4eb   : > { %v9665_v44 = vpack.i.bf16 %v9658_v36, %v9660_v31 }
 0x4ec   : > { %v7745_v43 = vpop.f32.mrb[20].mxu1 }
 0x4ed   : > { %v9667_v26 = vadd.f32 %v7745_v43, %v7156_v15  ;;  %v1641_v42 = vpop.f32.mrb[21].mxu1  ;;  %8593 = vrot.lane.b32.xlu1 %v9665_v44, %s9135_s17 }
 0x4ee   : > { %v9671_v47 = vadd.f32 %v7156_v15, %v1641_v42 }
 0x4f0   : > { %v7748_v39 = vpop.f32.mrb[22].mxu1  ;;  %v9675_v41 = vpack.i.bf16 %v9667_v26, %v9671_v47 }
 0x4f1   : > { %v9677_v48 = vadd.f32 %v7748_v39, %v7156_v15  ;;  %v1651_v50 = vpop.f32.mrb[23].mxu1 }
 0x4f2   : > { %v9679_v53 = vadd.f32 %v7156_v15, %v1651_v50  ;;  %8598 = vrot.lane.b32.xlu1 %v9675_v41, %s9135_s17 }
 0x4f4   : > { %v7751_v35 = vpop.f32.mrb[24].mxu1  ;;  %v9685_v54 = vpack.i.bf16 %v9677_v48, %v9679_v53 }
 0x4f5   : > { %v9687_v55 = vadd.f32 %v7751_v35, %v7156_v15  ;;  %v1661_v46 = vpop.f32.mrb[25].mxu1 }
 0x4f6   : > { %v9689_v51 = vadd.f32 %v7156_v15, %v1661_v46  ;;  %8603 = vrot.lane.b32.xlu0 %v9685_v54, %s9135_s17 }
 0x4f8   : > { %v9695_v56 = vpack.i.bf16 %v9687_v55, %v9689_v51 }
 0x4fa   : > { %8613 = vrot.lane.b32.xlu0 %v8577_v24, %s9136_s18  ;;  %8608 = vrot.lane.b32.xlu1 %v9695_v56, %s9135_s17 }
 0x4fe   : > { %8623 = vrot.lane.b32.xlu0 %v8587_v28, %s9136_s18  ;;  %8618 = vrot.lane.b32.xlu1 %v8582_v30, %s9136_s18 }
 0x54c   : > { %v8579_v57 = vpop.permute.xlu1 %8578 }
 0x54d   : > { %v8581_v58 = vunpack.i.h.bf16 %v8579_v57  ;;  %v8580_v59 = vunpack.i.l.bf16 %v8579_v57 }
 0x54f   : > { %v8262_v60 = vpack.c.bf16 %v8581_v58, %v8580_v59 }
 0x551   : > { %8264 = vmatprep.subr.msk.bf16.mxu0 %vm9258_vm4, %v8262_v60 }
 0x552   : > { %8267 = vmatpush3.bf16.xpose.msk.msra.mxu0 %vm9258_vm4, %v8262_v60 }
 0x554   : > { %v8584_v49 = vpop.permute.xlu0 %8583 }
 0x555   : > { %v8586_v61 = vunpack.i.h.bf16 %v8584_v49  ;;  %v8585_v0 = vunpack.i.l.bf16 %v8584_v49 }
 0x557   : > { %v8268_v52 = vpack.c.bf16 %v8586_v61, %v8585_v0 }
 0x559   : > { %8270 = vmatprep.subr.msk.bf16.mxu0 %vm9258_vm4, %v8268_v52 }
 0x55a   : > { %8273 = vmatpush3.bf16.xpose.msk.msra.mxu0 %vm9258_vm4, %v8268_v52  ;;  %v8589_v5 = vpop.permute.xlu1 %8588 }
 0x55b   : > { %v8591_v62 = vunpack.i.h.bf16 %v8589_v5  ;;  %v8590_v1 = vunpack.i.l.bf16 %v8589_v5 }
 0x55d   : > { %v8274_v6 = vpack.c.bf16 %v8591_v62, %v8590_v1 }
 0x55f   : > { %v8594_v7 = vpop.permute.xlu1 %8593  ;;  %8276 = vmatprep.subr.msk.bf16.mxu0 %vm9258_vm4, %v8274_v6 }
 0x560   : > { %v8596_v12 = vunpack.i.h.bf16 %v8594_v7  ;;  %v8595_v15 = vunpack.i.l.bf16 %v8594_v7 }
 0x562   : > { %8279 = vmatpush3.bf16.xpose.msk.msra.mxu0 %vm9258_vm4, %v8274_v6  ;;  %v8280_v16 = vpack.c.bf16 %v8596_v12, %v8595_v15 }
 0x564   : > { %v8599_v21 = vpop.permute.xlu1 %8598  ;;  %8282 = vmatprep.subr.msk.bf16.mxu0 %vm9258_vm4, %v8280_v16 }
 0x565   : > { %v8601_v22 = vunpack.i.h.bf16 %v8599_v21  ;;  %v8600_v24 = vunpack.i.l.bf16 %v8599_v21 }
 0x567   : > { %v8286_v19 = vpack.c.bf16 %v8601_v22, %v8600_v24 }
 0x568   : > { %v8604_v25 = vpop.permute.xlu0 %8603 }
 0x569   : > { %v8606_v30 = vunpack.i.h.bf16 %v8604_v25  ;;  %v8605_v32 = vunpack.i.l.bf16 %v8604_v25 }
 0x56a   : > { %8285 = vmatpush3.bf16.xpose.msk.msra.mxu0 %vm9258_vm4, %v8280_v16 }
 0x56b   : > { %8288 = vmatprep.subr.msk.bf16.mxu0 %vm9258_vm4, %v8286_v19  ;;  %v8292_v42 = vpack.c.bf16 %v8606_v30, %v8605_v32 }
 0x56c   : > { %v8614_v14 = vpop.permute.xlu0 %8613  ;;  %v8609_v29 = vpop.permute.xlu1 %8608 }
 0x56d   : > { %v8616_v28 = vunpack.i.h.bf16 %v8614_v14  ;;  %v8615_v38 = vunpack.i.l.bf16 %v8614_v14  ;;  %v8611_v60 = vunpack.i.h.bf16 %v8609_v29  ;;  %v8610_v49 = vunpack.i.l.bf16 %v8609_v29 }
 0x56f   : > { %v8304_v43 = vpack.c.bf16 %v8616_v28, %v8615_v38  ;;  %v8298_v0 = vpack.c.bf16 %v8611_v60, %v8610_v49 }
 0x570   : > { %v8624_v39 = vpop.permute.xlu0 %8623  ;;  %v8619_v50 = vpop.permute.xlu1 %8618 }
 0x571   : > { %v8626_v35 = vunpack.i.h.bf16 %v8624_v39  ;;  %v8625_v46 = vunpack.i.l.bf16 %v8624_v39  ;;  %v8621_v57 = vunpack.i.h.bf16 %v8619_v50  ;;  %v8620_v58 = vunpack.i.l.bf16 %v8619_v50  ;;  %8305 = vmatprep.subr.bf16.mxu1 %v8304_v43 }
 0x572   : > { %8291 = vmatpush3.bf16.xpose.msk.msra.mxu0 %vm9258_vm4, %v8286_v19  ;;  %8307 = vmatpush3.bf16.msra.mxu1 %v8304_v43 }
 0x573   : > { %8294 = vmatprep.subr.msk.bf16.mxu0 %vm9258_vm4, %v8292_v42  ;;  %v8308_v59 = vpack.c.bf16 %v8621_v57, %v8620_v58  ;;  %v8312_v61 = vpack.c.bf16 %v8626_v35, %v8625_v46 }
 0x575   : > { %8309 = vmatprep.subr.bf16.mxu1 %v8308_v59 }
 0x576   : > { %8311 = vmatpush3.bf16.msra.mxu1 %v8308_v59 }
 0x577   : > { %8313 = vmatprep.subr.bf16.mxu1 %v8312_v61 }
 0x57a   : > { %8297 = vmatpush3.bf16.xpose.msk.msra.mxu0 %vm9258_vm4, %v8292_v42  ;;  %8315 = vmatpush3.bf16.msra.mxu1 %v8312_v61 }
 0x57b   : > { %8300 = vmatprep.subr.msk.bf16.mxu0 %vm9258_vm4, %v8298_v0 }
 0x582   : > { %8303 = vmatpush3.bf16.xpose.msk.msra.mxu0 %vm9258_vm4, %v8298_v0 }
 0x589   : > { %7781 = vmatmul.mubr.msk.f32.vlgmr.msra.gmra.mrb[30].mxu0 %vm664_vm3, %v9640_v20 }
 0x58a   : > { %7783 = vmatprep.mubr.msk.f32.mxu0 %vm664_vm3, %v9647_v27 }
 0x58d   : > { %7784 = vmatmul.mubr.msk.f32.gmra.mrb[32].mxu0 %vm664_vm3, %v9645_v11 }
 0x58e   : > { %7786 = vmatprep.mubr.msk.f32.mxu0 %vm664_vm3, %v9654_v34 }
 0x591   : > { %7787 = vmatmul.mubr.msk.f32.gmra.mrb[34].mxu0 %vm664_vm3, %v9652_v33 }
 0x592   : > { %7789 = vmatprep.mubr.msk.f32.mxu0 %vm664_vm3, %v9660_v31 }
 0x595   : > { %7790 = vmatmul.mubr.msk.f32.gmra.mrb[36].mxu0 %vm664_vm3, %v9658_v36 }
 0x596   : > { %7792 = vmatprep.mubr.msk.f32.mxu0 %vm664_vm3, %v9671_v47 }
 0x599   : > { %7793 = vmatmul.mubr.msk.f32.gmra.mrb[38].mxu0 %vm664_vm3, %v9667_v26 }
 0x59a   : > { %7795 = vmatprep.mubr.msk.f32.mxu0 %vm664_vm3, %v9679_v53 }
 0x59d   : > { %7796 = vmatmul.mubr.msk.f32.gmra.mrb[40].mxu0 %vm664_vm3, %v9677_v48 }
 0x59e   : > { %7798 = vmatprep.mubr.msk.f32.mxu0 %vm664_vm3, %v9689_v51 }
 0x5a1   : > { %7799 = vmatmul.mubr.msk.f32.gmra.mrb[42].mxu0 %vm664_vm3, %v9687_v55 }
 0x65c   : > { %v7782_v20 = vpop.f32.mrb[30].mxu0 }
 0x65d   : > { %v1904_v11 = vmul.f32 0.17677669, %v7782_v20  ;;  %v1834_v27 = vpop.f32.mrb[31].mxu0 }
 0x65e   : > { %v1903_v33 = vmul.f32 0.17677669, %v1834_v27 }
 0x65f   : > { %v1921_v34 = vsel %vm1917_vm12, %v1904_v11, -inf }
 0x660   : > { %1922 = vmax.xlane.f32.xlu1 %v1921_v34  ;;  %v7785_v36 = vpop.f32.mrb[32].mxu0  ;;  %v1918_v31 = vsel %vm1917_vm12, %v1903_v33, -inf }
 0x661   : > { %v9758_v26 = vmul.f32 0.17677669, %v7785_v36  ;;  %1919 = vmax.xlane.f32.xlu0 %v1918_v31  ;;  %v1844_v47 = vpop.f32.mrb[33].mxu0 }
 0x662   : > { %v9762_v53 = vmul.f32 0.17677669, %v1844_v47 }
 0x663   : > { %v1927_v48 = vsel %vm1917_vm12, %v9758_v26, -inf }
 0x664   : > { %v7788_v55 = vpop.f32.mrb[34].mxu0  ;;  %v1924_v62 = vsel %vm1917_vm12, %v9762_v53, -inf }
 0x665   : > { %1928 = vmax.xlane.f32.xlu0 %v1927_v48  ;;  %v1854_v51 = vpop.f32.mrb[35].mxu0 }
 0x666   : > { %v9764_v52 = vmul.f32 0.17677669, %v1854_v51 }
 0x668   : > { %v7791_v5 = vpop.f32.mrb[36].mxu0  ;;  %v1930_v12 = vsel %vm1917_vm12, %v9764_v52, -inf }
 0x669   : > { %1925 = vmax.xlane.f32.xlu0 %v1924_v62  ;;  %v1864_v1 = vpop.f32.mrb[37].mxu0  ;;  %v9792_v38 = vmul.f32 0.17677669, %v7791_v5 }
 0x66a   : > { %v9768_v6 = vmul.f32 0.17677669, %v1864_v1 }
 0x66b   : > { %v1939_v39 = vsel %vm1917_vm12, %v9792_v38, -inf }
 0x66c   : > { %v7794_v7 = vpop.f32.mrb[38].mxu0  ;;  %v1936_v22 = vsel %vm1917_vm12, %v9768_v6, -inf }
 0x66d   : > { %1931 = vmax.xlane.f32.xlu0 %v1930_v12  ;;  %v1874_v15 = vpop.f32.mrb[39].mxu0  ;;  %v9796_v42 = vmul.f32 0.17677669, %v7794_v7 }
 0x66e   : > { %v9772_v16 = vmul.f32 0.17677669, %v1874_v15 }
 0x66f   : > { %v1945_v35 = vsel %vm1917_vm12, %v9796_v42, -inf }
 0x670   : > { %v7797_v21 = vpop.f32.mrb[40].mxu0  ;;  %v1942_v30 = vsel %vm1917_vm12, %v9772_v16, -inf }
 0x671   : > { %8628 = vrot.lane.b32.xlu1 %v9665_v44, %s9136_s18  ;;  %1937 = vmax.xlane.f32.xlu0 %v1936_v22  ;;  %v1884_v24 = vpop.f32.mrb[41].mxu0  ;;  %v9788_v44 = vmul.f32 0.17677669, %v7788_v55  ;;  %v9800_v50 = vmul.f32 0.17677669, %v7797_v21 }
 0x672   : > { %v9778_v25 = vmul.f32 0.17677669, %v1884_v24 }
 0x673   : > { %v1933_v43 = vsel %vm1917_vm12, %v9788_v44, -inf }
 0x674   : > { %v7800_v19 = vpop.f32.mrb[42].mxu0  ;;  %v1948_v29 = vsel %vm1917_vm12, %v9778_v25, -inf }
 0x675   : > { %1943 = vmax.xlane.f32.xlu0 %v1942_v30  ;;  %v1894_v32 = vpop.f32.mrb[43].mxu0  ;;  %v9804_v46 = vmul.f32 0.17677669, %v7800_v19 }
 0x676   : > { %v9782_v14 = vmul.f32 0.17677669, %v1894_v32 }
 0x677   : > { %v1958_v57 = vsel %vm1957_vm13, %v9804_v46, -inf }
 0x678   : > { %v1954_v28 = vsel %vm1917_vm12, %v9782_v14, -inf }
 0x679   : > { %1949 = vmax.xlane.f32.xlu0 %v1948_v29 }
 0x67d   : > { %1955 = vmax.xlane.f32.xlu0 %v1954_v28 }
 0x693   : > { %8633 = vrot.lane.b32.xlu0 %v9675_v41, %s9136_s18  ;;  %v1951_v41 = vsel %vm1917_vm12, %v9800_v50, -inf }
 0x695   : > { %1934 = vmax.xlane.f32.xlu1 %v1933_v43 }
 0x699   : > { %1940 = vmax.xlane.f32.xlu1 %v1939_v39 }
 0x69d   : > { %1946 = vmax.xlane.f32.xlu1 %v1945_v35 }
 0x6a1   : > { %1952 = vmax.xlane.f32.xlu1 %v1951_v41 }
 0x6a5   : > { %1959 = vmax.xlane.f32.xlu1 %v1958_v57 }
 0x6ed   : > { %v1923_v58 = vpop.xlane.xlu1 %1922 }
 0x6ee   : > { %v1962_v59 = vsub.f32 %v1904_v11, %v1923_v58  ;;  %v1920_v60 = vpop.xlane.xlu0 %1919 }
 0x6ef   : > { %v1961_v49 = vsub.f32 %v1903_v33, %v1920_v60 }
 0x6f0   : > { %v1977_v61 = vmul.f32 1.442695, %v1962_v59 }
 0x6f1   : > { %v1975_v0 = vmul.f32 1.442695, %v1961_v49  ;;  %v8629_v20 = vpop.permute.xlu1 %8628 }
 0x6f2   : > { %8745 = vpow2.f32 %v1977_v61  ;;  %v8631_v27 = vunpack.i.h.bf16 %v8629_v20  ;;  %v8630_v34 = vunpack.i.l.bf16 %v8629_v20  ;;  %v1929_v36 = vpop.xlane.xlu0 %1928 }
 0x6f3   : > { %v1964_v31 = vsub.f32 %v9758_v26, %v1929_v36  ;;  %8747 = vpow2.f32 %v1975_v0 }
 0x6f4   : > { %v8316_v47 = vpack.c.bf16 %v8631_v27, %v8630_v34 }
 0x6f5   : > { %v1981_v48 = vmul.f32 1.442695, %v1964_v31 }
 0x6f6   : > { %8317 = vmatprep.subr.bf16.mxu1 %v8316_v47  ;;  %v1926_v55 = vpop.xlane.xlu0 %1925 }
 0x6f7   : > { %v1963_v51 = vsub.f32 %v9762_v53, %v1926_v55  ;;  %8319 = vmatpush3.bf16.msra.mxu1 %v8316_v47  ;;  %8749 = vpow2.f32 %v1981_v48 }
 0x6f9   : > { %v1979_v11 = vmul.f32 1.442695, %v1963_v51 }
 0x6fa   : > { %v1932_v33 = vpop.xlane.xlu0 %1931 }
 0x6fb   : > { %8751 = vpow2.f32 %v1979_v11  ;;  %v1965_v41 = vsub.f32 %v9764_v52, %v1932_v33 }
 0x6fc   : > { %v9812_v5 = vpop.eup %8745 }
 0x6fd   : > { %v2006_v62 = vsel %vm1917_vm12, %v9812_v5, 0.0  ;;  %v9816_v1 = vpop.eup %8747  ;;  %v1983_v59 = vmul.f32 1.442695, %v1965_v41 }
 0x6fe   : > { %v1938_v26 = vpop.xlane.xlu0 %1937  ;;  %2007 = vadd.xlane.f32.xlu1 %v2006_v62  ;;  %v2003_v53 = vsel %vm1917_vm12, %v9816_v1, 0.0 }
 0x6ff   : > { %v1967_v7 = vsub.f32 %v9768_v6, %v1938_v26 }
 0x701   : > { %v1987_v12 = vmul.f32 1.442695, %v1967_v7  ;;  %v9821_v15 = vpop.eup %8749 }
 0x702   : > { %v1944_v21 = vpop.xlane.xlu0 %1943  ;;  %2004 = vadd.xlane.f32.xlu1 %v2003_v53  ;;  %v2012_v24 = vsel %vm1917_vm12, %v9821_v15, 0.0 }
 0x703   : > { %8753 = vpow2.f32 %v1987_v12  ;;  %v1969_v26 = vsub.f32 %v9772_v16, %v1944_v21 }
 0x705   : > { %v9823_v22 = vpop.eup %8751  ;;  %v1991_v12 = vmul.f32 1.442695, %v1969_v26 }
 0x706   : > { %v1950_v19 = vpop.xlane.xlu0 %1949  ;;  %2013 = vadd.xlane.f32.xlu1 %v2012_v24  ;;  %v2009_v30 = vsel %vm1917_vm12, %v9823_v22, 0.0 }
 0x707   : > { %2010 = vadd.xlane.f32.xlu0 %v2009_v30  ;;  %v1971_v53 = vsub.f32 %v9778_v25, %v1950_v19 }
 0x709   : > { %v1995_v24 = vmul.f32 1.442695, %v1971_v53 }
 0x70a   : > { %v1956_v6 = vpop.xlane.xlu0 %1955 }
 0x70b   : > { %v1973_v30 = vsub.f32 %v9782_v14, %v1956_v6 }
 0x70d   : > { %v9829_v32 = vpop.eup %8753 }
 0x70e   : > { %v8634_v29 = vpop.permute.xlu0 %8633  ;;  %v2021_v28 = vsel %vm1917_vm12, %v9829_v32, 0.0 }
 0x70f   : > { %v8636_v43 = vunpack.i.h.bf16 %v8634_v29  ;;  %v8635_v39 = vunpack.i.l.bf16 %v8634_v29  ;;  %2022 = vadd.xlane.f32.xlu0 %v2021_v28  ;;  %v1999_v29 = vmul.f32 1.442695, %v1973_v30 }
 0x711   : > { %v8320_v35 = vpack.c.bf16 %v8636_v43, %v8635_v39 }
 0x713   : > { %8321 = vmatprep.subr.bf16.mxu1 %v8320_v35 }
 0x714   : > { %8323 = vmatpush3.bf16.msra.mxu1 %v8320_v35 }
 0x722   : > { %v1935_v57 = vpop.xlane.xlu1 %1934 }
 0x723   : > { %v1966_v58 = vsub.f32 %v9788_v44, %v1935_v57 }
 0x725   : > { %v1985_v60 = vmul.f32 1.442695, %v1966_v58  ;;  %8638 = vrot.lane.b32.xlu0 %v9685_v54, %s9136_s18 }
 0x726   : > { %v1941_v49 = vpop.xlane.xlu1 %1940 }
 0x727   : > { %8755 = vpow2.f32 %v1985_v60  ;;  %v1968_v61 = vsub.f32 %v9792_v38, %v1941_v49 }
 0x728   : > { %8757 = vpow2.f32 %v1983_v59 }
 0x729   : > { %v1989_v0 = vmul.f32 1.442695, %v1968_v61 }
 0x72a   : > { %v1947_v20 = vpop.xlane.xlu1 %1946 }
 0x72b   : > { %8759 = vpow2.f32 %v1989_v0  ;;  %v1970_v62 = vsub.f32 %v9796_v42, %v1947_v20 }
 0x72d   : > { %v1993_v7 = vmul.f32 1.442695, %v1970_v62 }
 0x72e   : > { %v1953_v27 = vpop.xlane.xlu1 %1952 }
 0x72f   : > { %v1972_v34 = vsub.f32 %v9800_v50, %v1953_v27 }
 0x731   : > { %v9839_v52 = vpop.eup %8755  ;;  %v1997_v36 = vmul.f32 1.442695, %v1972_v34 }
 0x732   : > { %v1960_v44 = vpop.xlane.xlu1 %1959  ;;  %v2018_v31 = vsel %vm1917_vm12, %v9839_v52, 0.0  ;;  %v9843_v47 = vpop.eup %8757 }
 0x733   : > { %v1974_v54 = vsub.f32 %v9804_v46, %v1960_v44  ;;  %2019 = vadd.xlane.f32.xlu1 %v2018_v31  ;;  %8761 = vpow2.f32 %v1997_v36  ;;  %v2015_v48 = vsel %vm1917_vm12, %v9843_v47, 0.0  ;;  %v1484_v36 = vld [vmem:[%s10941_s11 + $0x30] sm:$0xff] }
 0x735   : > { %v2001_v38 = vmul.f32 1.442695, %v1974_v54  ;;  %v9848_v55 = vpop.eup %8759 }
 0x736   : > { %v2024_v50 = vsel %vm1917_vm12, %v9848_v55, 0.0 }
 0x737   : > { %2016 = vadd.xlane.f32.xlu1 %v2015_v48  ;;  %8763 = vpow2.f32 %v2001_v38 }
 0x738   : > { %8765 = vpow2.f32 %v1993_v7 }
 0x739   : > { %8767 = vpow2.f32 %v1991_v12 }
 0x73a   : > { %8769 = vpow2.f32 %v1995_v24 }
 0x73b   : > { %2025 = vadd.xlane.f32.xlu1 %v2024_v50  ;;  %8771 = vpow2.f32 %v1999_v29 }
 0x73d   : > { %v9852_v51 = vpop.eup %8761 }
 0x73e   : > { %v2036_v11 = vsel %vm1917_vm12, %v9852_v51, 0.0 }
 0x741   : > { %v9856_v46 = vpop.eup %8763 }
 0x742   : > { %v2042_v33 = vsel %vm1957_vm13, %v9856_v46, 0.0  ;;  %v9866_v28 = vpop.eup %8765  ;;  %vm6681_vm13 = vcmask 80896  }
 0x743   : > { %v9870_v42 = vpop.eup %8767 }
 0x744   : > { %2037 = vadd.xlane.f32.xlu0 %v2036_v11  ;;  %v2027_v16 = vsel %vm1917_vm12, %v9870_v42, 0.0  ;;  %v9874_v25 = vpop.eup %8769  ;;  %v1485_v11 = vld [vmem:[%s10941_s11 + $0x38] sm:$0xff] }
 0x745   : > { %v2033_v14 = vsel %vm1917_vm12, %v9874_v25, 0.0  ;;  %v9878_v21 = vpop.eup %8771 }
 0x746   : > { %v2039_v19 = vsel %vm1917_vm12, %v9878_v21, 0.0 }
 0x748   : > { %2043 = vadd.xlane.f32.xlu0 %v2042_v33  ;;  %v1486_v33 = vld [vmem:[%s10941_s11 + $0x40] sm:$0xff] }
 0x749   : > { %v8338_v7 = vpack.c.bf16 %v1486_v33, %v1485_v11  ;;  %v1489_v11 = vld [vmem:[%s10941_s11 + $0x58] sm:$0xff] }
 0x74c   : > { %8643 = vrot.lane.b32.xlu1 %v9695_v56, %s9136_s18  ;;  %v2030_v56 = vsel %vm1917_vm12, %v9866_v28, 0.0 }
 0x770   : > { %2031 = vadd.xlane.f32.xlu1 %v2030_v56 }
 0x774   : > { %2028 = vadd.xlane.f32.xlu1 %v2027_v16 }
 0x778   : > { %2034 = vadd.xlane.f32.xlu1 %v2033_v14 }
 0x77c   : > { %2040 = vadd.xlane.f32.xlu1 %v2039_v19 }
 0x78b   : > { %v2008_v6 = vpop.xlane.xlu1 %2007 }
 0x78f   : > { %v2005_v43 = vpop.xlane.xlu1 %2004 }
 0x790   : > { %8773 = vrcp.f32 %v2005_v43 }
 0x791   : > { %8775 = vrcp.f32 %v2008_v6 }
 0x793   : > { %v2014_v61 = vpop.xlane.xlu1 %2013 }
 0x794   : > { %v2011_v39 = vpop.xlane.xlu0 %2010 }
 0x795   : > { %8777 = vrcp.f32 %v2011_v39 }
 0x796   : > { %8779 = vrcp.f32 %v2014_v61 }
 0x79a   : > { %v8774_v35 = vpop.eup %8773 }
 0x79b   : > { %v2059_v41 = vmul.f32 %v8774_v35, %v9816_v1  ;;  %v1483_v1 = vld [vmem:[%s10941_s11 + $0x28] sm:$0xff]  ;;  %v8776_v50 = vpop.eup %8775 }
 0x79c   : > { %v2023_v57 = vpop.xlane.xlu0 %2022  ;;  %v8334_v48 = vpack.c.bf16 %v1484_v36, %v1483_v1  ;;  %v2060_v26 = vmul.f32 %v8776_v50, %v9812_v5  ;;  %v1488_v50 = vld [vmem:[%s10941_s11 + $0x50] sm:$0xff] }
 0x79d   : > { %7829 = vmatprep.mubr.msk.f32.mxu1 %vm1917_vm12, %v2059_v41  ;;  %v8342_v33 = vpack.c.bf16 %v1489_v11, %v1488_v50  ;;  %v7229_v11 = vld [vmem:[%s10941_s11 + $0x70] ss:$0 sm:$0xff] }
 0x79f   : > { %v8778_v62 = vpop.eup %8777  ;;  %8343 = vmatprep.subr.bf16.mxu0 %v8342_v33 }
 0x7a0   : > { %v8639_v58 = vpop.permute.xlu0 %8638  ;;  %v8780_v12 = vpop.eup %8779  ;;  %v2061_v53 = vmul.f32 %v8778_v62, %v9823_v22  ;;  %8345 = vmatpush3.bf16.msra.mxu0 %v8342_v33  ;;  %v1490_v62 = vld [vmem:[%s10941_s11 + $0x60] sm:$0xff] }
 0x7a1   : > { %v8641_v59 = vunpack.i.h.bf16 %v8639_v58  ;;  %v8640_v60 = vunpack.i.l.bf16 %v8639_v58  ;;  %v2062_v30 = vmul.f32 %v8780_v12, %v9821_v15 }
 0x7a3   : > { %v8324_v49 = vpack.c.bf16 %v8641_v59, %v8640_v60 }
 0x7a5   : > { %8325 = vmatprep.subr.bf16.mxu1 %v8324_v49 }
 0x7a6   : > { %8327 = vmatpush3.bf16.msra.mxu1 %v8324_v49 }
 0x7c0   : > { %v2020_v0 = vpop.xlane.xlu1 %2019 }
 0x7c4   : > { %v2017_v20 = vpop.xlane.xlu1 %2016 }
 0x7c5   : > { %8781 = vrcp.f32 %v2017_v20 }
 0x7c6   : > { %8783 = vrcp.f32 %v2020_v0 }
 0x7c7   : > { %8785 = vrcp.f32 %v2023_v57 }
 0x7c8   : > { %v2026_v27 = vpop.xlane.xlu1 %2025 }
 0x7c9   : > { %8787 = vrcp.f32 %v2026_v27 }
 0x7cc   : > { %v8644_v34 = vpop.permute.xlu1 %8643 }
 0x7cd   : > { %v8646_v44 = vunpack.i.h.bf16 %v8644_v34  ;;  %v8645_v31 = vunpack.i.l.bf16 %v8644_v34 }
 0x7cf   : > { %v8328_v38 = vpack.c.bf16 %v8646_v44, %v8645_v31  ;;  %v8782_v24 = vpop.eup %8781 }
 0x7d0   : > { %v8784_v29 = vpop.eup %8783  ;;  %v2063_v56 = vmul.f32 %v8782_v24, %v9843_v47  ;;  %v7214_v24 = vld [vmem:[%s10941_s11 + $0x48] ss:$0 sm:$0xff] }
 0x7d1   : > { %8330 = vmatprep.subr.msk.bf16.mxu1 %vm9892_vm15, %v8328_v38  ;;  %v8786_v16 = vpop.eup %8785  ;;  %v2064_v5 = vmul.f32 %v8784_v29, %v9839_v52  ;;  %v2038_v19 = vpop.xlane.xlu0 %2037 }
 0x7d2   : > { %8333 = vmatpush3.bf16.msk.msra.mxu1 %vm9892_vm15, %v8328_v38  ;;  %v2065_v14 = vmul.f32 %v8786_v16, %v9829_v32 }
 0x7d3   : > { %8335 = vmatprep.subr.bf16.mxu1 %v8334_v48  ;;  %v8788_v22 = vpop.eup %8787 }
 0x7d4   : > { %v2066_v15 = vmul.f32 %v8788_v22, %v9848_v55 }
 0x7d5   : > { %7830 = vmatmul.mubr.msk.f32.vlgmr.msra.gmra.mrb[26].mxu1 %vm1917_vm12, %v2060_v26  ;;  %v2044_v39 = vpop.xlane.xlu0 %2043  ;;  %v1491_v26 = vld [vmem:[%s10941_s11 + $0x68] sm:$0xff] }
 0x7d6   : > { %7832 = vmatprep.mubr.msk.f32.mxu1 %vm1917_vm12, %v2061_v53  ;;  %8337 = vmatpush3.bf16.msra.mxu1 %v8334_v48 }
 0x7d7   : > { %8339 = vmatprep.subr.bf16.mxu1 %v8338_v7 }
 0x7d9   : > { %7833 = vmatmul.mubr.msk.f32.gmra.mrb[28].mxu1 %vm1917_vm12, %v2062_v30 }
 0x7da   : > { %7835 = vmatprep.mubr.msk.f32.mxu1 %vm1917_vm12, %v2063_v56  ;;  %8341 = vmatpush3.bf16.msra.mxu1 %v8338_v7  ;;  %v8346_v7 = vpack.c.bf16 %v1491_v26, %v1490_v62 }
 0x7db   : > { %8351 = vmatprep.subr.bf16.mxu1 %v8342_v33 }
 0x7dc   : > { %8347 = vmatprep.subr.bf16.mxu0 %v8346_v7 }
 0x7dd   : > { %7836 = vmatmul.mubr.msk.f32.gmra.mrb[30].mxu1 %vm1917_vm12, %v2064_v5  ;;  %8349 = vmatpush3.bf16.msra.mxu0 %v8346_v7  ;;  %v2472_v5 = vmul.f32 0.2, %v7112_v9 }
 0x7de   : > { %7838 = vmatprep.mubr.msk.f32.mxu1 %vm1917_vm12, %v2065_v14  ;;  %8359 = vmatprep.subr.bf16.mxu0 %v8342_v33 }
 0x7e1   : > { %7839 = vmatmul.mubr.msk.f32.gmra.mrb[32].mxu1 %vm1917_vm12, %v2066_v15 }
 0x7fd   : > { %v2032_v47 = vpop.xlane.xlu1 %2031 }
 0x7fe   : > { %8789 = vrcp.f32 %v2032_v47 }
 0x801   : > { %v2029_v6 = vpop.xlane.xlu1 %2028 }
 0x802   : > { %8791 = vrcp.f32 %v2029_v6 }
 0x803   : > { %8793 = vrcp.f32 %v2038_v19  ;;  %v2473_v19 = vmul.f32 0.2, %v9598_v23 }
 0x805   : > { %v2035_v43 = vpop.xlane.xlu1 %2034 }
 0x806   : > { %8795 = vrcp.f32 %v2035_v43 }
 0x807   : > { %8797 = vrcp.f32 %v2044_v39 }
 0x808   : > { %v8790_v32 = vpop.eup %8789 }
 0x809   : > { %v2041_v52 = vpop.xlane.xlu1 %2040  ;;  %v2068_v55 = vmul.f32 %v8790_v32, %v9866_v28 }
 0x80a   : > { %8799 = vrcp.f32 %v2041_v52 }
 0x80c   : > { %v8792_v35 = vpop.eup %8791 }
 0x80d   : > { %v2067_v41 = vmul.f32 %v8792_v35, %v9870_v42  ;;  %v8794_v57 = vpop.eup %8793  ;;  %v2474_v35 = vmul.f32 0.2, %v9608_v45 }
 0x80e   : > { %v2070_v60 = vmul.f32 %v8794_v57, %v9852_v51  ;;  %v2475_v57 = vmul.f32 0.2, %v9617_v3  ;;  %v2477_v3 = vmul.f32 0.2, %v7155_v18  ;;  %v2871_v18 = vld [vmem:[%s10938_s8] sm:$0xf] }
 0x80f   : > { %7841 = vmatprep.mubr.msk.f32.mxu1 %vm1917_vm12, %v2067_v41 }
 0x810   : > { %v8796_v58 = vpop.eup %8795  ;;  %7842 = vmatmul.mubr.msk.f32.gmra.mrb[34].mxu1 %vm1917_vm12, %v2068_v55 }
 0x811   : > { %v2069_v59 = vmul.f32 %v8796_v58, %v9874_v25  ;;  %v8798_v49 = vpop.eup %8797 }
 0x812   : > { %v2072_v28 = vmul.f32 %v8798_v49, %v9856_v46 }
 0x813   : > { %7844 = vmatprep.mubr.msk.f32.mxu1 %vm1917_vm12, %v2069_v59 }
 0x814   : > { %v8800_v61 = vpop.eup %8799  ;;  %7845 = vmatmul.mubr.msk.f32.gmra.mrb[36].mxu1 %vm1917_vm12, %v2070_v60 }
 0x815   : > { %v2071_v42 = vmul.f32 %v8800_v61, %v9878_v21 }
 0x817   : > { %7847 = vmatprep.mubr.msk.f32.mxu1 %vm1917_vm12, %v2071_v42 }
 0x818   : > { %7848 = vmatmul.mubr.msk.f32.gmra.mrb[38].mxu1 %vm1917_vm12, %v2072_v28 }
 0x8a8   : > { %v7831_v0 = vpop.f32.mrb[26].mxu1 }
 0x8a9   : > { %v2224_v20 = vpop.f32.mrb[27].mxu1 }
 0x8aa   : > { %7858 = vmatprep.mubr.msk.f32.mxu1 %vm664_vm3, %v2224_v20 }
 0x8ab   : > { %7859 = vmatmul.mubr.msk.f32.vlgmr.msra.gmra.mrb[40].mxu1 %vm664_vm3, %v7831_v0 }
 0x8ac   : > { %v7834_v51 = vpop.f32.mrb[28].mxu1  ;;  %8353 = vmatpush3.bf16.msra.mxu1 %v8342_v33 }
 0x8ad   : > { %v2234_v25 = vpop.f32.mrb[29].mxu1  ;;  %8355 = vmatprep.subr.bf16.mxu1 %v8346_v7 }
 0x8ae   : > { %7861 = vmatprep.mubr.msk.f32.mxu1 %vm664_vm3, %v2234_v25 }
 0x8af   : > { %7862 = vmatmul.mubr.msk.f32.gmra.mrb[42].mxu1 %vm664_vm3, %v7834_v51 }
 0x8b0   : > { %v7837_v27 = vpop.f32.mrb[30].mxu1  ;;  %8357 = vmatpush3.bf16.msra.mxu1 %v8346_v7 }
 0x8b1   : > { %v2244_v21 = vpop.f32.mrb[31].mxu1 }
 0x8b2   : > { %7864 = vmatprep.mubr.msk.f32.mxu1 %vm664_vm3, %v2244_v21  ;;  %v2476_v21 = vmul.f32 0.2, %v7154_v8  ;;  %v2872_v8 = vld [vmem:[%s10938_s8 + $0x8] sm:$0xff] }
 0x8b3   : > { %7865 = vmatmul.mubr.msk.f32.gmra.mrb[44].mxu1 %vm664_vm3, %v7837_v27 }
 0x8b4   : > { %v7840_v46 = vpop.f32.mrb[32].mxu1 }
 0x8b5   : > { %v2254_v34 = vpop.f32.mrb[33].mxu1 }
 0x8b6   : > { %7867 = vmatprep.mubr.msk.f32.mxu1 %vm664_vm3, %v2254_v34 }
 0x8b7   : > { %7868 = vmatmul.mubr.msk.f32.gmra.mrb[46].mxu1 %vm664_vm3, %v7840_v46 }
 0x8e3   : > { %v7843_v1 = vpop.f32.mrb[34].mxu1 }
 0x8e4   : > { %v2264_v36 = vpop.f32.mrb[35].mxu1 }
 0x8e5   : > { %7870 = vmatprep.mubr.msk.f32.mxu1 %vm664_vm3, %v2264_v36  ;;  %v2877_v36 = vld [vmem:[%s515_s24] sm:$0x3f] }
 0x8e6   : > { %7871 = vmatmul.mubr.msk.f32.gmra.mrb[48].mxu1 %vm664_vm3, %v7843_v1  ;;  %v10024_v1 = vpack.c.bf16 %v2873_v13, %v2872_v8 }
 0x8e7   : > { %v7846_v44 = vpop.f32.mrb[36].mxu1 }
 0x8e8   : > { %v2274_v31 = vpop.f32.mrb[37].mxu1 }
 0x8e9   : > { %7873 = vmatprep.mubr.msk.f32.mxu1 %vm664_vm3, %v2274_v31  ;;  %v2875_v31 = vld [vmem:[%s10938_s8 + $0x20] sm:$0xff] }
 0x8ea   : > { %7874 = vmatmul.mubr.msk.f32.gmra.mrb[50].mxu1 %vm664_vm3, %v7846_v44  ;;  %v2874_v44 = vld [vmem:[%s10938_s8 + $0x18] sm:$0xff] }
 0x8eb   : > { %v7849_v38 = vpop.f32.mrb[38].mxu1 }
 0x8ec   : > { %v2284_v48 = vpop.f32.mrb[39].mxu1 }
 0x8ed   : > { %7876 = vmatprep.mubr.msk.f32.mxu1 %vm664_vm3, %v2284_v48 }
 0x8ee   : > { %7877 = vmatmul.mubr.msk.f32.gmra.mrb[52].mxu1 %vm664_vm3, %v7849_v38  ;;  %v10036_v38 = vpack.c.bf16 %v2875_v31, %v2874_v44 }
 0x97e   : > { %v7860_v12 = vpop.f32.mrb[40].mxu1 }
 0x97f   : > { %v2405_v53 = vpop.f32.mrb[41].mxu1 }
 0x982   : > { %v7863_v30 = vpop.f32.mrb[42].mxu1 }
 0x983   : > { %v2418_v29 = vadd.f32 %v7863_v30, %v7214_v24  ;;  %v2413_v56 = vpop.f32.mrb[43].mxu1 }
 0x985   : > { %v2466_v16 = vmul.f32 0.8, %v2418_v29 }
 0x986   : > { %v7866_v22 = vpop.f32.mrb[44].mxu1 }
 0x987   : > { %v9963_v14 = vadd.f32 %v2472_v5, %v2466_v16  ;;  %v2422_v15 = vpop.f32.mrb[45].mxu1 }
 0x988   : > { %v2423_v47 = vadd.f32 %v7214_v24, %v2422_v15 }
 0x989   : > { %7887 = vmatprep.mubr.msk.f32.mxu0 %vm664_vm3, %v9963_v14 }
 0x98a   : > { %v2467_v6 = vmul.f32 0.8, %v2423_v47  ;;  %v7869_v43 = vpop.f32.mrb[46].mxu1 }
 0x98b   : > { %v2436_v39 = vadd.f32 %v7869_v43, %v7214_v24  ;;  %v2431_v52 = vpop.f32.mrb[47].mxu1 }
 0x98c   : > { %v9968_v32 = vadd.f32 %v2473_v19, %v2467_v6 }
 0x98d   : > { %v2468_v10 = vmul.f32 0.8, %v2436_v39 }
 0x98e   : > { %7888 = vmatmul.mubr.msk.f32.vlgmr.msra.gmra.mrb[44].mxu0 %vm664_vm3, %v9968_v32 }
 0x98f   : > { %v2480_v9 = vadd.f32 %v2474_v35, %v2468_v10  ;;  %8361 = vmatpush3.bf16.msra.mxu0 %v8342_v33 }
 0x990   : > { %8363 = vmatprep.subr.bf16.mxu0 %v8346_v7 }
 0x991   : > { %v2587_v45 = vrot.slane %v2480_v9, 4 }
 0x993   : > { %8365 = vmatpush3.bf16.msra.mxu0 %v8346_v7 }
 0x994   : > { %7919 = vmatprep.subr.mxu0 %v9134_v4 }
 0x9b9   : > { %v7872_v41 = vpop.f32.mrb[48].mxu1 }
 0x9ba   : > { %v2440_v23 = vpop.f32.mrb[49].mxu1 }
 0x9bb   : > { %v2441_v55 = vadd.f32 %v7214_v24, %v2440_v23 }
 0x9bd   : > { %v2469_v58 = vmul.f32 0.8, %v2441_v55  ;;  %v7875_v59 = vpop.f32.mrb[50].mxu1 }
 0x9be   : > { %v2449_v60 = vpop.f32.mrb[51].mxu1 }
 0x9bf   : > { %v2481_v49 = vadd.f32 %v2475_v57, %v2469_v58 }
 0x9c1   : > { %v9975_v61 = vrot.slane %v2481_v49, 4  ;;  %v7878_v42 = vpop.f32.mrb[52].mxu1 }
 0x9c2   : > { %v2463_v28 = vadd.f32 %v7878_v42, %v7214_v24  ;;  %v2457_v0 = vpop.f32.mrb[53].mxu1 }
 0x9c3   : > { %v2458_v20 = vadd.f32 %v7214_v24, %v2457_v0  ;;  %v9979_v51 = vsel %vm880_vm5, %v2587_v45, %v9975_v61 }
 0x9c4   : > { %v2471_v25 = vmul.f32 0.8, %v2463_v28  ;;  %7898 = vmatprep.mubr.msk.f32.mxu1 %vm664_vm3, %v9979_v51 }
 0x9c5   : > { %v2470_v27 = vmul.f32 0.8, %v2458_v20  ;;  %7899 = vmatmul.mubr.msk.f32.vlgmr.msra.gmra.mrb[54].mxu1 %vm664_vm3, %v9975_v61 }
 0x9c6   : > { %v9989_v46 = vadd.f32 %v2477_v3, %v2471_v25  ;;  %7916 = vmatprep.mubr.msk.f32.mxu1 %vm2786_vm1, %v2784_v63 }
 0x9c7   : > { %v9991_v34 = vadd.f32 %v2476_v21, %v2470_v27 }
 0x9c9   : > { %7909 = vmatprep.mubr.msk.f32.mxu0 %vm664_vm3, %v9991_v34 }
 0x9ca   : > { %7910 = vmatmul.mubr.msk.f32.vlgmr.msra.gmra.mrb[46].mxu0 %vm664_vm3, %v9989_v46 }
 0x9cb   : > { %7921 = vmatprep.mubr.msk.f32.mxu0 %vm9133_vm0, %v9134_v4  ;;  %7920 = vmatpush3.msk.msra.mxu0 %vm880_vm5, %v2871_v18  ;;  %vm3600_vm5 = vcmask 1041408  }
 0x9cc   : > { %8378 = vmatprep.subr.bf16.mxu0 %v9132_v2  ;;  %vm8533_vm12 = vmpackc.low %vm3600_vm5, %vm9137_vm14 }
 0x9ce   : > { %7922 = vmatmul.mubr.msk.f32.vlgmr.msra.gmra.mrb[48].mxu0 %vm2882_vm2, %v2877_v36 }
 0x9cf   : > { %8380 = vmatpush3.bf16.msra.mxu0 %v10024_v1  ;;  %7943 = vmatprep.mubr.msk.f32.mxu0 %vm9133_vm0, %v9134_v4 }
 0x9d0   : > { %8381 = vmatprep.subr.bf16.mxu0 %v9132_v2 }
 0x9d3   : > { %8383 = vmatpush3.bf16.msra.mxu0 %v10036_v38 }
 0x9d4   : > { %8390 = vmatprep.subr.bf16.mxu0 %v9132_v2 }
 0xa61   : > { %v7889_v48 = vpop.f32.mrb[44].mxu0 }
 0xa62   : > { %v2560_v50 = vpop.f32.mrb[45].mxu0  ;;  %v2566_v33 = vadd.f32 %v7889_v48, %v7229_v11 }
 0xa63   : > { %v2561_v62 = vadd.f32 %v7229_v11, %v2560_v50 }
 0xa64   : > { %v2570_v26 = vsub.f32 0.0, %v2566_v33 }
 0xa65   : > { %v2569_v7 = vsub.f32 0.0, %v2561_v62 }
 0xa66   : > { %v2573_v12 = vmul.f32 1.442695, %v2570_v26 }
 0xa67   : > { %v2571_v53 = vmul.f32 1.442695, %v2569_v7 }
 0xa68   : > { %8801 = vpow2.f32 %v2573_v12 }
 0xa69   : > { %8803 = vpow2.f32 %v2571_v53 }
 0xa72   : > { %v8802_v10 = vpop.eup %8801 }
 0xa73   : > { %v8804_v41 = vpop.eup %8803  ;;  %v2576_v23 = vadd.f32 1.0, %v8802_v10 }
 0xa74   : > { %v2575_v55 = vadd.f32 1.0, %v8804_v41 }
 0xa98   : > { %v7900_v24 = vpop.f32.mrb[54].mxu1 }
 0xa99   : > { %v2666_v30 = vadd.f32 %v7900_v24, %v7229_v11  ;;  %v2660_v29 = vpop.f32.mrb[55].mxu1 }
 0xa9a   : > { %v2661_v56 = vadd.f32 %v7229_v11, %v2660_v29 }
 0xa9b   : > { %v2670_v16 = vsub.f32 0.0, %v2666_v30 }
 0xa9c   : > { %v2669_v5 = vsub.f32 0.0, %v2661_v56 }
 0xa9d   : > { %v2673_v22 = vmul.f32 1.442695, %v2670_v16  ;;  %v7911_v15 = vpop.f32.mrb[46].mxu0 }
 0xa9e   : > { %v2671_v47 = vmul.f32 1.442695, %v2669_v5  ;;  %v2765_v19 = vadd.f32 %v7911_v15, %v7229_v11  ;;  %v2759_v6 = vpop.f32.mrb[47].mxu0 }
 0xa9f   : > { %8805 = vpow2.f32 %v2673_v22  ;;  %v2760_v43 = vadd.f32 %v7229_v11, %v2759_v6 }
 0xaa0   : > { %8807 = vpow2.f32 %v2671_v47  ;;  %v2769_v39 = vsub.f32 0.0, %v2765_v19 }
 0xaa1   : > { %v2768_v52 = vsub.f32 0.0, %v2760_v43  ;;  %v2955_v54 = vpop.f32.mrb[48].mxu0 }
 0xaa2   : > { %v2772_v35 = vmul.f32 1.442695, %v2769_v39 }
 0xaa3   : > { %v2770_v9 = vmul.f32 1.442695, %v2768_v52 }
 0xaa4   : > { %8809 = vpow2.f32 %v2772_v35 }
 0xaa5   : > { %8811 = vpow2.f32 %v2770_v9 }
 0xaa6   : > { %8813 = vrcp.f32 %v2576_v23 }
 0xaa7   : > { %8815 = vrcp.f32 %v2575_v55 }
 0xaa9   : > { %v8806_v57 = vpop.eup %8805 }
 0xaaa   : > { %v8808_v58 = vpop.eup %8807  ;;  %v2676_v59 = vadd.f32 1.0, %v8806_v57 }
 0xaab   : > { %v2675_v60 = vadd.f32 1.0, %v8808_v58 }
 0xaac   : > { %8817 = vrcp.f32 %v2676_v59 }
 0xaad   : > { %8819 = vrcp.f32 %v2675_v60 }
 0xaae   : > { %v8810_v49 = vpop.eup %8809 }
 0xaaf   : > { %v8812_v45 = vpop.eup %8811  ;;  %v2775_v42 = vadd.f32 1.0, %v8810_v49 }
 0xab0   : > { %v2774_v28 = vadd.f32 1.0, %v8812_v45  ;;  %v8814_v0 = vpop.eup %8813 }
 0xab1   : > { %8821 = vrcp.f32 %v2775_v42  ;;  %v8816_v20 = vpop.eup %8815  ;;  %v2582_v27 = vmul.f32 %v8814_v0, %v9968_v32  ;;  %v7923_v32 = vpop.f32.mrb[49].mxu0 }
 0xab2   : > { %8823 = vrcp.f32 %v2774_v28  ;;  %v2581_v63 = vmul.f32 %v8816_v20, %v9963_v14  ;;  %v2785_v14 = vld [vmem:[%s10005_s28 + $0x8] sm:$0x3]  ;;  %s10202_s28 = scalar_lea.vmem %s10935_s5, %s8559_s30 }
 0xab6   : > { %v8818_v25 = vpop.eup %8817 }
 0xab7   : > { %v8820_v3 = vpop.eup %8819  ;;  %v2684_v21 = vmul.f32 %v8818_v25, %v9975_v61 }
 0xab8   : > { %v2683_v8 = vmul.f32 %v8820_v3, %v9979_v51 }
 0xab9   : > { %v2686_v13 = vadd.f32 %v2684_v21, %v2582_v27 }
 0xaba   : > { %v2685_v18 = vadd.f32 %v2683_v8, %v2581_v63 }
 0xabb   : > { %v8822_v36 = vpop.eup %8821 }
 0xabc   : > { %v8824_v44 = vpop.eup %8823  ;;  %v2781_v31 = vmul.f32 %v8822_v36, %v9989_v46  ;;  %v7239_v46 = vld [vmem:[%s10938_s8 + $0x28] ss:$0 sm:$0xff] }
 0xabd   : > { %v2780_v48 = vmul.f32 %v8824_v44, %v9991_v34  ;;  %v10076_v34 = vadd.f32 %v7239_v46, %v2955_v54 }
 0xabe   : > { %v2783_v50 = vadd.f32 %v2781_v31, %v2686_v13 }
 0xabf   : > { %v2782_v11 = vadd.f32 %v2780_v48, %v2685_v18 }
 0xac1   : > { %v8366_v33 = vpack.c.bf16 %v2783_v50, %v2782_v11 }
 0xac3   : > { %8368 = vmatprep.subr.msk.bf16.mxu1 %vm9892_vm15, %v8366_v33 }
 0xac4   : > { %8371 = vmatpush3.bf16.msk.msra.mxu1 %vm9892_vm15, %v8366_v33 }
 0xac5   : > { %8372 = vmatprep.subr.bf16.mxu1 %v9132_v2 }
 0xac7   : > { %7917 = vmatmul.mubr.msk.f32.vlgmr.msra.gmra.mrb[56].mxu1 %vm2786_vm1, %v2785_v14 }
 0xac8   : > { %8374 = vmatpush3.bf16.msra.mxu1 %v10024_v1  ;;  %7932 = vmatprep.mubr.msk.f32.mxu1 %vm9133_vm0, %v9134_v4 }
 0xac9   : > { %8375 = vmatprep.subr.bf16.mxu1 %v9132_v2 }
 0xacc   : > { %8377 = vmatpush3.bf16.msra.mxu1 %v10036_v38 }
 0xacd   : > { %8384 = vmatprep.subr.bf16.mxu1 %v9132_v2 }
 0xacf   : > { %7933 = vmatmul.mubr.f32.vlgmr.msra.gmra.mrb[58].mxu1 %v9134_v4 }
 0xad0   : > { %8386 = vmatpush3.bf16.msra.mxu1 %v10024_v1  ;;  %7954 = vmatprep.mubr.msk.f32.mxu1 %vm9133_vm0, %v9134_v4 }
 0xad1   : > { %8387 = vmatprep.subr.bf16.mxu1 %v9132_v2 }
 0xad4   : > { %8389 = vmatpush3.bf16.msra.mxu1 %v10036_v38 }
 0xad5   : > { %8396 = vmatprep.subr.bf16.mxu1 %v9132_v2 }
 0xb9a   : > { %v10069_v61 = vpop.f32.mrb[56].mxu1 }
 0xb9b   : > { %v10071_v51 = vpop.f32.mrb[57].mxu1 }
 0xba2   : > { %v3028_v62 = vpop.f32.mrb[58].mxu1 }
 0xba3   : > { %v3032_v26 = vadd.f32 %v3028_v62, %v10076_v34  ;;  %v7934_v7 = vpop.f32.mrb[59].mxu1 }
 0xba5   : > { %8825 = vtanh.f32 %v3032_v26  ;;  %v3033_v53 = vsub.f32 0.0, %v3032_v26 }
 0xba7   : > { %v3034_v24 = vmul.f32 1.442695, %v3033_v53 }
 0xba9   : > { %8827 = vpow2.f32 %v3034_v24 }
 0xbaf   : > { %v8826_v12 = vpop.eup %8825 }
 0xbb0   : > { %3042 = vrot.lane.b32.xlu0 %v8826_v12, %s9136_s18 }
 0xbb3   : > { %v8828_v30 = vpop.eup %8827 }
 0xbb4   : > { %v3036_v29 = vadd.f32 1.0, %v8828_v30 }
 0xbb6   : > { %8829 = vrcp.f32 %v3036_v29 }
 0xbc0   : > { %v8830_v56 = vpop.eup %8829 }
 0xbc1   : > { %v3040_v22 = vmul.f32 0.0, %v8830_v56 }
 0xc22   : > { %v3043_v16 = vpop.permute.xlu0 %3042 }
 0xc23   : > { %v3045_v5 = vmul.f32 %v8830_v56, %v3043_v16 }
 0xc25   : > { %3047 = vrot.lane.b32.xlu1 %v3045_v5, %s9138_s16 }
 0xc97   : > { %v3048_v15 = vpop.permute.xlu1 %3047 }
 0xc98   : > { %v3050_v47 = vadd.f32 %v3048_v15, %v3040_v22 }
 0xc9a   : > { %8831 = vtanh.f32 %v3050_v47  ;;  %v3144_v45 = vrot.slane %v3050_v47, 7 }
 0xca4   : > { %v8832_v19 = vpop.eup %8831 }
 0xca5   : > { %3053 = vrot.lane.b32.xlu0 %v8832_v19, %s9136_s18 }
 0xd17   : > { %v3054_v6 = vpop.permute.xlu0 %3053 }
 0xd18   : > { %v3056_v43 = vmul.f32 %v8830_v56, %v3054_v6 }
 0xd1a   : > { %3058 = vrot.lane.b32.xlu0 %v3056_v43, %s9138_s16 }
 0xd8c   : > { %v3059_v39 = vpop.permute.xlu0 %3058 }
 0xd8d   : > { %7944 = vmatmul.mubr.msk.f32.vlgmr.msra.gmra.mrb[50].mxu0 %vm664_vm3, %v3059_v39 }
 0xd8e   : > { %8392 = vmatpush3.bf16.msra.mxu0 %v10024_v1  ;;  %7965 = vmatprep.mubr.msk.f32.mxu0 %vm9133_vm0, %v9134_v4 }
 0xd8f   : > { %8393 = vmatprep.subr.bf16.mxu0 %v9132_v2 }
 0xd92   : > { %8395 = vmatpush3.bf16.msra.mxu0 %v10036_v38 }
 0xd93   : > { %8402 = vmatprep.subr.bf16.mxu0 %v9132_v2 }
 0xe60   : > { %v3128_v52 = vpop.f32.mrb[50].mxu0 }
 0xe61   : > { %v3133_v35 = vrot.slane %v3128_v52, 7  ;;  %v7945_v10 = vpop.f32.mrb[51].mxu0 }
 0xe63   : > { %v3135_v9 = vadd.f32 %v3133_v35, %v10076_v34 }
 0xe65   : > { %8833 = vtanh.f32 %v3135_v9  ;;  %v3136_v23 = vsub.f32 0.0, %v3135_v9 }
 0xe67   : > { %v3137_v55 = vmul.f32 1.442695, %v3136_v23 }
 0xe69   : > { %8835 = vpow2.f32 %v3137_v55 }
 0xe6f   : > { %v8834_v41 = vpop.eup %8833 }
 0xe70   : > { %3148 = vrot.lane.b32.xlu0 %v8834_v41, %s9136_s18 }
 0xe73   : > { %v8836_v57 = vpop.eup %8835 }
 0xe74   : > { %v3139_v58 = vadd.f32 1.0, %v8836_v57 }
 0xe76   : > { %8837 = vrcp.f32 %v3139_v58 }
 0xe80   : > { %v8838_v59 = vpop.eup %8837 }
 0xe81   : > { %v3146_v42 = vmul.f32 %v8838_v59, %v3144_v45 }
 0xee2   : > { %v3149_v60 = vpop.permute.xlu0 %3148 }
 0xee3   : > { %v3151_v49 = vmul.f32 %v8838_v59, %v3149_v60 }
 0xee5   : > { %3153 = vrot.lane.b32.xlu0 %v3151_v49, %s9138_s16 }
 0xf57   : > { %v3154_v28 = vpop.permute.xlu0 %3153 }
 0xf58   : > { %v3156_v0 = vadd.f32 %v3154_v28, %v3146_v42 }
 0xf5a   : > { %8839 = vtanh.f32 %v3156_v0  ;;  %v3251_v54 = vrot.slane %v3156_v0, 7 }
 0xf64   : > { %v8840_v20 = vpop.eup %8839 }
 0xf65   : > { %3159 = vrot.lane.b32.xlu1 %v8840_v20, %s9136_s18 }
 0xfd7   : > { %v3160_v25 = vpop.permute.xlu1 %3159 }
 0xfd8   : > { %v3162_v3 = vmul.f32 %v8838_v59, %v3160_v25 }
 0xfda   : > { %v3164_v27 = vrot.slane %v3162_v3, 1 }
 0xfdc   : > { %3165 = vrot.lane.b32.xlu0 %v3164_v27, %s9138_s16 }
0x104e   : > { %v3166_v21 = vpop.permute.xlu0 %3165 }
0x104f   : > { %7955 = vmatmul.mubr.msk.f32.vlgmr.msra.gmra.mrb[60].mxu1 %vm664_vm3, %v3166_v21 }
0x1050   : > { %8398 = vmatpush3.bf16.msra.mxu1 %v10024_v1  ;;  %7976 = vmatprep.mubr.msk.f32.mxu1 %vm9133_vm0, %v9134_v4 }
0x1051   : > { %8399 = vmatprep.subr.bf16.mxu1 %v9132_v2 }
0x1054   : > { %8401 = vmatpush3.bf16.msra.mxu1 %v10036_v38 }
0x1055   : > { %8408 = vmatprep.subr.bf16.mxu1 %v9132_v2 }
0x1122   : > { %v3235_v63 = vpop.f32.mrb[60].mxu1 }
0x1123   : > { %v3240_v8 = vrot.slane %v3235_v63, 6  ;;  %v7956_v13 = vpop.f32.mrb[61].mxu1 }
0x1125   : > { %v3242_v18 = vadd.f32 %v3240_v8, %v10076_v34 }
0x1127   : > { %8841 = vtanh.f32 %v3242_v18  ;;  %v3243_v44 = vsub.f32 0.0, %v3242_v18 }
0x1129   : > { %v3244_v31 = vmul.f32 1.442695, %v3243_v44 }
0x112b   : > { %8843 = vpow2.f32 %v3244_v31 }
0x1131   : > { %v8842_v36 = vpop.eup %8841 }
0x1132   : > { %3255 = vrot.lane.b32.xlu1 %v8842_v36, %s9136_s18 }
0x1135   : > { %v8844_v48 = vpop.eup %8843 }
0x1136   : > { %v3246_v50 = vadd.f32 1.0, %v8844_v48 }
0x1138   : > { %8845 = vrcp.f32 %v3246_v50 }
0x1142   : > { %v8846_v11 = vpop.eup %8845 }
0x1143   : > { %v3253_v32 = vmul.f32 %v8846_v11, %v3251_v54 }
0x11a4   : > { %v3256_v33 = vpop.permute.xlu1 %3255 }
0x11a5   : > { %v3258_v14 = vmul.f32 %v8846_v11, %v3256_v33 }
0x11a7   : > { %3260 = vrot.lane.b32.xlu0 %v3258_v14, %s9138_s16 }
0x1219   : > { %v3261_v46 = vpop.permute.xlu0 %3260 }
0x121a   : > { %v3263_v62 = vadd.f32 %v3261_v46, %v3253_v32 }
0x121c   : > { %8847 = vtanh.f32 %v3263_v62  ;;  %v3358_v43 = vrot.slane %v3263_v62, 7 }
0x1226   : > { %v8848_v26 = vpop.eup %8847 }
0x1227   : > { %3266 = vrot.lane.b32.xlu1 %v8848_v26, %s9136_s18 }
0x1299   : > { %v3267_v7 = vpop.permute.xlu1 %3266 }
0x129a   : > { %v3269_v12 = vmul.f32 %v8846_v11, %v3267_v7 }
0x129c   : > { %v3271_v53 = vrot.slane %v3269_v12, 2 }
0x129e   : > { %3272 = vrot.lane.b32.xlu0 %v3271_v53, %s9138_s16  ;;  %v3592_v53 = vld [vmem:[%s10941_s11 + $0x80] sm:$0xff] }
0x1310   : > { %v3273_v24 = vpop.permute.xlu0 %3272 }
0x1311   : > { %7966 = vmatmul.mubr.msk.f32.vlgmr.msra.gmra.mrb[52].mxu0 %vm664_vm3, %v3273_v24 }
0x1312   : > { %8404 = vmatpush3.bf16.msra.mxu0 %v10024_v1  ;;  %7987 = vmatprep.mubr.msk.f32.mxu0 %vm9133_vm0, %v9134_v4 }
0x1313   : > { %8405 = vmatprep.subr.bf16.mxu0 %v9132_v2 }
0x1316   : > { %8407 = vmatpush3.bf16.msra.mxu0 %v10036_v38 }
0x1317   : > { %8411 = vmatprep.subr.bf16.mxu0 %v9132_v2 }
0x13e4   : > { %v3342_v30 = vpop.f32.mrb[52].mxu0 }
0x13e5   : > { %v3347_v29 = vrot.slane %v3342_v30, 5  ;;  %v7967_v56 = vpop.f32.mrb[53].mxu0  ;;  %v3593_v30 = vld [vmem:[%s10941_s11 + $0x88] sm:$0x3] }
0x13e7   : > { %v3349_v16 = vadd.f32 %v3347_v29, %v10076_v34  ;;  %v3595_v29 = vld [vmem:[%s518_s29] sm:$0x1] }
0x13e9   : > { %8849 = vtanh.f32 %v3349_v16  ;;  %v3350_v22 = vsub.f32 0.0, %v3349_v16 }
0x13eb   : > { %v3351_v1 = vmul.f32 1.442695, %v3350_v22 }
0x13ed   : > { %8851 = vpow2.f32 %v3351_v1  ;;  %v3675_v1 = vld [vmem:[%s10940_s10] sm:$0xff] }
0x13f3   : > { %v8850_v5 = vpop.eup %8849 }
0x13f4   : > { %3362 = vrot.lane.b32.xlu1 %v8850_v5, %s9136_s18 }
0x13f7   : > { %v8852_v15 = vpop.eup %8851 }
0x13f8   : > { %v3353_v47 = vadd.f32 1.0, %v8852_v15  ;;  %v3676_v15 = vld [vmem:[%s10940_s10 + $0x8] sm:$0xff] }
0x13fa   : > { %8853 = vrcp.f32 %v3353_v47  ;;  %v3679_v47 = vld [vmem:[%s10940_s10 + $0x20] sm:$0xff] }
0x1404   : > { %v8854_v19 = vpop.eup %8853 }
0x1405   : > { %v3360_v39 = vmul.f32 %v8854_v19, %v3358_v43 }
0x1466   : > { %v3363_v6 = vpop.permute.xlu1 %3362 }
0x1467   : > { %v3365_v38 = vmul.f32 %v8854_v19, %v3363_v6  ;;  %v3680_v6 = vld [vmem:[%s10940_s10 + $0x28] sm:$0xff] }
0x1468   : > { %v8412_v43 = vpack.c.bf16 %v3680_v6, %v3679_v47  ;;  %v10252_v47 = vld [vmem:[%s10938_s8 + $0x58] ss:$0 sm:$0xff] }
0x1469   : > { %3367 = vrot.lane.b32.xlu0 %v3365_v38, %s9138_s16  ;;  %v3677_v38 = vld [vmem:[%s10940_s10 + $0x10] sm:$0xff] }
0x14db   : > { %v3368_v52 = vpop.permute.xlu0 %3367 }
0x14dc   : > { %v3370_v35 = vadd.f32 %v3368_v52, %v3360_v39  ;;  %v3678_v39 = vld [vmem:[%s10940_s10 + $0x18] sm:$0xff]  ;;  %v3681_v52 = vld [vmem:[%s10940_s10 + $0x30] sm:$0xff] }
0x14de   : > { %8855 = vtanh.f32 %v3370_v35  ;;  %v3465_v27 = vrot.slane %v3370_v35, 7  ;;  %v3682_v35 = vld [vmem:[%s10940_s10 + $0x38] sm:$0xff] }
0x14e8   : > { %v8856_v10 = vpop.eup %8855 }
0x14e9   : > { %3373 = vrot.lane.b32.xlu1 %v8856_v10, %s9136_s18  ;;  %v8421_v10 = vpack.c.bf16 %v3678_v39, %v3677_v38 }
0x155b   : > { %v3374_v9 = vpop.permute.xlu1 %3373 }
0x155c   : > { %v3376_v41 = vmul.f32 %v8854_v19, %v3374_v9  ;;  %v8418_v19 = vpack.c.bf16 %v3676_v15, %v3675_v1  ;;  %v3836_v9 = vld [vmem:[%s10938_s8 + $0x38] sm:$0xff] }
0x155e   : > { %v3378_v23 = vrot.slane %v3376_v41, 3  ;;  %v3837_v41 = vld [vmem:[%s10938_s8 + $0x40] sm:$0xff] }
0x1560   : > { %3379 = vrot.lane.b32.xlu0 %v3378_v23, %s9138_s16  ;;  %v8415_v23 = vpack.c.bf16 %v3682_v35, %v3681_v52 }
0x15d2   : > { %v3380_v55 = vpop.permute.xlu0 %3379 }
0x15d3   : > { %7977 = vmatmul.mubr.msk.f32.vlgmr.msra.gmra.mrb[62].mxu1 %vm664_vm3, %v3380_v55  ;;  %v10186_v55 = vpack.c.bf16 %v3837_v41, %v3836_v9 }
0x15d4   : > { %7996 = vmatprep.mubr.msk.f32.mxu1 %vm9133_vm0, %v9134_v4 }
0x16a6   : > { %v3449_v57 = vpop.f32.mrb[62].mxu1 }
0x16a7   : > { %v3454_v58 = vrot.slane %v3449_v57, 4  ;;  %v7978_v59 = vpop.f32.mrb[63].mxu1 }
0x16a9   : > { %v3456_v60 = vadd.f32 %v3454_v58, %v10076_v34  ;;  %v3594_v58 = vld [vmem:[%s10941_s11 + $0x90] sm:$0x1] }
0x16ab   : > { %8857 = vtanh.f32 %v3456_v60  ;;  %v3457_v45 = vsub.f32 0.0, %v3456_v60 }
0x16ad   : > { %v3458_v42 = vmul.f32 1.442695, %v3457_v45  ;;  %v9139_v45 = vmov 1983009808  }
0x16af   : > { %8859 = vpow2.f32 %v3458_v42  ;;  %v3867_v42 = vunpack.c.l.s4 %v9139_v45 }
0x16b5   : > { %v8858_v49 = vpop.eup %8857 }
0x16b6   : > { %3469 = vrot.lane.b32.xlu1 %v8858_v49, %s9136_s18 }
0x16b9   : > { %v8860_v28 = vpop.eup %8859 }
0x16ba   : > { %v3460_v0 = vadd.f32 1.0, %v8860_v28 }
0x16bc   : > { %8861 = vrcp.f32 %v3460_v0  ;;  %v3868_v0 = vunpack.c.0.s8 %v3867_v42 }
0x16c6   : > { %v8862_v20 = vpop.eup %8861 }
0x16c7   : > { %v3467_v21 = vmul.f32 %v8862_v20, %v3465_v27  ;;  %v3835_v27 = vld [vmem:[%s10938_s8 + $0x30] sm:$0x1f] }
0x1728   : > { %v3470_v25 = vpop.permute.xlu1 %3469 }
0x1729   : > { %v3472_v3 = vmul.f32 %v8862_v20, %v3470_v25  ;;  %v3841_v25 = vld [vmem:[%s10202_s28] sm:$0xff] }
0x172b   : > { %3474 = vrot.lane.b32.xlu0 %v3472_v3, %s9138_s16  ;;  %v3865_v3 = vcombine.high %v3841_v25, %v3841_v25 }
0x179d   : > { %v3475_v63 = vpop.permute.xlu0 %3474 }
0x179e   : > { %v3477_v8 = vadd.f32 %v3475_v63, %v3467_v21 }
0x17a0   : > { %8863 = vtanh.f32 %v3477_v8  ;;  %v3572_v56 = vrot.slane %v3477_v8, 7  ;;  %v3843_v8 = vld [vmem:[%s10202_s28 + $0x10] sm:$0xff] }
0x17aa   : > { %v8864_v13 = vpop.eup %8863 }
0x17ab   : > { %3480 = vrot.lane.b32.xlu1 %v8864_v13, %s9136_s18  ;;  %v3889_v13 = vcombine.high %v3843_v8, %v3843_v8 }
0x181d   : > { %v3481_v18 = vpop.permute.xlu1 %3480 }
0x181e   : > { %v3483_v36 = vmul.f32 %v8862_v20, %v3481_v18  ;;  %v10197_v20 = vsub.s32 %v3868_v0, %v9302_v37  ;;  %v6414_v37 = vld [vmem:[%s10941_s11 + $0x140] sm:$0x1] }
0x1820   : > { %v3485_v44 = vrot.slane %v3483_v36, 4  ;;  %v3872_v21 = vrot.slane %v3841_v25, %v10197_v20  ;;  %v3879_v63 = vrot.slane %v3865_v3, %v10197_v20  ;;  %v3896_v18 = vrot.slane %v3843_v8, %v10197_v20 }
0x1822   : > { %3486 = vrot.lane.b32.xlu0 %v3485_v44, %s9138_s16  ;;  %v3880_v36 = vcombine.high %v3872_v21, %v3872_v21  ;;  %v3881_v44 = vcombine.high %v3879_v63, %v3879_v63 }
0x1894   : > { %v3487_v31 = vpop.permute.xlu0 %3486 }
0x1895   : > { %7988 = vmatmul.mubr.msk.f32.vlgmr.msra.gmra.mrb[54].mxu0 %vm664_vm3, %v3487_v31  ;;  %v7251_v31 = vld.sshfl [vmem:[%s10202_s28 + $0x8] sm:$0x3 pattern:$0x76325410] }
0x1896   : > { %8007 = vmatprep.mubr.msk.f32.mxu0 %vm9133_vm0, %v9134_v4  ;;  %8413 = vmatpush3.bf16.msra.mxu0 %v8412_v43 }
0x1897   : > { %8414 = vmatprep.subr.bf16.mxu0 %v9132_v2 }
0x189a   : > { %8416 = vmatpush3.bf16.msra.mxu0 %v8415_v23 }
0x189b   : > { %8021 = vmatprep.subr.msk.mxu0 %vm4157_vm6, %v3835_v27 }
0x1968   : > { %v3556_v48 = vpop.f32.mrb[54].mxu0 }
0x1969   : > { %v3561_v50 = vrot.slane %v3556_v48, 3  ;;  %v7989_v11 = vpop.f32.mrb[55].mxu0  ;;  %v10214_v48 = vrot.slane %v3889_v13, %v10197_v20 }
0x196a   : > { %v4030_v11 = vcombine.low %v7251_v31, %v3896_v18 }
0x196b   : > { %v3563_v33 = vadd.f32 %v3561_v50, %v10076_v34  ;;  %v3591_v34 = vld [vmem:[%s10941_s11 + $0x78] sm:$0xff]  ;;  %v3904_v50 = vcombine.high %v3896_v18, %v3896_v18 }
0x196c   : > { %v8409_v24 = vpack.c.bf16 %v3592_v53, %v3591_v34  ;;  %v3838_v53 = vld [vmem:[%s10938_s8 + $0x48] sm:$0xff] }
0x196d   : > { %8865 = vtanh.f32 %v3563_v33  ;;  %v3564_v54 = vsub.f32 0.0, %v3563_v33  ;;  %v4013_v33 = vcombine.low %v3872_v21, %v3880_v36 }
0x196e   : > { %8410 = vmatpush3.bf16.msra.mxu1 %v8409_v24  ;;  %v3839_v24 = vld [vmem:[%s10938_s8 + $0x50] sm:$0xff] }
0x196f   : > { %v3565_v32 = vmul.f32 1.442695, %v3564_v54  ;;  %7994 = vmatprep.subr.mxu1 %v9134_v4  ;;  %v4031_v54 = vcombine.low %v3904_v50, %v10214_v48 }
0x1971   : > { %8867 = vpow2.f32 %v3565_v32  ;;  %v4038_v32 = vrot.slane %v4030_v11, %v10197_v20 }
0x1972   : > { %7995 = vmatpush3.msk.msra.mxu1 %vm3600_vm5, %v3593_v30 }
0x1973   : > { %7997 = vmatmul.mubr.msk.f32.vlgmr.msra.gmra.mrb[64].mxu1 %vm3596_vm8, %v3595_v29  ;;  %8417 = vmatprep.subr.bf16.mxu1 %v9132_v2 }
0x1974   : > { %8018 = vmatprep.mubr.msk.f32.mxu1 %vm9133_vm0, %v9134_v4  ;;  %8419 = vmatpush3.bf16.msra.mxu1 %v8418_v19 }
0x1975   : > { %8420 = vmatprep.subr.bf16.mxu1 %v9132_v2 }
0x1977   : > { %v8866_v14 = vpop.eup %8865 }
0x1978   : > { %3576 = vrot.lane.b32.xlu1 %v8866_v14, %s9136_s18  ;;  %8422 = vmatpush3.bf16.msra.mxu1 %v8421_v10  ;;  %v4014_v14 = vcombine.low %v3879_v63, %v3881_v44 }
0x1979   : > { %8424 = vmatprep.subr.bf16.mxu1 %v10186_v55 }
0x197b   : > { %v8868_v46 = vpop.eup %8867 }
0x197c   : > { %v3567_v62 = vadd.f32 1.0, %v8868_v46  ;;  %v4021_v46 = vrot.slane %v4013_v33, %v10197_v20 }
0x197e   : > { %8869 = vrcp.f32 %v3567_v62  ;;  %v4028_v62 = vrot.slane %v4014_v14, %v10197_v20 }
0x1980   : > { %v4029_v34 = vcombine.low %v4021_v46, %v4028_v62 }
0x1988   : > { %v10132_v26 = vpop.eup %8869 }
0x1989   : > { %v3574_v16 = vmul.f32 %v10132_v26, %v3572_v56 }
0x19ea   : > { %v3577_v7 = vpop.permute.xlu1 %3576 }
0x19eb   : > { %v3579_v12 = vmul.f32 %v10132_v26, %v3577_v7  ;;  %v4045_v7 = vrot.slane %v4031_v54, %v10197_v20 }
0x19ed   : > { %3581 = vrot.lane.b32.xlu0 %v3579_v12, %s9138_s16  ;;  %v4046_v29 = vcombine.low %v4038_v32, %v4045_v7 }
0x1a46   : > { %v3670_v59 = vpop.f32.mrb[64].mxu1 }
0x1a47   : > { %v3671_v60 = vadd.f32 %v3670_v59, %v3594_v58  ;;  %v7998_v49 = vpop.f32.mrb[65].mxu1 }
0x1a49   : > { %v3674_v28 = vmax.f32 %v3671_v60, 0.0 }
0x1a4b   : > { %8008 = vmatmul.mubr.msk.f32.vlgmr.msra.gmra.mrb[56].mxu0 %vm664_vm3, %v3674_v28 }
0x1a4c   : > { %8022 = vmatpush3.msk.msra.mxu0 %vm4157_vm6, %v3835_v27  ;;  %8023 = vmatprep.mubr.msk.f32.mxu0 %vm4140_vm7, %v4029_v34 }
0x1a4d   : > { %8440 = vmatprep.subr.bf16.mxu0 %v10186_v55 }
0x1a4f   : > { %8024 = vmatmul.mubr.msk.f32.vlgmr.msra.gmra.mrb[58].mxu0 %vm4140_vm7, %v4046_v29 }
0x1a50   : > { %8442 = vmatpush3.bf16.msra.mxu0 %v10186_v55 }
0x1a5f   : > { %v3582_v5 = vpop.permute.xlu0 %3581 }
0x1a60   : > { %v3584_v22 = vadd.f32 %v3582_v5, %v3574_v16  ;;  %v10230_v16 = vpack.c.bf16 %v3839_v24, %v3838_v53 }
0x1a62   : > { %8871 = vtanh.f32 %v3584_v22  ;;  %8444 = vmatprep.subr.bf16.mxu0 %v10230_v16 }
0x1a63   : > { %8446 = vmatpush3.bf16.msra.mxu0 %v10230_v16 }
0x1a64   : > { %8456 = vmatprep.subr.bf16.mxu0 %v10186_v55 }
0x1a6c   : > { %v8872_v57 = vpop.eup %8871 }
0x1a6d   : > { %3587 = vrot.lane.b32.xlu1 %v8872_v57, %s9136_s18 }
0x1adf   : > { %v3588_v12 = vpop.permute.xlu1 %3587 }
0x1ae0   : > { %v3590_v30 = vmul.f32 %v10132_v26, %v3588_v12 }
0x1ae2   : > { %v3758_v56 = vrot.slane %v3590_v30, 5 }
0x1ae4   : > { %3759 = vrot.lane.b32.xlu0 %v3758_v56, %s9138_s16 }
0x1b1e   : > { %v3753_v26 = vpop.f32.mrb[56].mxu0 }
0x1b1f   : > { %v8009_v22 = vpop.f32.mrb[57].mxu0 }
0x1b22   : > { %v8025_v1 = vpop.f32.mrb[58].mxu0 }
0x1b23   : > { %v4227_v15 = vpop.f32.mrb[59].mxu0  ;;  %v10262_v0 = vadd.f32 %v8025_v1, %v10252_v47 }
0x1b24   : > { %v4228_v6 = vadd.f32 %v10252_v47, %v4227_v15 }
0x1b25   : > { %v10266_v3 = vrot.slane %v10262_v0, %v10197_v20 }
0x1b26   : > { %v4274_v39 = vcombine.high %v4228_v6, %v4228_v6  ;;  %v4281_v52 = vrot.slane %v4228_v6, %v10197_v20 }
0x1b28   : > { %v4288_v35 = vrot.slane %v4274_v39, %v10197_v20  ;;  %v4289_v41 = vcombine.high %v4281_v52, %v4281_v52 }
0x1b2a   : > { %v4290_v58 = vcombine.high %v4288_v35, %v4288_v35 }
0x1b56   : > { %v3760_v5 = vpop.permute.xlu0 %3759 }
0x1b57   : > { %8019 = vmatmul.mubr.msk.f32.vlgmr.msra.gmra.mrb[66].mxu1 %vm664_vm3, %v3760_v5 }
0x1b58   : > { %8426 = vmatpush3.bf16.msra.mxu1 %v10186_v55  ;;  %8043 = vmatprep.mubr.f32.mxu1 %v9134_v4 }
0x1b59   : > { %8428 = vmatprep.subr.bf16.mxu1 %v10230_v16 }
0x1b5c   : > { %8430 = vmatpush3.bf16.msra.mxu1 %v10230_v16 }
0x1b5d   : > { %8432 = vmatprep.subr.bf16.mxu1 %v10186_v55 }
0x1b5f   : > { %8044 = vmatmul.mubr.f32.vlgmr.msra.gmra.mrb[68].mxu1 %v9134_v4 }
0x1b60   : > { %8434 = vmatpush3.bf16.msra.mxu1 %v10186_v55 }
0x1b61   : > { %8436 = vmatprep.subr.bf16.mxu1 %v10230_v16 }
0x1b64   : > { %8438 = vmatpush3.bf16.msra.mxu1 %v10230_v16 }
0x1b65   : > { %8448 = vmatprep.subr.bf16.mxu1 %v10186_v55 }
0x1c2a   : > { %v3829_v19 = vpop.f32.mrb[66].mxu1 }
0x1c2b   : > { %v10255_v38 = vadd.f32 %v3829_v19, %v3753_v26  ;;  %v8020_v43 = vpop.f32.mrb[67].mxu1 }
0x1c32   : > { %v8045_v10 = vpop.f32.mrb[68].mxu1 }
0x1c33   : > { %v4497_v9 = vpop.f32.mrb[69].mxu1  ;;  %v4531_v27 = vrot.slane %v8045_v10, %v10197_v20 }
0x1c34   : > { %v4508_v23 = vcombine.high %v4497_v9, %v4497_v9  ;;  %v4515_v57 = vrot.slane %v4497_v9, %v10197_v20 }
0x1c35   : > { %v4541_v21 = vadd.f32 %v4531_v27, %v10266_v3 }
0x1c36   : > { %v4522_v59 = vrot.slane %v4508_v23, %v10197_v20  ;;  %v4523_v60 = vcombine.high %v4515_v57, %v4515_v57  ;;  %v4537_v49 = vadd.f32 %v4515_v57, %v4281_v52 }
0x1c37   : > { %v4546_v54 = vsub.f32 0.0, %v4541_v21 }
0x1c38   : > { %v4524_v45 = vcombine.high %v4522_v59, %v4522_v59  ;;  %v4538_v42 = vadd.f32 %v4523_v60, %v4289_v41  ;;  %v4539_v28 = vadd.f32 %v4522_v59, %v4288_v35  ;;  %8873 = vtanh.f32 %v4537_v49 }
0x1c39   : > { %v4542_v44 = vsub.f32 0.0, %v4537_v49  ;;  %v4555_v62 = vmul.f32 1.442695, %v4546_v54  ;;  %v10322_v54 = vld [vmem:[%s10202_s28 + $0x30] sm:$0xff] }
0x1c3a   : > { %v4540_v25 = vadd.f32 %v4524_v45, %v4290_v58  ;;  %8875 = vtanh.f32 %v4538_v42  ;;  %v4543_v31 = vsub.f32 0.0, %v4538_v42  ;;  %v4544_v11 = vsub.f32 0.0, %v4539_v28 }
0x1c3b   : > { %8877 = vtanh.f32 %v4539_v28  ;;  %v4547_v50 = vmul.f32 1.442695, %v4542_v44 }
0x1c3c   : > { %8879 = vtanh.f32 %v4540_v25  ;;  %v4549_v33 = vmul.f32 1.442695, %v4543_v31  ;;  %v4545_v14 = vsub.f32 0.0, %v4540_v25  ;;  %v4551_v32 = vmul.f32 1.442695, %v4544_v11 }
0x1c3d   : > { %8881 = vtanh.f32 %v4541_v21  ;;  %v7252_v11 = vld.sshfl [vmem:[%s10202_s28 + $0x18] sm:$0x3 pattern:$0x76325410] }
0x1c3e   : > { %8883 = vpow2.f32 %v4547_v50  ;;  %v4553_v46 = vmul.f32 1.442695, %v4545_v14  ;;  %v3905_v14 = vcombine.high %v10214_v48, %v10214_v48 }
0x1c3f   : > { %8885 = vpow2.f32 %v4549_v33  ;;  %v3845_v33 = vld [vmem:[%s10202_s28 + $0x20] sm:$0xff] }
0x1c40   : > { %8887 = vpow2.f32 %v4551_v32  ;;  %v3920_v32 = vrot.slane %v3845_v33, %v10197_v20 }
0x1c41   : > { %8889 = vpow2.f32 %v4553_v46  ;;  %v7253_v46 = vld.sshfl [vmem:[%s10202_s28 + $0x28] sm:$0x3 pattern:$0x76325410] }
0x1c42   : > { %v8874_v63 = vpop.eup %8873  ;;  %8891 = vpow2.f32 %v4555_v62  ;;  %v3913_v62 = vcombine.high %v3845_v33, %v3845_v33  ;;  %v4291_v33 = vcombine.high %v10262_v0, %v10262_v0 }
0x1c43   : > { %4587 = vrot.lane.b32.xlu1 %v8874_v63, %s9136_s18 }
0x1c44   : > { %v8876_v8 = vpop.eup %8875 }
0x1c45   : > { %4589 = vrot.lane.b32.xlu0 %v8876_v8, %s9136_s18  ;;  %v8878_v13 = vpop.eup %8877 }
0x1c46   : > { %v8880_v18 = vpop.eup %8879 }
0x1c47   : > { %4591 = vrot.lane.b32.xlu1 %v8878_v13, %s9136_s18  ;;  %v8882_v36 = vpop.eup %8881 }
0x1c48   : > { %v8884_v7 = vpop.eup %8883 }
0x1c49   : > { %4593 = vrot.lane.b32.xlu0 %v8880_v18, %s9136_s18  ;;  %v4557_v12 = vadd.f32 1.0, %v8884_v7  ;;  %v8886_v34 = vpop.eup %8885  ;;  %v10328_v7 = vrot.slane %v10322_v54, %v10197_v20 }
0x1c4a   : > { %v4558_v53 = vadd.f32 1.0, %v8886_v34  ;;  %v8888_v24 = vpop.eup %8887 }
0x1c4b   : > { %4595 = vrot.lane.b32.xlu1 %v8882_v36, %s9136_s18  ;;  %8893 = vrcp.f32 %v4557_v12  ;;  %v8890_v30 = vpop.eup %8889  ;;  %v4559_v29 = vadd.f32 1.0, %v8888_v24  ;;  %v4047_v12 = vcombine.low %v3905_v14, %v7252_v11  ;;  %v3927_v24 = vrot.slane %v3913_v62, %v10197_v20 }
0x1c4c   : > { %8895 = vrcp.f32 %v4558_v53  ;;  %v8892_v56 = vpop.eup %8891  ;;  %v4560_v5 = vadd.f32 1.0, %v8890_v30  ;;  %v3928_v53 = vcombine.high %v3920_v32, %v3920_v32  ;;  %v4065_v30 = vcombine.low %v7253_v46, %v10328_v7 }
0x1c4d   : > { %v4561_v26 = vadd.f32 1.0, %v8892_v56  ;;  %8897 = vrcp.f32 %v4559_v29  ;;  %v4055_v56 = vrot.slane %v4047_v12, %v10197_v20 }
0x1c4e   : > { %8899 = vrcp.f32 %v4560_v5  ;;  %v4048_v48 = vcombine.low %v3920_v32, %v3928_v53  ;;  %v3929_v5 = vcombine.high %v3927_v24, %v3927_v24  ;;  %v4305_v32 = vrot.slane %v4291_v33, %v10197_v20 }
0x1c4f   : > { %8901 = vrcp.f32 %v4561_v26 }
0x1c55   : > { %v10275_v22 = vpop.eup %8893 }
0x1c56   : > { %v10279_v19 = vpop.eup %8895  ;;  %v4577_v59 = vmul.f32 0.0, %v10275_v22 }
0x1c57   : > { %v10283_v39 = vpop.eup %8897  ;;  %v4578_v45 = vmul.f32 0.0, %v10279_v19 }
0x1c58   : > { %v10285_v35 = vpop.eup %8899  ;;  %v4579_v25 = vmul.f32 0.0, %v10283_v39 }
0x1c59   : > { %v10290_v23 = vpop.eup %8901  ;;  %v4580_v21 = vmul.f32 0.0, %v10285_v35 }
0x1c5a   : > { %v4581_v18 = vmul.f32 0.0, %v10290_v23 }
0x1cb5   : > { %v4588_v1 = vpop.permute.xlu1 %4587 }
0x1cb6   : > { %v4602_v15 = vmul.f32 %v10275_v22, %v4588_v1  ;;  %v4062_v1 = vrot.slane %v4048_v48, %v10197_v20 }
0x1cb7   : > { %v4590_v6 = vpop.permute.xlu0 %4589 }
0x1cb8   : > { %4612 = vrot.lane.b32.xlu0 %v4602_v15, %s9138_s16  ;;  %v4603_v43 = vmul.f32 %v10279_v19, %v4590_v6  ;;  %v4064_v15 = vcombine.low %v3927_v24, %v3929_v5  ;;  %v4079_v6 = vrot.slane %v4065_v30, %v10197_v20 }
0x1cb9   : > { %v4592_v52 = vpop.permute.xlu1 %4591 }
0x1cba   : > { %4614 = vrot.lane.b32.xlu1 %v4603_v43, %s9138_s16  ;;  %v4604_v10 = vmul.f32 %v10283_v39, %v4592_v52  ;;  %v4063_v43 = vcombine.low %v4055_v56, %v4062_v1  ;;  %v4072_v52 = vrot.slane %v4064_v15, %v10197_v20 }
0x1cbb   : > { %v4594_v9 = vpop.permute.xlu0 %4593 }
0x1cbc   : > { %v4605_v41 = vmul.f32 %v10285_v35, %v4594_v9  ;;  %4616 = vrot.lane.b32.xlu0 %v4604_v10, %s9138_s16  ;;  %8026 = vmatprep.mubr.msk.f32.mxu0 %vm4140_vm7, %v4063_v43  ;;  %v4080_v10 = vcombine.low %v4072_v52, %v4079_v6 }
0x1cbd   : > { %v4596_v57 = vpop.permute.xlu1 %4595 }
0x1cbe   : > { %4618 = vrot.lane.b32.xlu1 %v4605_v41, %s9138_s16  ;;  %v4606_v58 = vmul.f32 %v10290_v23, %v4596_v57  ;;  %8027 = vmatmul.mubr.msk.f32.gmra.mrb[60].mxu0 %vm4140_vm7, %v4080_v10 }
0x1cc0   : > { %4620 = vrot.lane.b32.xlu0 %v4606_v58, %s9138_s16 }
0x1d2a   : > { %v4613_v60 = vpop.permute.xlu0 %4612 }
0x1d2b   : > { %v10296_v49 = vadd.f32 %v4613_v60, %v4577_v59 }
0x1d2c   : > { %v4615_v42 = vpop.permute.xlu1 %4614 }
0x1d2d   : > { %8903 = vtanh.f32 %v10296_v49  ;;  %v10300_v28 = vadd.f32 %v4615_v42, %v4578_v45 }
0x1d2e   : > { %v4617_v27 = vpop.permute.xlu0 %4616 }
0x1d2f   : > { %8905 = vtanh.f32 %v10300_v28  ;;  %v10305_v63 = vadd.f32 %v4617_v27, %v4579_v25 }
0x1d30   : > { %v4619_v8 = vpop.permute.xlu1 %4618 }
0x1d31   : > { %v10307_v13 = vadd.f32 %v4619_v8, %v4580_v21  ;;  %8907 = vtanh.f32 %v10305_v63 }
0x1d32   : > { %v4621_v36 = vpop.permute.xlu0 %4620 }
0x1d33   : > { %8909 = vtanh.f32 %v10307_v13  ;;  %v10312_v31 = vadd.f32 %v4621_v36, %v4581_v18 }
0x1d35   : > { %8911 = vtanh.f32 %v10312_v31 }
0x1d37   : > { %v8904_v44 = vpop.eup %8903 }
0x1d38   : > { %4642 = vrot.lane.b32.xlu1 %v8904_v44, %s9136_s18 }
0x1d39   : > { %v8906_v50 = vpop.eup %8905 }
0x1d3a   : > { %4644 = vrot.lane.b32.xlu0 %v8906_v50, %s9136_s18 }
0x1d3b   : > { %v8908_v34 = vpop.eup %8907 }
0x1d3c   : > { %4646 = vrot.lane.b32.xlu1 %v8908_v34, %s9136_s18  ;;  %v4306_v34 = vcombine.high %v10266_v3, %v10266_v3 }
0x1d3d   : > { %v8910_v29 = vpop.eup %8909 }
0x1d3e   : > { %4648 = vrot.lane.b32.xlu0 %v8910_v29, %s9136_s18  ;;  %v4307_v29 = vcombine.high %v4305_v32, %v4305_v32 }
0x1d3f   : > { %v8912_v26 = vpop.eup %8911 }
0x1d40   : > { %4650 = vrot.lane.b32.xlu1 %v8912_v26, %s9136_s18 }
0x1daa   : > { %v4643_v9 = vpop.permute.xlu1 %4642 }
0x1dab   : > { %v4657_v58 = vmul.f32 %v10275_v22, %v4643_v9  ;;  %v10351_v22 = vpop.f32.mrb[60].mxu0 }
0x1dac   : > { %v4645_v41 = vpop.permute.xlu0 %4644 }
0x1dad   : > { %v4658_v57 = vmul.f32 %v10279_v19, %v4645_v41 }
0x1dae   : > { %v4647_v59 = vpop.permute.xlu1 %4646 }
0x1daf   : > { %v4667_v45 = vcombine.low %v4657_v58, %v4658_v57  ;;  %v4659_v42 = vmul.f32 %v10283_v39, %v4647_v59  ;;  %v4237_v39 = vpop.f32.mrb[61].mxu0 }
0x1db0   : > { %v4649_v60 = vpop.permute.xlu0 %4648 }
0x1db1   : > { %v4660_v25 = vmul.f32 %v10285_v35, %v4649_v60  ;;  %v4675_v18 = vrot.slane %v4667_v45, %v10197_v20 }
0x1db2   : > { %v4651_v21 = vpop.permute.xlu1 %4650 }
0x1db3   : > { %v4668_v27 = vcombine.low %v4659_v42, %v4660_v25  ;;  %v4661_v8 = vmul.f32 %v10290_v23, %v4651_v21  ;;  %v10360_v23 = vadd.f32 %v10252_v47, %v4237_v39 }
0x1db5   : > { %v4682_v36 = vrot.slane %v4668_v27, %v10197_v20  ;;  %v4690_v44 = vrot.slane %v4661_v8, %v10197_v20  ;;  %v4315_v11 = vrot.slane %v10360_v23, %v10197_v20 }
0x1db7   : > { %v4683_v19 = vcombine.low %v4675_v18, %v4682_v36  ;;  %4693 = vrot.lane.b32.xlu1 %v4690_v44, %s9138_s16  ;;  %v4323_v14 = vcombine.high %v4315_v11, %v4315_v11 }
0x1db9   : > { %4691 = vrot.lane.b32.xlu0 %v4683_v19, %s9138_s16 }
0x1e29   : > { %v4694_v35 = vpop.permute.xlu1 %4693 }
0x1e2b   : > { %v4692_v50 = vpop.permute.xlu0 %4691 }
0x1e2c   : > { %8054 = vmatprep.mubr.msk.f32.mxu1 %vm664_vm3, %v4692_v50 }
0x1e2d   : > { %8055 = vmatmul.mubr.msk.f32.vlgmr.msra.gmra.mrb[70].mxu1 %vm664_vm3, %v4694_v35 }
0x1e2e   : > { %8450 = vmatpush3.bf16.msra.mxu1 %v10186_v55 }
0x1e2f   : > { %8452 = vmatprep.subr.bf16.mxu1 %v10230_v16 }
0x1e32   : > { %8454 = vmatpush3.bf16.msra.mxu1 %v10230_v16 }
0x1e33   : > { %8464 = vmatprep.subr.bf16.mxu1 %v10186_v55 }
0x1f00   : > { %v8056_v46 = vpop.f32.mrb[70].mxu1 }
0x1f01   : > { %v4799_v62 = vrot.slane %v8056_v46, %v10197_v20  ;;  %v4765_v12 = vpop.f32.mrb[71].mxu1 }
0x1f02   : > { %v4776_v53 = vcombine.high %v4765_v12, %v4765_v12  ;;  %v4783_v24 = vrot.slane %v4765_v12, %v10197_v20 }
0x1f03   : > { %v4809_v30 = vadd.f32 %v4799_v62, %v4323_v14 }
0x1f04   : > { %v4790_v48 = vrot.slane %v4776_v53, %v10197_v20  ;;  %v4791_v56 = vcombine.high %v4783_v24, %v4783_v24  ;;  %v4805_v5 = vadd.f32 %v4783_v24, %v4306_v34 }
0x1f05   : > { %v4814_v45 = vsub.f32 0.0, %v4809_v30 }
0x1f06   : > { %v4792_v0 = vcombine.high %v4790_v48, %v4790_v48  ;;  %v4806_v26 = vadd.f32 %v4791_v56, %v4305_v32  ;;  %v4807_v1 = vadd.f32 %v4790_v48, %v4307_v29  ;;  %8913 = vtanh.f32 %v4805_v5 }
0x1f07   : > { %v4810_v9 = vsub.f32 0.0, %v4805_v5  ;;  %v4823_v27 = vmul.f32 1.442695, %v4814_v45  ;;  %v3849_v45 = vld [vmem:[%s10202_s28 + $0x40] sm:$0xff] }
0x1f08   : > { %v4808_v15 = vadd.f32 %v4792_v0, %v4315_v11  ;;  %8915 = vtanh.f32 %v4806_v26  ;;  %v4811_v41 = vsub.f32 0.0, %v4806_v26  ;;  %v4812_v58 = vsub.f32 0.0, %v4807_v1 }
0x1f09   : > { %8917 = vtanh.f32 %v4807_v1  ;;  %v4815_v57 = vmul.f32 1.442695, %v4810_v9 }
0x1f0a   : > { %8919 = vtanh.f32 %v4808_v15  ;;  %v4817_v59 = vmul.f32 1.442695, %v4811_v41  ;;  %v4813_v60 = vsub.f32 0.0, %v4808_v15  ;;  %v4819_v42 = vmul.f32 1.442695, %v4812_v58 }
0x1f0b   : > { %8921 = vtanh.f32 %v4809_v30 }
0x1f0c   : > { %8923 = vpow2.f32 %v4815_v57  ;;  %v4821_v25 = vmul.f32 1.442695, %v4813_v60  ;;  %v3937_v60 = vcombine.high %v10322_v54, %v10322_v54 }
0x1f0d   : > { %8925 = vpow2.f32 %v4817_v59 }
0x1f0e   : > { %8927 = vpow2.f32 %v4819_v42  ;;  %v3851_v42 = vld [vmem:[%s10202_s28 + $0x50] sm:$0xff] }
0x1f0f   : > { %8929 = vpow2.f32 %v4821_v25  ;;  %v3961_v25 = vcombine.high %v3849_v45, %v3849_v45 }
0x1f10   : > { %v8914_v6 = vpop.eup %8913  ;;  %8931 = vpow2.f32 %v4823_v27  ;;  %v3968_v27 = vrot.slane %v3849_v45, %v10197_v20 }
0x1f11   : > { %4855 = vrot.lane.b32.xlu0 %v8914_v6, %s9136_s18 }
0x1f12   : > { %v8916_v3 = vpop.eup %8915 }
0x1f13   : > { %4857 = vrot.lane.b32.xlu1 %v8916_v3, %s9136_s18  ;;  %v8918_v43 = vpop.eup %8917 }
0x1f14   : > { %v8920_v52 = vpop.eup %8919 }
0x1f15   : > { %4859 = vrot.lane.b32.xlu0 %v8918_v43, %s9136_s18  ;;  %v8922_v10 = vpop.eup %8921 }
0x1f16   : > { %v8924_v21 = vpop.eup %8923 }
0x1f17   : > { %4861 = vrot.lane.b32.xlu1 %v8920_v52, %s9136_s18  ;;  %v4825_v8 = vadd.f32 1.0, %v8924_v21  ;;  %v8926_v18 = vpop.eup %8925  ;;  %v7255_v21 = vld.sshfl [vmem:[%s10202_s28 + $0x48] sm:$0x3 pattern:$0x76325410] }
0x1f18   : > { %v4826_v36 = vadd.f32 1.0, %v8926_v18  ;;  %v8928_v44 = vpop.eup %8927  ;;  %v3992_v18 = vrot.slane %v3851_v42, %v10197_v20 }
0x1f19   : > { %4863 = vrot.lane.b32.xlu0 %v8922_v10, %s9136_s18  ;;  %8933 = vrcp.f32 %v4825_v8  ;;  %v8930_v19 = vpop.eup %8929  ;;  %v4827_v39 = vadd.f32 1.0, %v8928_v44  ;;  %v3985_v8 = vcombine.high %v3851_v42, %v3851_v42 }
0x1f1a   : > { %8935 = vrcp.f32 %v4826_v36  ;;  %v8932_v50 = vpop.eup %8931  ;;  %v4828_v35 = vadd.f32 1.0, %v8930_v19  ;;  %v3951_v36 = vrot.slane %v3937_v60, %v10197_v20  ;;  %v7254_v19 = vld.sshfl [vmem:[%s10202_s28 + $0x38] sm:$0x3 pattern:$0x76325410] }
0x1f1b   : > { %v4829_v11 = vadd.f32 1.0, %v8932_v50  ;;  %8937 = vrcp.f32 %v4827_v39  ;;  %v3975_v39 = vrot.slane %v3961_v25, %v10197_v20  ;;  %v3976_v50 = vcombine.high %v3968_v27, %v3968_v27 }
0x1f1c   : > { %8939 = vrcp.f32 %v4828_v35  ;;  %v3999_v54 = vrot.slane %v3985_v8, %v10197_v20 }
0x1f1d   : > { %8941 = vrcp.f32 %v4829_v11  ;;  %v3953_v11 = vcombine.high %v3951_v36, %v3951_v36 }
0x1f23   : > { %v10377_v33 = vpop.eup %8933 }
0x1f24   : > { %v10381_v46 = vpop.eup %8935  ;;  %v4845_v26 = vmul.f32 %v10377_v33, %v10296_v49 }
0x1f25   : > { %v10385_v34 = vpop.eup %8937  ;;  %v4846_v6 = vmul.f32 %v10381_v46, %v10300_v28 }
0x1f26   : > { %v10387_v24 = vpop.eup %8939  ;;  %v4847_v52 = vmul.f32 %v10385_v34, %v10305_v63 }
0x1f27   : > { %v10392_v56 = vpop.eup %8941  ;;  %v4848_v49 = vmul.f32 %v10387_v24, %v10307_v13 }
0x1f28   : > { %v4849_v28 = vmul.f32 %v10392_v56, %v10312_v31  ;;  %v3952_v31 = vcombine.high %v10328_v7, %v10328_v7  ;;  %v4000_v7 = vcombine.high %v3992_v18, %v3992_v18 }
0x1f83   : > { %v4856_v14 = vpop.permute.xlu0 %4855 }
0x1f84   : > { %v4870_v32 = vmul.f32 %v10377_v33, %v4856_v14  ;;  %v4081_v14 = vcombine.low %v3952_v31, %v3951_v36 }
0x1f85   : > { %v4858_v62 = vpop.permute.xlu1 %4857 }
0x1f86   : > { %4880 = vrot.lane.b32.xlu1 %v4870_v32, %s9138_s16  ;;  %v4871_v12 = vmul.f32 %v10381_v46, %v4858_v62  ;;  %v4115_v32 = vcombine.low %v7255_v21, %v3992_v18  ;;  %v3977_v62 = vcombine.high %v3975_v39, %v3975_v39 }
0x1f87   : > { %v4860_v53 = vpop.permute.xlu0 %4859 }
0x1f88   : > { %4882 = vrot.lane.b32.xlu0 %v4871_v12, %s9138_s16  ;;  %v4872_v30 = vmul.f32 %v10385_v34, %v4860_v53  ;;  %v4098_v12 = vcombine.low %v3968_v27, %v3976_v50  ;;  %v4116_v53 = vcombine.low %v4000_v7, %v3999_v54 }
0x1f89   : > { %v4862_v29 = vpop.permute.xlu1 %4861 }
0x1f8a   : > { %v4873_v48 = vmul.f32 %v10387_v24, %v4862_v29  ;;  %4884 = vrot.lane.b32.xlu1 %v4872_v30, %s9138_s16  ;;  %v4001_v30 = vcombine.high %v3999_v54, %v3999_v54  ;;  %v4082_v29 = vcombine.low %v3953_v11, %v7254_v19  ;;  %v4243_v11 = vadd.f32 %v10351_v22, %v10252_v47 }
0x1f8b   : > { %v4864_v5 = vpop.permute.xlu0 %4863 }
0x1f8c   : > { %4886 = vrot.lane.b32.xlu0 %v4873_v48, %s9138_s16  ;;  %v4874_v0 = vmul.f32 %v10392_v56, %v4864_v5  ;;  %v4089_v48 = vrot.slane %v4081_v14, %v10197_v20  ;;  %v4123_v5 = vrot.slane %v4115_v32, %v10197_v20 }
0x1f8e   : > { %4888 = vrot.lane.b32.xlu1 %v4874_v0, %s9138_s16  ;;  %v7256_v0 = vld.sshfl [vmem:[%s10202_s28 + $0x58] sm:$0x3 pattern:$0x76325410] }
0x1ff8   : > { %v4881_v1 = vpop.permute.xlu1 %4880 }
0x1ff9   : > { %v10399_v15 = vadd.f32 %v4881_v1, %v4845_v26  ;;  %v4099_v1 = vcombine.low %v3975_v39, %v3977_v62 }
0x1ffa   : > { %v4883_v3 = vpop.permute.xlu0 %4882 }
0x1ffb   : > { %8943 = vtanh.f32 %v10399_v15  ;;  %v10404_v43 = vadd.f32 %v4883_v3, %v4846_v6  ;;  %v4106_v6 = vrot.slane %v4098_v12, %v10197_v20  ;;  %v4130_v3 = vrot.slane %v4116_v53, %v10197_v20 }
0x1ffc   : > { %v4885_v10 = vpop.permute.xlu1 %4884  ;;  %v4332_v12 = vrot.slane %v4243_v11, %v10197_v20 }
0x1ffd   : > { %8945 = vtanh.f32 %v10404_v43  ;;  %v10411_v9 = vadd.f32 %v4885_v10, %v4847_v52  ;;  %v4096_v52 = vrot.slane %v4082_v29, %v10197_v20  ;;  %v4113_v10 = vrot.slane %v4099_v1, %v10197_v20 }
0x1ffe   : > { %v4887_v41 = vpop.permute.xlu0 %4886 }
0x1fff   : > { %v10413_v57 = vadd.f32 %v4887_v41, %v4848_v49  ;;  %8947 = vtanh.f32 %v10411_v9  ;;  %v4132_v49 = vcombine.low %v4001_v30, %v7256_v0  ;;  %v4097_v41 = vcombine.low %v4089_v48, %v4096_v52 }
0x2000   : > { %v4889_v63 = vpop.permute.xlu1 %4888 }
0x2001   : > { %8949 = vtanh.f32 %v10413_v57  ;;  %v10419_v59 = vadd.f32 %v4889_v63, %v4849_v28  ;;  %v4131_v28 = vcombine.low %v4123_v5, %v4130_v3  ;;  %v4114_v63 = vcombine.low %v4106_v6, %v4113_v10  ;;  %8029 = vmatprep.mubr.msk.f32.mxu0 %vm4140_vm7, %v4097_v41 }
0x2002   : > { %v4325_v3 = vcombine.high %v4243_v11, %v4243_v11 }
0x2003   : > { %8951 = vtanh.f32 %v10419_v59  ;;  %8030 = vmatmul.mubr.msk.f32.gmra.mrb[62].mxu0 %vm4140_vm7, %v4114_v63 }
0x2004   : > { %8032 = vmatprep.mubr.msk.f32.mxu0 %vm4140_vm7, %v4131_v28  ;;  %v10485_v10 = vrot.slane %v4325_v3, %v10197_v20 }
0x2005   : > { %v8944_v58 = vpop.eup %8943 }
0x2006   : > { %4910 = vrot.lane.b32.xlu0 %v8944_v58, %s9136_s18  ;;  %v4139_v58 = vrot.slane %v4132_v49, %v10197_v20 }
0x2007   : > { %v8946_v13 = vpop.eup %8945 }
0x2008   : > { %4912 = vrot.lane.b32.xlu1 %v8946_v13, %s9136_s18  ;;  %8033 = vmatmul.mubr.msk.f32.gmra.mrb[64].mxu0 %vm4140_vm7, %v4139_v58 }
0x2009   : > { %v8948_v44 = vpop.eup %8947 }
0x200a   : > { %4914 = vrot.lane.b32.xlu0 %v8948_v44, %s9136_s18 }
0x200b   : > { %v8950_v35 = vpop.eup %8949 }
0x200c   : > { %4916 = vrot.lane.b32.xlu1 %v8950_v35, %s9136_s18  ;;  %v4308_v35 = vcombine.high %v10360_v23, %v10360_v23 }
0x200d   : > { %v8952_v26 = vpop.eup %8951 }
0x200e   : > { %4918 = vrot.lane.b32.xlu0 %v8952_v26, %s9136_s18  ;;  %v4322_v14 = vrot.slane %v4308_v35, %v10197_v20  ;;  %v4340_v26 = vcombine.high %v4332_v12, %v4332_v12 }
0x2010   : > { %v4324_v29 = vcombine.high %v4322_v14, %v4322_v14 }
0x2078   : > { %v4911_v13 = vpop.permute.xlu0 %4910 }
0x2079   : > { %v4925_v45 = vmul.f32 %v10377_v33, %v4911_v13 }
0x207a   : > { %v4913_v60 = vpop.permute.xlu1 %4912 }
0x207b   : > { %v4926_v31 = vmul.f32 %v10381_v46, %v4913_v60 }
0x207c   : > { %v4915_v42 = vpop.permute.xlu0 %4914 }
0x207d   : > { %v4935_v27 = vcombine.low %v4925_v45, %v4926_v31  ;;  %v4927_v21 = vmul.f32 %v10385_v34, %v4915_v42 }
0x207e   : > { %v4917_v25 = vpop.permute.xlu1 %4916 }
0x207f   : > { %v4928_v8 = vmul.f32 %v10387_v24, %v4917_v25  ;;  %v4943_v19 = vrot.slane %v4935_v27, %v10197_v20 }
0x2080   : > { %v4919_v36 = vpop.permute.xlu0 %4918 }
0x2081   : > { %v4936_v18 = vcombine.low %v4927_v21, %v4928_v8  ;;  %v4929_v44 = vmul.f32 %v10392_v56, %v4919_v36 }
0x2083   : > { %v4950_v39 = vrot.slane %v4936_v18, %v10197_v20  ;;  %v4958_v50 = vrot.slane %v4929_v44, %v10197_v20 }
0x2085   : > { %v4951_v46 = vcombine.low %v4943_v19, %v4950_v39  ;;  %4961 = vrot.lane.b32.xlu0 %v4958_v50, %s9138_s16 }
0x2087   : > { %4959 = vrot.lane.b32.xlu1 %v4951_v46, %s9138_s16 }
0x20d6   : > { %v10462_v33 = vpop.f32.mrb[62].mxu0 }
0x20d7   : > { %v10464_v34 = vpop.f32.mrb[63].mxu0 }
0x20db   : > { %v10466_v24 = vpop.f32.mrb[64].mxu0 }
0x20dc   : > { %v10468_v54 = vpop.f32.mrb[65].mxu0 }
0x20f7   : > { %v4962_v7 = vpop.permute.xlu0 %4961 }
0x20f9   : > { %v4960_v56 = vpop.permute.xlu1 %4959 }
0x20fa   : > { %8065 = vmatprep.mubr.msk.f32.mxu0 %vm664_vm3, %v4960_v56 }
0x20fb   : > { %8066 = vmatmul.mubr.msk.f32.vlgmr.msra.gmra.mrb[66].mxu0 %vm664_vm3, %v4962_v7 }
0x20fc   : > { %8458 = vmatpush3.bf16.msra.mxu0 %v10186_v55 }
0x20fd   : > { %8460 = vmatprep.subr.bf16.mxu0 %v10230_v16 }
0x2100   : > { %8462 = vmatpush3.bf16.msra.mxu0 %v10230_v16 }
0x21ce   : > { %v8067_v32 = vpop.f32.mrb[66].mxu0 }
0x21cf   : > { %v5033_v62 = vpop.f32.mrb[67].mxu0  ;;  %v5067_v52 = vrot.slane %v8067_v32, %v10197_v20 }
0x21d0   : > { %v5044_v53 = vcombine.high %v5033_v62, %v5033_v62  ;;  %v5051_v30 = vrot.slane %v5033_v62, %v10197_v20 }
0x21d1   : > { %v5077_v49 = vadd.f32 %v5067_v52, %v10485_v10 }
0x21d2   : > { %v5058_v48 = vrot.slane %v5044_v53, %v10197_v20  ;;  %v5059_v5 = vcombine.high %v5051_v30, %v5051_v30  ;;  %v5073_v0 = vadd.f32 %v5051_v30, %v4322_v14 }
0x21d3   : > { %v5082_v21 = vsub.f32 0.0, %v5077_v49 }
0x21d4   : > { %v5060_v1 = vcombine.high %v5058_v48, %v5058_v48  ;;  %v5074_v23 = vadd.f32 %v5059_v5, %v4324_v29  ;;  %v5075_v6 = vadd.f32 %v5058_v48, %v4332_v12  ;;  %8953 = vtanh.f32 %v5073_v0 }
0x21d5   : > { %v5078_v60 = vsub.f32 0.0, %v5073_v0  ;;  %v5091_v36 = vmul.f32 1.442695, %v5082_v21 }
0x21d6   : > { %v5076_v22 = vadd.f32 %v5060_v1, %v4340_v26  ;;  %8955 = vtanh.f32 %v5074_v23  ;;  %v5079_v31 = vsub.f32 0.0, %v5074_v23  ;;  %v5080_v42 = vsub.f32 0.0, %v5075_v6 }
0x21d7   : > { %8957 = vtanh.f32 %v5075_v6  ;;  %v5083_v45 = vmul.f32 1.442695, %v5078_v60 }
0x21d8   : > { %8959 = vtanh.f32 %v5076_v22  ;;  %v5085_v25 = vmul.f32 1.442695, %v5079_v31  ;;  %v5081_v27 = vsub.f32 0.0, %v5076_v22  ;;  %v5087_v8 = vmul.f32 1.442695, %v5080_v42 }
0x21d9   : > { %8961 = vtanh.f32 %v5077_v49 }
0x21da   : > { %8963 = vpow2.f32 %v5083_v45  ;;  %v5089_v18 = vmul.f32 1.442695, %v5081_v27 }
0x21db   : > { %8965 = vpow2.f32 %v5085_v25 }
0x21dc   : > { %8967 = vpow2.f32 %v5087_v8 }
0x21dd   : > { %8969 = vpow2.f32 %v5089_v18 }
0x21de   : > { %v8954_v41 = vpop.eup %8953  ;;  %8971 = vpow2.f32 %v5091_v36 }
0x21df   : > { %5123 = vrot.lane.b32.xlu1 %v8954_v41, %s9136_s18 }
0x21e0   : > { %v8956_v28 = vpop.eup %8955 }
0x21e1   : > { %5125 = vrot.lane.b32.xlu0 %v8956_v28, %s9136_s18  ;;  %v8958_v63 = vpop.eup %8957 }
0x21e2   : > { %v8960_v58 = vpop.eup %8959 }
0x21e3   : > { %5127 = vrot.lane.b32.xlu1 %v8958_v63, %s9136_s18  ;;  %v8962_v13 = vpop.eup %8961 }
0x21e4   : > { %v8964_v44 = vpop.eup %8963 }
0x21e5   : > { %5129 = vrot.lane.b32.xlu0 %v8960_v58, %s9136_s18  ;;  %v5093_v19 = vadd.f32 1.0, %v8964_v44  ;;  %v8966_v39 = vpop.eup %8965 }
0x21e6   : > { %v5094_v50 = vadd.f32 1.0, %v8966_v39  ;;  %v8968_v46 = vpop.eup %8967 }
0x21e7   : > { %5131 = vrot.lane.b32.xlu1 %v8962_v13, %s9136_s18  ;;  %8973 = vrcp.f32 %v5093_v19  ;;  %v8970_v56 = vpop.eup %8969  ;;  %v5095_v7 = vadd.f32 1.0, %v8968_v46 }
0x21e8   : > { %8975 = vrcp.f32 %v5094_v50  ;;  %v8972_v35 = vpop.eup %8971  ;;  %v5096_v11 = vadd.f32 1.0, %v8970_v56 }
0x21e9   : > { %v5097_v14 = vadd.f32 1.0, %v8972_v35  ;;  %8977 = vrcp.f32 %v5095_v7 }
0x21ea   : > { %8979 = vrcp.f32 %v5096_v11 }
0x21eb   : > { %8981 = vrcp.f32 %v5097_v14 }
0x21f1   : > { %v8974_v32 = vpop.eup %8973 }
0x21f2   : > { %v8976_v53 = vpop.eup %8975  ;;  %v5113_v52 = vmul.f32 %v8974_v32, %v10399_v15 }
0x21f3   : > { %v8978_v48 = vpop.eup %8977  ;;  %v5114_v28 = vmul.f32 %v8976_v53, %v10404_v43 }
0x21f4   : > { %v8980_v0 = vpop.eup %8979  ;;  %v5115_v13 = vmul.f32 %v8978_v48, %v10411_v9 }
0x21f5   : > { %v8982_v6 = vpop.eup %8981  ;;  %v5116_v31 = vmul.f32 %v8980_v0, %v10413_v57 }
0x21f6   : > { %v5117_v25 = vmul.f32 %v8982_v6, %v10419_v59 }
0x2251   : > { %v5124_v62 = vpop.permute.xlu1 %5123 }
0x2252   : > { %v5138_v12 = vmul.f32 %v8974_v32, %v5124_v62 }
0x2253   : > { %v5126_v30 = vpop.permute.xlu0 %5125 }
0x2254   : > { %5148 = vrot.lane.b32.xlu0 %v5138_v12, %s9138_s16  ;;  %v5139_v29 = vmul.f32 %v8976_v53, %v5126_v30 }
0x2255   : > { %v5128_v5 = vpop.permute.xlu1 %5127 }
0x2256   : > { %5150 = vrot.lane.b32.xlu1 %v5139_v29, %s9138_s16  ;;  %v5140_v26 = vmul.f32 %v8978_v48, %v5128_v5 }
0x2257   : > { %v5130_v1 = vpop.permute.xlu0 %5129 }
0x2258   : > { %v5141_v23 = vmul.f32 %v8980_v0, %v5130_v1  ;;  %5152 = vrot.lane.b32.xlu0 %v5140_v26, %s9138_s16 }
0x2259   : > { %v5132_v22 = vpop.permute.xlu1 %5131 }
0x225a   : > { %5154 = vrot.lane.b32.xlu1 %v5141_v23, %s9138_s16  ;;  %v5142_v3 = vmul.f32 %v8982_v6, %v5132_v22 }
0x225c   : > { %5156 = vrot.lane.b32.xlu0 %v5142_v3, %s9138_s16 }
0x22c6   : > { %v5149_v49 = vpop.permute.xlu0 %5148 }
0x22c7   : > { %v10499_v41 = vadd.f32 %v5149_v49, %v5113_v52 }
0x22c8   : > { %v5151_v63 = vpop.permute.xlu1 %5150 }
0x22c9   : > { %8983 = vtanh.f32 %v10499_v41  ;;  %v10503_v58 = vadd.f32 %v5151_v63, %v5114_v28 }
0x22ca   : > { %v5153_v60 = vpop.permute.xlu0 %5152 }
0x22cb   : > { %8985 = vtanh.f32 %v10503_v58  ;;  %v10508_v45 = vadd.f32 %v5153_v60, %v5115_v13 }
0x22cc   : > { %v5155_v15 = vpop.permute.xlu1 %5154 }
0x22cd   : > { %v10510_v42 = vadd.f32 %v5155_v15, %v5116_v31  ;;  %8987 = vtanh.f32 %v10508_v45 }
0x22ce   : > { %v5157_v43 = vpop.permute.xlu0 %5156 }
0x22cf   : > { %8989 = vtanh.f32 %v10510_v42  ;;  %v10515_v21 = vadd.f32 %v5157_v43, %v5117_v25 }
0x22d1   : > { %8991 = vtanh.f32 %v10515_v21 }
0x22d3   : > { %v8984_v27 = vpop.eup %8983 }
0x22d4   : > { %5178 = vrot.lane.b32.xlu1 %v8984_v27, %s9136_s18 }
0x22d5   : > { %v8986_v9 = vpop.eup %8985 }
0x22d6   : > { %5180 = vrot.lane.b32.xlu0 %v8986_v9, %s9136_s18 }
0x22d7   : > { %v8988_v57 = vpop.eup %8987 }
0x22d8   : > { %5182 = vrot.lane.b32.xlu1 %v8988_v57, %s9136_s18 }
0x22d9   : > { %v8990_v8 = vpop.eup %8989 }
0x22da   : > { %5184 = vrot.lane.b32.xlu0 %v8990_v8, %s9136_s18 }
0x22db   : > { %v8992_v59 = vpop.eup %8991 }
0x22dc   : > { %5186 = vrot.lane.b32.xlu1 %v8992_v59, %s9136_s18 }
0x2346   : > { %v5179_v18 = vpop.permute.xlu1 %5178 }
0x2347   : > { %v5193_v19 = vmul.f32 %v8974_v32, %v5179_v18 }
0x2348   : > { %v5181_v36 = vpop.permute.xlu0 %5180 }
0x2349   : > { %v5194_v44 = vmul.f32 %v8976_v53, %v5181_v36 }
0x234a   : > { %v5183_v39 = vpop.permute.xlu1 %5182 }
0x234b   : > { %v5203_v46 = vcombine.low %v5193_v19, %v5194_v44  ;;  %v5195_v56 = vmul.f32 %v8978_v48, %v5183_v39  ;;  %v4248_v48 = vadd.f32 %v10252_v47, %v10464_v34 }
0x234c   : > { %v5185_v50 = vpop.permute.xlu0 %5184 }
0x234d   : > { %v5196_v7 = vmul.f32 %v8980_v0, %v5185_v50  ;;  %v5211_v62 = vrot.slane %v5203_v46, %v10197_v20  ;;  %v4342_v5 = vcombine.high %v4248_v48, %v4248_v48  ;;  %v4349_v26 = vrot.slane %v4248_v48, %v10197_v20 }
0x234e   : > { %v5187_v11 = vpop.permute.xlu1 %5186 }
0x234f   : > { %v5204_v35 = vcombine.low %v5195_v56, %v5196_v7  ;;  %v5197_v14 = vmul.f32 %v8982_v6, %v5187_v11  ;;  %v4356_v0 = vrot.slane %v4342_v5, %v10197_v20  ;;  %v4357_v49 = vcombine.high %v4349_v26, %v4349_v26 }
0x2351   : > { %v5218_v12 = vrot.slane %v5204_v35, %v10197_v20  ;;  %v5226_v30 = vrot.slane %v5197_v14, %v10197_v20  ;;  %v4358_v23 = vcombine.high %v4356_v0, %v4356_v0 }
0x2353   : > { %v5219_v29 = vcombine.low %v5211_v62, %v5218_v12  ;;  %5229 = vrot.lane.b32.xlu1 %v5226_v30, %s9138_s16 }
0x2355   : > { %5227 = vrot.lane.b32.xlu0 %v5219_v29, %s9138_s16 }
0x23c5   : > { %v5230_v53 = vpop.permute.xlu1 %5229 }
0x23c7   : > { %v5228_v32 = vpop.permute.xlu0 %5227 }
0x23c8   : > { %8076 = vmatprep.mubr.msk.f32.mxu1 %vm664_vm3, %v5228_v32 }
0x23c9   : > { %8077 = vmatmul.mubr.msk.f32.vlgmr.msra.gmra.mrb[72].mxu1 %vm664_vm3, %v5230_v53 }
0x23ca   : > { %8466 = vmatpush3.bf16.msra.mxu1 %v10186_v55  ;;  %v4341_v55 = vcombine.high %v10485_v10, %v10485_v10 }
0x23cb   : > { %8468 = vmatprep.subr.bf16.mxu1 %v10230_v16 }
0x23ce   : > { %8470 = vmatpush3.bf16.msra.mxu1 %v10230_v16 }
0x23cf   : > { %8499 = vmatprep.subr.bf16.mxu1 %v9132_v2 }
0x249c   : > { %v8078_v1 = vpop.f32.mrb[72].mxu1 }
0x249d   : > { %v5335_v6 = vrot.slane %v8078_v1, %v10197_v20  ;;  %v5301_v22 = vpop.f32.mrb[73].mxu1 }
0x249e   : > { %v5312_v3 = vcombine.high %v5301_v22, %v5301_v22  ;;  %v5319_v16 = vrot.slane %v5301_v22, %v10197_v20 }
0x249f   : > { %v5345_v52 = vadd.f32 %v5335_v6, %v4358_v23 }
0x24a0   : > { %v5326_v47 = vrot.slane %v5312_v3, %v10197_v20  ;;  %v5327_v34 = vcombine.high %v5319_v16, %v5319_v16  ;;  %v5341_v28 = vadd.f32 %v5319_v16, %v4341_v55 }
0x24a1   : > { %v5350_v44 = vsub.f32 0.0, %v5345_v52 }
0x24a2   : > { %v5328_v63 = vcombine.high %v5326_v47, %v5326_v47  ;;  %v5342_v13 = vadd.f32 %v5327_v34, %v4349_v26  ;;  %v5343_v60 = vadd.f32 %v5326_v47, %v4357_v49  ;;  %8993 = vtanh.f32 %v5341_v28 }
0x24a3   : > { %v5346_v9 = vsub.f32 0.0, %v5341_v28  ;;  %v5359_v50 = vmul.f32 1.442695, %v5350_v44 }
0x24a4   : > { %v5344_v31 = vadd.f32 %v5328_v63, %v4356_v0  ;;  %8995 = vtanh.f32 %v5342_v13  ;;  %v5347_v57 = vsub.f32 0.0, %v5342_v13  ;;  %v5348_v59 = vsub.f32 0.0, %v5343_v60 }
0x24a5   : > { %8997 = vtanh.f32 %v5343_v60  ;;  %v5351_v8 = vmul.f32 1.442695, %v5346_v9 }
0x24a6   : > { %8999 = vtanh.f32 %v5344_v31  ;;  %v5353_v18 = vmul.f32 1.442695, %v5347_v57  ;;  %v5349_v36 = vsub.f32 0.0, %v5344_v31  ;;  %v5355_v19 = vmul.f32 1.442695, %v5348_v59 }
0x24a7   : > { %9001 = vtanh.f32 %v5345_v52 }
0x24a8   : > { %9003 = vpow2.f32 %v5351_v8  ;;  %v5357_v39 = vmul.f32 1.442695, %v5349_v36 }
0x24a9   : > { %9005 = vpow2.f32 %v5353_v18 }
0x24aa   : > { %9007 = vpow2.f32 %v5355_v19 }
0x24ab   : > { %9009 = vpow2.f32 %v5357_v39 }
0x24ac   : > { %v8994_v15 = vpop.eup %8993  ;;  %9011 = vpow2.f32 %v5359_v50 }
0x24ad   : > { %5391 = vrot.lane.b32.xlu0 %v8994_v15, %s9136_s18 }
0x24ae   : > { %v8996_v10 = vpop.eup %8995 }
0x24af   : > { %5393 = vrot.lane.b32.xlu1 %v8996_v10, %s9136_s18  ;;  %v8998_v25 = vpop.eup %8997 }
0x24b0   : > { %v9000_v43 = vpop.eup %8999 }
0x24b1   : > { %5395 = vrot.lane.b32.xlu0 %v8998_v25, %s9136_s18  ;;  %v9002_v27 = vpop.eup %9001 }
0x24b2   : > { %v9004_v46 = vpop.eup %9003 }
0x24b3   : > { %5397 = vrot.lane.b32.xlu1 %v9000_v43, %s9136_s18  ;;  %v5361_v56 = vadd.f32 1.0, %v9004_v46  ;;  %v9006_v7 = vpop.eup %9005 }
0x24b4   : > { %v5362_v35 = vadd.f32 1.0, %v9006_v7  ;;  %v9008_v11 = vpop.eup %9007 }
0x24b5   : > { %5399 = vrot.lane.b32.xlu0 %v9002_v27, %s9136_s18  ;;  %9013 = vrcp.f32 %v5361_v56  ;;  %v9010_v14 = vpop.eup %9009  ;;  %v5363_v62 = vadd.f32 1.0, %v9008_v11 }
0x24b6   : > { %9015 = vrcp.f32 %v5362_v35  ;;  %v9012_v12 = vpop.eup %9011  ;;  %v5364_v30 = vadd.f32 1.0, %v9010_v14 }
0x24b7   : > { %v5365_v29 = vadd.f32 1.0, %v9012_v12  ;;  %9017 = vrcp.f32 %v5363_v62 }
0x24b8   : > { %9019 = vrcp.f32 %v5364_v30 }
0x24b9   : > { %9021 = vrcp.f32 %v5365_v29 }
0x24bf   : > { %v9014_v32 = vpop.eup %9013 }
0x24c0   : > { %v9016_v5 = vpop.eup %9015  ;;  %v5381_v47 = vmul.f32 %v9014_v32, %v10499_v41 }
0x24c1   : > { %v9018_v1 = vpop.eup %9017  ;;  %v5382_v63 = vmul.f32 %v9016_v5, %v10503_v58 }
0x24c2   : > { %v9020_v6 = vpop.eup %9019  ;;  %v5383_v31 = vmul.f32 %v9018_v1, %v10508_v45 }
0x24c3   : > { %v9022_v16 = vpop.eup %9021  ;;  %v5384_v10 = vmul.f32 %v9020_v6, %v10510_v42 }
0x24c4   : > { %v5385_v27 = vmul.f32 %v9022_v16, %v10515_v21 }
0x251f   : > { %v5392_v53 = vpop.permute.xlu0 %5391 }
0x2520   : > { %v5406_v48 = vmul.f32 %v9014_v32, %v5392_v53  ;;  %v10588_v53 = vld [vmem:[%s10938_s8 + $0x58] ss:$0 sm:$0xff] }
0x2521   : > { %v5394_v0 = vpop.permute.xlu1 %5393 }
0x2522   : > { %5416 = vrot.lane.b32.xlu1 %v5406_v48, %s9138_s16  ;;  %v5407_v26 = vmul.f32 %v9016_v5, %v5394_v0  ;;  %v4253_v48 = vadd.f32 %v10588_v53, %v10462_v33 }
0x2523   : > { %v5396_v23 = vpop.permute.xlu0 %5395 }
0x2524   : > { %5418 = vrot.lane.b32.xlu0 %v5407_v26, %s9138_s16  ;;  %v5408_v22 = vmul.f32 %v9018_v1, %v5396_v23  ;;  %v4366_v0 = vrot.slane %v4253_v48, %v10197_v20 }
0x2525   : > { %v5398_v55 = vpop.permute.xlu1 %5397 }
0x2526   : > { %v5409_v3 = vmul.f32 %v9020_v6, %v5398_v55  ;;  %5420 = vrot.lane.b32.xlu1 %v5408_v22, %s9138_s16  ;;  %v4374_v55 = vcombine.high %v4366_v0, %v4366_v0 }
0x2527   : > { %v5400_v52 = vpop.permute.xlu0 %5399 }
0x2528   : > { %5422 = vrot.lane.b32.xlu0 %v5409_v3, %s9138_s16  ;;  %v5410_v49 = vmul.f32 %v9022_v16, %v5400_v52 }
0x252a   : > { %5424 = vrot.lane.b32.xlu1 %v5410_v49, %s9138_s16 }
0x2594   : > { %v5417_v34 = vpop.permute.xlu1 %5416 }
0x2595   : > { %v10554_v28 = vadd.f32 %v5417_v34, %v5381_v47 }
0x2596   : > { %v5419_v13 = vpop.permute.xlu0 %5418 }
0x2597   : > { %9023 = vtanh.f32 %v10554_v28  ;;  %v10558_v60 = vadd.f32 %v5419_v13, %v5382_v63  ;;  %v10598_v13 = vadd.f32 %v10588_v53, %v10468_v54 }
0x2598   : > { %v5421_v15 = vpop.permute.xlu1 %5420 }
0x2599   : > { %9025 = vtanh.f32 %v10558_v60  ;;  %v10563_v25 = vadd.f32 %v5421_v15, %v5383_v31  ;;  %v10603_v15 = vrot.slane %v10598_v13, %v10197_v20 }
0x259a   : > { %v5423_v41 = vpop.permute.xlu0 %5422 }
0x259b   : > { %v10565_v43 = vadd.f32 %v5423_v41, %v5384_v10  ;;  %9027 = vtanh.f32 %v10563_v25 }
0x259c   : > { %v5425_v58 = vpop.permute.xlu1 %5424 }
0x259d   : > { %9029 = vtanh.f32 %v10565_v43  ;;  %v10570_v57 = vadd.f32 %v5425_v58, %v5385_v27 }
0x259f   : > { %9031 = vtanh.f32 %v10570_v57 }
0x25a1   : > { %v9024_v9 = vpop.eup %9023 }
0x25a2   : > { %5446 = vrot.lane.b32.xlu0 %v9024_v9, %s9136_s18 }
0x25a3   : > { %v9026_v45 = vpop.eup %9025 }
0x25a4   : > { %5448 = vrot.lane.b32.xlu1 %v9026_v45, %s9136_s18 }
0x25a5   : > { %v9028_v42 = vpop.eup %9027 }
0x25a6   : > { %5450 = vrot.lane.b32.xlu0 %v9028_v42, %s9136_s18 }
0x25a7   : > { %v9030_v8 = vpop.eup %9029 }
0x25a8   : > { %5452 = vrot.lane.b32.xlu1 %v9030_v8, %s9136_s18 }
0x25a9   : > { %v9032_v21 = vpop.eup %9031 }
0x25aa   : > { %5454 = vrot.lane.b32.xlu0 %v9032_v21, %s9136_s18 }
0x2614   : > { %v5447_v59 = vpop.permute.xlu0 %5446 }
0x2615   : > { %v5461_v44 = vmul.f32 %v9014_v32, %v5447_v59 }
0x2616   : > { %v5449_v18 = vpop.permute.xlu1 %5448 }
0x2617   : > { %v5462_v36 = vmul.f32 %v9016_v5, %v5449_v18  ;;  %v4359_v5 = vcombine.high %v4253_v48, %v4253_v48 }
0x2618   : > { %v5451_v19 = vpop.permute.xlu0 %5450 }
0x2619   : > { %v5471_v50 = vcombine.low %v5461_v44, %v5462_v36  ;;  %v5463_v46 = vmul.f32 %v9018_v1, %v5451_v19  ;;  %v4373_v23 = vrot.slane %v4359_v5, %v10197_v20 }
0x261a   : > { %v5453_v39 = vpop.permute.xlu1 %5452 }
0x261b   : > { %v5464_v56 = vmul.f32 %v9020_v6, %v5453_v39  ;;  %v5479_v14 = vrot.slane %v5471_v50, %v10197_v20  ;;  %v4375_v49 = vcombine.high %v4373_v23, %v4373_v23 }
0x261c   : > { %v5455_v35 = vpop.permute.xlu0 %5454 }
0x261d   : > { %v5472_v7 = vcombine.low %v5463_v46, %v5464_v56  ;;  %v5465_v11 = vmul.f32 %v9022_v16, %v5455_v35 }
0x261f   : > { %v5486_v62 = vrot.slane %v5472_v7, %v10197_v20  ;;  %v5494_v12 = vrot.slane %v5465_v11, %v10197_v20 }
0x2621   : > { %v5487_v30 = vcombine.low %v5479_v14, %v5486_v62  ;;  %5497 = vrot.lane.b32.xlu0 %v5494_v12, %s9138_s16 }
0x2623   : > { %5495 = vrot.lane.b32.xlu1 %v5487_v30, %s9138_s16 }
0x2693   : > { %v5498_v32 = vpop.permute.xlu0 %5497 }
0x2695   : > { %v5496_v29 = vpop.permute.xlu1 %5495 }
0x2696   : > { %8087 = vmatprep.mubr.msk.f32.mxu0 %vm664_vm3, %v5496_v29 }
0x2697   : > { %8088 = vmatmul.mubr.msk.f32.vlgmr.msra.gmra.mrb[68].mxu0 %vm664_vm3, %v5498_v32 }
0x276a   : > { %v8089_v26 = vpop.f32.mrb[68].mxu0 }
0x276b   : > { %v5569_v1 = vpop.f32.mrb[69].mxu0  ;;  %v5603_v31 = vrot.slane %v8089_v26, %v10197_v20 }
0x276c   : > { %v5580_v6 = vcombine.high %v5569_v1, %v5569_v1  ;;  %v5587_v22 = vrot.slane %v5569_v1, %v10197_v20 }
0x276d   : > { %v5613_v10 = vadd.f32 %v5603_v31, %v10603_v15 }
0x276e   : > { %v5594_v3 = vrot.slane %v5580_v6, %v10197_v20  ;;  %v5595_v16 = vcombine.high %v5587_v22, %v5587_v22  ;;  %v5609_v52 = vadd.f32 %v5587_v22, %v4366_v0 }
0x276f   : > { %v5618_v36 = vsub.f32 0.0, %v5613_v10 }
0x2770   : > { %v5596_v47 = vcombine.high %v5594_v3, %v5594_v3  ;;  %v5610_v34 = vadd.f32 %v5595_v16, %v4374_v55  ;;  %v5611_v63 = vadd.f32 %v5594_v3, %v4373_v23  ;;  %9033 = vtanh.f32 %v5609_v52 }
0x2771   : > { %v5614_v45 = vsub.f32 0.0, %v5609_v52  ;;  %v5627_v39 = vmul.f32 1.442695, %v5618_v36 }
0x2772   : > { %v5612_v33 = vadd.f32 %v5596_v47, %v4375_v49  ;;  %9035 = vtanh.f32 %v5610_v34  ;;  %v5615_v42 = vsub.f32 0.0, %v5610_v34  ;;  %v5616_v21 = vsub.f32 0.0, %v5611_v63 }
0x2773   : > { %9037 = vtanh.f32 %v5611_v63  ;;  %v5619_v8 = vmul.f32 1.442695, %v5614_v45 }
0x2774   : > { %9039 = vtanh.f32 %v5612_v33  ;;  %v5621_v59 = vmul.f32 1.442695, %v5615_v42  ;;  %v5617_v18 = vsub.f32 0.0, %v5612_v33  ;;  %v5623_v44 = vmul.f32 1.442695, %v5616_v21 }
0x2775   : > { %9041 = vtanh.f32 %v5613_v10 }
0x2776   : > { %9043 = vpow2.f32 %v5619_v8  ;;  %v5625_v19 = vmul.f32 1.442695, %v5617_v18 }
0x2777   : > { %9045 = vpow2.f32 %v5621_v59 }
0x2778   : > { %9047 = vpow2.f32 %v5623_v44 }
0x2779   : > { %9049 = vpow2.f32 %v5625_v19 }
0x277a   : > { %v9034_v41 = vpop.eup %9033  ;;  %9051 = vpow2.f32 %v5627_v39 }
0x277b   : > { %5659 = vrot.lane.b32.xlu1 %v9034_v41, %s9136_s18 }
0x277c   : > { %v9036_v27 = vpop.eup %9035 }
0x277d   : > { %5661 = vrot.lane.b32.xlu0 %v9036_v27, %s9136_s18  ;;  %v9038_v54 = vpop.eup %9037 }
0x277e   : > { %v9040_v58 = vpop.eup %9039 }
0x277f   : > { %5663 = vrot.lane.b32.xlu1 %v9038_v54, %s9136_s18  ;;  %v9042_v9 = vpop.eup %9041 }
0x2780   : > { %v9044_v50 = vpop.eup %9043 }
0x2781   : > { %5665 = vrot.lane.b32.xlu0 %v9040_v58, %s9136_s18  ;;  %v5629_v46 = vadd.f32 1.0, %v9044_v50  ;;  %v9046_v56 = vpop.eup %9045 }
0x2782   : > { %v5630_v7 = vadd.f32 1.0, %v9046_v56  ;;  %v9048_v35 = vpop.eup %9047 }
0x2783   : > { %5667 = vrot.lane.b32.xlu1 %v9042_v9, %s9136_s18  ;;  %9053 = vrcp.f32 %v5629_v46  ;;  %v9050_v11 = vpop.eup %9049  ;;  %v5631_v14 = vadd.f32 1.0, %v9048_v35 }
0x2784   : > { %9055 = vrcp.f32 %v5630_v7  ;;  %v9052_v62 = vpop.eup %9051  ;;  %v5632_v12 = vadd.f32 1.0, %v9050_v11 }
0x2785   : > { %v5633_v30 = vadd.f32 1.0, %v9052_v62  ;;  %9057 = vrcp.f32 %v5631_v14 }
0x2786   : > { %9059 = vrcp.f32 %v5632_v12 }
0x2787   : > { %9061 = vrcp.f32 %v5633_v30 }
0x278d   : > { %v9054_v29 = vpop.eup %9053 }
0x278e   : > { %v9056_v5 = vpop.eup %9055  ;;  %v5649_v47 = vmul.f32 %v9054_v29, %v10554_v28 }
0x278f   : > { %v9058_v1 = vpop.eup %9057  ;;  %v5650_v33 = vmul.f32 %v9056_v5, %v10558_v60 }
0x2790   : > { %v9060_v6 = vpop.eup %9059  ;;  %v5651_v41 = vmul.f32 %v9058_v1, %v10563_v25 }
0x2791   : > { %v9062_v16 = vpop.eup %9061  ;;  %v5652_v54 = vmul.f32 %v9060_v6, %v10565_v43 }
0x2792   : > { %v5653_v45 = vmul.f32 %v9062_v16, %v10570_v57 }
0x27ed   : > { %v5660_v32 = vpop.permute.xlu1 %5659 }
0x27ee   : > { %v5674_v48 = vmul.f32 %v9054_v29, %v5660_v32  ;;  %v6406_v32 = vld [vmem:[%s10941_s11 + $0x100] sm:$0xff] }
0x27ef   : > { %v5662_v0 = vpop.permute.xlu0 %5661 }
0x27f0   : > { %5684 = vrot.lane.b32.xlu0 %v5674_v48, %s9138_s16  ;;  %v5675_v26 = vmul.f32 %v9056_v5, %v5662_v0  ;;  %v6407_v0 = vld [vmem:[%s10941_s11 + $0x108] sm:$0xff] }
0x27f1   : > { %v5664_v23 = vpop.permute.xlu1 %5663 }
0x27f2   : > { %5686 = vrot.lane.b32.xlu1 %v5675_v26, %s9138_s16  ;;  %v5676_v22 = vmul.f32 %v9058_v1, %v5664_v23  ;;  %v6408_v26 = vld [vmem:[%s10941_s11 + $0x110] sm:$0xff] }
0x27f3   : > { %v5666_v55 = vpop.permute.xlu0 %5665  ;;  %v8503_v23 = vpack.c.bf16 %v6408_v26, %v6407_v0 }
0x27f4   : > { %v5677_v3 = vmul.f32 %v9060_v6, %v5666_v55  ;;  %5688 = vrot.lane.b32.xlu0 %v5676_v22, %s9138_s16  ;;  %v6410_v22 = vld [vmem:[%s10941_s11 + $0x120] sm:$0xff] }
0x27f5   : > { %v5668_v52 = vpop.permute.xlu1 %5667 }
0x27f6   : > { %5690 = vrot.lane.b32.xlu1 %v5677_v3, %s9138_s16  ;;  %v5678_v49 = vmul.f32 %v9062_v16, %v5668_v52  ;;  %v6411_v3 = vld [vmem:[%s10941_s11 + $0x128] sm:$0xff]  ;;  %v3683_v52 = vld [vmem:[%s10940_s10 + $0x40] sm:$0x1] }
0x27f8   : > { %5692 = vrot.lane.b32.xlu0 %v5678_v49, %s9138_s16 }
0x2862   : > { %v5685_v34 = vpop.permute.xlu0 %5684 }
0x2863   : > { %v10617_v63 = vadd.f32 %v5685_v34, %v5649_v47  ;;  %v3833_v47 = vadd.f32 %v10255_v38, %v3683_v52 }
0x2864   : > { %v5687_v31 = vpop.permute.xlu1 %5686 }
0x2865   : > { %9063 = vtanh.f32 %v10617_v63  ;;  %v10621_v10 = vadd.f32 %v5687_v31, %v5650_v33  ;;  %v3834_v34 = vmax.f32 %v3833_v47, 0.0  ;;  %v4263_v33 = vadd.f32 %v10588_v53, %v10466_v24 }
0x2866   : > { %v5689_v27 = vpop.permute.xlu0 %5688  ;;  %v4376_v31 = vcombine.high %v10598_v13, %v10598_v13 }
0x2867   : > { %9065 = vtanh.f32 %v10621_v10  ;;  %v10626_v58 = vadd.f32 %v5689_v27, %v5651_v41  ;;  %v4399_v41 = vrot.slane %v4263_v33, %v10197_v20 }
0x2868   : > { %v5691_v28 = vpop.permute.xlu1 %5690  ;;  %v4390_v27 = vrot.slane %v4376_v31, %v10197_v20 }
0x2869   : > { %v10628_v9 = vadd.f32 %v5691_v28, %v5652_v54  ;;  %9067 = vtanh.f32 %v10626_v58  ;;  %v4400_v28 = vcombine.high %v4399_v41, %v4399_v41 }
0x286a   : > { %v5693_v60 = vpop.permute.xlu0 %5692  ;;  %v4392_v24 = vcombine.high %v4390_v27, %v4390_v27 }
0x286b   : > { %9069 = vtanh.f32 %v10628_v9  ;;  %v10633_v8 = vadd.f32 %v5693_v60, %v5653_v45  ;;  %v4391_v60 = vcombine.high %v10603_v15, %v10603_v15 }
0x286d   : > { %9071 = vtanh.f32 %v10633_v8 }
0x286f   : > { %v9064_v42 = vpop.eup %9063 }
0x2870   : > { %5714 = vrot.lane.b32.xlu1 %v9064_v42, %s9136_s18 }
0x2871   : > { %v9066_v25 = vpop.eup %9065 }
0x2872   : > { %5716 = vrot.lane.b32.xlu0 %v9066_v25, %s9136_s18 }
0x2873   : > { %v9068_v43 = vpop.eup %9067 }
0x2874   : > { %5718 = vrot.lane.b32.xlu1 %v9068_v43, %s9136_s18 }
0x2875   : > { %v9070_v21 = vpop.eup %9069 }
0x2876   : > { %5720 = vrot.lane.b32.xlu0 %v9070_v21, %s9136_s18 }
0x2877   : > { %v9072_v57 = vpop.eup %9071 }
0x2878   : > { %5722 = vrot.lane.b32.xlu1 %v9072_v57, %s9136_s18 }
0x28e2   : > { %v5715_v59 = vpop.permute.xlu1 %5714 }
0x28e3   : > { %v5729_v44 = vmul.f32 %v9054_v29, %v5715_v59  ;;  %v6405_v29 = vld [vmem:[%s10941_s11 + $0xf8] sm:$0xff] }
0x28e4   : > { %v5717_v18 = vpop.permute.xlu0 %5716  ;;  %v8500_v48 = vpack.c.bf16 %v6406_v32, %v6405_v29 }
0x28e5   : > { %v5730_v36 = vmul.f32 %v9056_v5, %v5717_v18 }
0x28e6   : > { %v5719_v19 = vpop.permute.xlu1 %5718 }
0x28e7   : > { %v5739_v50 = vcombine.low %v5729_v44, %v5730_v36  ;;  %v5731_v46 = vmul.f32 %v9058_v1, %v5719_v19 }
0x28e8   : > { %v5721_v39 = vpop.permute.xlu0 %5720 }
0x28e9   : > { %v5732_v56 = vmul.f32 %v9060_v6, %v5721_v39  ;;  %v5747_v14 = vrot.slane %v5739_v50, %v10197_v20  ;;  %v6409_v6 = vld [vmem:[%s10941_s11 + $0x118] sm:$0xff] }
0x28ea   : > { %v5723_v35 = vpop.permute.xlu1 %5722  ;;  %v8506_v55 = vpack.c.bf16 %v6410_v22, %v6409_v6 }
0x28eb   : > { %v5740_v7 = vcombine.low %v5731_v46, %v5732_v56  ;;  %v5733_v11 = vmul.f32 %v9062_v16, %v5723_v35  ;;  %v6412_v16 = vld [vmem:[%s10941_s11 + $0x130] sm:$0xff] }
0x28ec   : > { %v8509_v49 = vpack.c.bf16 %v6412_v16, %v6411_v3 }
0x28ed   : > { %v5754_v62 = vrot.slane %v5740_v7, %v10197_v20  ;;  %v5762_v12 = vrot.slane %v5733_v11, %v10197_v20 }
0x28ef   : > { %v5755_v30 = vcombine.low %v5747_v14, %v5754_v62  ;;  %5765 = vrot.lane.b32.xlu1 %v5762_v12, %s9138_s16 }
0x28f1   : > { %5763 = vrot.lane.b32.xlu0 %v5755_v30, %s9138_s16 }
0x2961   : > { %v5766_v1 = vpop.permute.xlu1 %5765 }
0x2963   : > { %v5764_v5 = vpop.permute.xlu0 %5763 }
0x2964   : > { %8098 = vmatprep.mubr.msk.f32.mxu1 %vm664_vm3, %v5764_v5 }
0x2965   : > { %8099 = vmatmul.mubr.msk.f32.vlgmr.msra.gmra.mrb[74].mxu1 %vm664_vm3, %v5766_v1 }
0x2966   : > { %8501 = vmatpush3.bf16.msra.mxu1 %v8500_v48  ;;  %8159 = vmatprep.mubr.msk.f32.mxu1 %vm9133_vm0, %v9134_v4 }
0x2967   : > { %8502 = vmatprep.subr.bf16.mxu1 %v9132_v2 }
0x296a   : > { %8504 = vmatpush3.bf16.msra.mxu1 %v8503_v23 }
0x296b   : > { %8505 = vmatprep.subr.bf16.mxu1 %v9132_v2 }
0x296e   : > { %8507 = vmatpush3.bf16.msra.mxu1 %v8506_v55 }
0x296f   : > { %8508 = vmatprep.subr.bf16.mxu1 %v9132_v2 }
0x2972   : > { %8510 = vmatpush3.bf16.msra.mxu1 %v8509_v49 }
0x2975   : > { %8160 = vmatmul.mubr.msk.f32.vlgmr.msra.gmra.mrb[76].mxu1 %vm6416_vm9, %v3834_v34 }
0x2a38   : > { %v8100_v54 = vpop.f32.mrb[74].mxu1 }
0x2a39   : > { %v5871_v38 = vrot.slane %v8100_v54, %v10197_v20  ;;  %v5837_v45 = vpop.f32.mrb[75].mxu1 }
0x2a3a   : > { %v5848_v42 = vcombine.high %v5837_v45, %v5837_v45  ;;  %v5855_v25 = vrot.slane %v5837_v45, %v10197_v20 }
0x2a3b   : > { %v5881_v43 = vadd.f32 %v5871_v38, %v4400_v28 }
0x2a3c   : > { %v5862_v53 = vrot.slane %v5848_v42, %v10197_v20  ;;  %v5863_v13 = vcombine.high %v5855_v25, %v5855_v25  ;;  %v5877_v21 = vadd.f32 %v5855_v25, %v4391_v60 }
0x2a3d   : > { %v5886_v30 = vsub.f32 0.0, %v5881_v43 }
0x2a3e   : > { %v5864_v57 = vcombine.high %v5862_v53, %v5862_v53  ;;  %v5878_v59 = vadd.f32 %v5863_v13, %v4390_v27  ;;  %v5879_v18 = vadd.f32 %v5862_v53, %v4392_v24  ;;  %9073 = vtanh.f32 %v5877_v21  ;;  %v6003_v24 = vld [vmem:[%s10941_s11 + $0xa0] sm:$0xff] }
0x2a3f   : > { %v5882_v7 = vsub.f32 0.0, %v5877_v21  ;;  %v5895_v48 = vmul.f32 1.442695, %v5886_v30  ;;  %v6006_v13 = vld [vmem:[%s528_s14] sm:$0xff]  ;;  %v6004_v21 = vld [vmem:[%s10941_s11 + $0xa8] sm:$0x7] }
0x2a40   : > { %v5880_v36 = vadd.f32 %v5864_v57, %v4399_v41  ;;  %9075 = vtanh.f32 %v5878_v59  ;;  %v5883_v35 = vsub.f32 0.0, %v5878_v59  ;;  %v5884_v14 = vsub.f32 0.0, %v5879_v18  ;;  %8107 = vmatprep.mubr.msk.f32.mxu0 %vm6012_vm10, %v6006_v13  ;;  %v6007_v57 = vld [vmem:[%s528_s14 + $0x8] sm:$0x3] }
0x2a41   : > { %9077 = vtanh.f32 %v5879_v18  ;;  %v5887_v11 = vmul.f32 1.442695, %v5882_v7 }
0x2a42   : > { %9079 = vtanh.f32 %v5880_v36  ;;  %v5889_v62 = vmul.f32 1.442695, %v5883_v35  ;;  %v5885_v12 = vsub.f32 0.0, %v5880_v36  ;;  %v5891_v29 = vmul.f32 1.442695, %v5884_v14 }
0x2a43   : > { %9081 = vtanh.f32 %v5881_v43  ;;  %v6002_v43 = vld [vmem:[%s10941_s11 + $0x98] sm:$0xff] }
0x2a44   : > { %9083 = vpow2.f32 %v5887_v11  ;;  %v5893_v32 = vmul.f32 1.442695, %v5885_v12  ;;  %v8471_v53 = vpack.c.bf16 %v6003_v24, %v6002_v43 }
0x2a45   : > { %9085 = vpow2.f32 %v5889_v62 }
0x2a46   : > { %9087 = vpow2.f32 %v5891_v29  ;;  %8472 = vmatprep.subr.bf16.mxu0 %v8471_v53  ;;  %v6107_v29 = vld [vmem:[%s10940_s10 + $0x80] sm:$0xff] }
0x2a47   : > { %9089 = vpow2.f32 %v5893_v32  ;;  %8474 = vmatpush3.bf16.msra.mxu0 %v8471_v53 }
0x2a48   : > { %v10693_v44 = vpop.f32.mrb[76].mxu1  ;;  %v9074_v15 = vpop.eup %9073  ;;  %9091 = vpow2.f32 %v5895_v48  ;;  %8105 = vmatprep.subr.msk.mxu0 %vm6019_vm11, %v6004_v21  ;;  %v6100_v48 = vld [vmem:[%s10940_s10 + $0x48] sm:$0xff] }
0x2a49   : > { %v8161_v19 = vpop.f32.mrb[77].mxu1  ;;  %5927 = vrot.lane.b32.xlu0 %v9074_v15, %s9136_s18 }
0x2a4a   : > { %v9076_v39 = vpop.eup %9075 }
0x2a4b   : > { %5929 = vrot.lane.b32.xlu1 %v9076_v39, %s9136_s18  ;;  %v9078_v50 = vpop.eup %9077  ;;  %8106 = vmatpush3.msk.msra.mxu0 %vm6019_vm11, %v6004_v21 }
0x2a4c   : > { %v9080_v46 = vpop.eup %9079  ;;  %8108 = vmatmul.mubr.msk.f32.vlgmr.msra.gmra.mrb[70].mxu0 %vm6012_vm10, %v6007_v57 }
0x2a4d   : > { %5931 = vrot.lane.b32.xlu0 %v9078_v50, %s9136_s18  ;;  %v9082_v56 = vpop.eup %9081 }
0x2a4e   : > { %v9084_v5 = vpop.eup %9083 }
0x2a4f   : > { %5933 = vrot.lane.b32.xlu1 %v9080_v46, %s9136_s18  ;;  %v5897_v0 = vadd.f32 1.0, %v9084_v5  ;;  %v9086_v26 = vpop.eup %9085  ;;  %v6101_v5 = vld [vmem:[%s10940_s10 + $0x50] sm:$0xff] }
0x2a50   : > { %v5898_v1 = vadd.f32 1.0, %v9086_v26  ;;  %v9088_v23 = vpop.eup %9087 }
0x2a51   : > { %5935 = vrot.lane.b32.xlu0 %v9082_v56, %s9136_s18  ;;  %9093 = vrcp.f32 %v5897_v0  ;;  %v9090_v6 = vpop.eup %9089  ;;  %v5899_v22 = vadd.f32 1.0, %v9088_v23 }
0x2a52   : > { %9095 = vrcp.f32 %v5898_v1  ;;  %v9092_v55 = vpop.eup %9091  ;;  %v5900_v3 = vadd.f32 1.0, %v9090_v6  ;;  %v8483_v1 = vpack.c.bf16 %v6101_v5, %v6100_v48  ;;  %v7277_v6 = vld [vmem:[%s10941_s11 + $0xb0] ss:$0 sm:$0xff] }
0x2a53   : > { %v5901_v16 = vadd.f32 1.0, %v9092_v55  ;;  %9097 = vrcp.f32 %v5899_v22 }
0x2a54   : > { %9099 = vrcp.f32 %v5900_v3 }
0x2a55   : > { %9101 = vrcp.f32 %v5901_v16 }
0x2a5b   : > { %v10700_v52 = vpop.eup %9093 }
0x2a5c   : > { %v10704_v34 = vpop.eup %9095  ;;  %v5917_v59 = vmul.f32 %v10700_v52, %v10617_v63 }
0x2a5d   : > { %v10708_v41 = vpop.eup %9097  ;;  %v5918_v15 = vmul.f32 %v10704_v34, %v10621_v10 }
0x2a5e   : > { %v10710_v54 = vpop.eup %9099  ;;  %v5919_v50 = vmul.f32 %v10708_v41, %v10626_v58  ;;  %v6104_v58 = vld [vmem:[%s10940_s10 + $0x68] sm:$0xff] }
0x2a5f   : > { %v10715_v60 = vpop.eup %9101  ;;  %v5920_v56 = vmul.f32 %v10710_v54, %v10628_v9  ;;  %v6105_v9 = vld [vmem:[%s10940_s10 + $0x70] sm:$0xff] }
0x2a60   : > { %v5921_v63 = vmul.f32 %v10715_v60, %v10633_v8  ;;  %v8475_v30 = vpack.c.bf16 %v6105_v9, %v6104_v58  ;;  %v6106_v8 = vld [vmem:[%s10940_s10 + $0x78] sm:$0xff]  ;;  %v6404_v58 = vld [vmem:[%s10941_s11 + $0xf0] sm:$0xff] }
0x2a61   : > { %v8479_v32 = vpack.c.bf16 %v6107_v29, %v6106_v8 }
0x2a62   : > { %8476 = vmatprep.subr.bf16.mxu0 %v8475_v30 }
0x2a63   : > { %8478 = vmatpush3.bf16.msra.mxu0 %v8475_v30 }
0x2a64   : > { %8480 = vmatprep.subr.bf16.mxu0 %v8479_v32 }
0x2a67   : > { %8482 = vmatpush3.bf16.msra.mxu0 %v8479_v32 }
0x2a68   : > { %8484 = vmatprep.subr.bf16.mxu0 %v8483_v1 }
0x2abb   : > { %v5928_v49 = vpop.permute.xlu0 %5927 }
0x2abc   : > { %v5942_v47 = vmul.f32 %v10700_v52, %v5928_v49  ;;  %v6102_v49 = vld [vmem:[%s10940_s10 + $0x58] sm:$0xff] }
0x2abd   : > { %v5930_v33 = vpop.permute.xlu1 %5929 }
0x2abe   : > { %5952 = vrot.lane.b32.xlu1 %v5942_v47, %s9138_s16  ;;  %v5943_v31 = vmul.f32 %v10704_v34, %v5930_v33  ;;  %v6103_v47 = vld [vmem:[%s10940_s10 + $0x60] sm:$0xff] }
0x2abf   : > { %v5932_v27 = vpop.permute.xlu0 %5931 }
0x2ac0   : > { %5954 = vrot.lane.b32.xlu0 %v5943_v31, %s9138_s16  ;;  %v5944_v28 = vmul.f32 %v10708_v41, %v5932_v27  ;;  %v8487_v27 = vpack.c.bf16 %v6103_v47, %v6102_v49 }
0x2ac1   : > { %v5934_v38 = vpop.permute.xlu1 %5933 }
0x2ac2   : > { %v5945_v45 = vmul.f32 %v10710_v54, %v5934_v38  ;;  %5956 = vrot.lane.b32.xlu1 %v5944_v28, %s9138_s16 }
0x2ac3   : > { %v5936_v42 = vpop.permute.xlu0 %5935 }
0x2ac4   : > { %5958 = vrot.lane.b32.xlu0 %v5945_v45, %s9138_s16  ;;  %v5946_v25 = vmul.f32 %v10715_v60, %v5936_v42  ;;  %v6108_v45 = vld [vmem:[%s10940_s10 + $0x88] sm:$0xff]  ;;  %v6109_v42 = vld [vmem:[%s10940_s10 + $0x90] sm:$0xff] }
0x2ac5   : > { %v8491_v43 = vpack.c.bf16 %v6109_v42, %v6108_v45 }
0x2ac6   : > { %5960 = vrot.lane.b32.xlu1 %v5946_v25, %s9138_s16 }
0x2b1f   : > { %v8109_v22 = vpop.f32.mrb[70].mxu0 }
0x2b20   : > { %v6095_v55 = vadd.f32 %v8109_v22, %v7277_v6  ;;  %v6089_v3 = vpop.f32.mrb[71].mxu0 }
0x2b21   : > { %v6090_v16 = vadd.f32 %v7277_v6, %v6089_v3 }
0x2b22   : > { %v6099_v33 = vmax.f32 %v6095_v55, 0.0 }
0x2b23   : > { %v6098_v31 = vmax.f32 %v6090_v16, 0.0 }
0x2b25   : > { %8118 = vmatprep.mubr.msk.f32.mxu0 %vm664_vm3, %v6098_v31 }
0x2b26   : > { %8119 = vmatmul.mubr.msk.f32.vlgmr.msra.gmra.mrb[72].mxu0 %vm664_vm3, %v6099_v33 }
0x2b27   : > { %8486 = vmatpush3.bf16.msra.mxu0 %v8483_v1  ;;  %v6493_v1 = vrot.slane %v10693_v44, %v771_v40 }
0x2b28   : > { %8488 = vmatprep.subr.bf16.mxu0 %v8487_v27 }
0x2b2b   : > { %8490 = vmatpush3.bf16.msra.mxu0 %v8487_v27 }
0x2b2c   : > { %8492 = vmatprep.subr.bf16.mxu0 %v8491_v43 }
0x2b30   : > { %v5953_v18 = vpop.permute.xlu1 %5952 }
0x2b31   : > { %v5967_v36 = vadd.f32 %v5953_v18, %v5917_v59 }
0x2b32   : > { %v5955_v19 = vpop.permute.xlu0 %5954 }
0x2b33   : > { %9103 = vtanh.f32 %v5967_v36  ;;  %v5968_v39 = vadd.f32 %v5955_v19, %v5918_v15 }
0x2b34   : > { %v5957_v46 = vpop.permute.xlu1 %5956 }
0x2b35   : > { %9105 = vtanh.f32 %v5968_v39  ;;  %v5969_v7 = vadd.f32 %v5957_v46, %v5919_v50 }
0x2b36   : > { %v5959_v35 = vpop.permute.xlu0 %5958 }
0x2b37   : > { %v5970_v11 = vadd.f32 %v5959_v35, %v5920_v56  ;;  %9107 = vtanh.f32 %v5969_v7  ;;  %v6401_v7 = vld [vmem:[%s10941_s11 + $0xd8] sm:$0xff]  ;;  %v6402_v35 = vld [vmem:[%s10941_s11 + $0xe0] sm:$0xff] }
0x2b38   : > { %v5961_v14 = vpop.permute.xlu1 %5960 }
0x2b39   : > { %9109 = vtanh.f32 %v5970_v11  ;;  %v5971_v62 = vadd.f32 %v5961_v14, %v5921_v63  ;;  %v6110_v11 = vld [vmem:[%s10940_s10 + $0x98] sm:$0xff]  ;;  %v6111_v63 = vld [vmem:[%s10940_s10 + $0xa0] sm:$0xff] }
0x2b3b   : > { %9111 = vtanh.f32 %v5971_v62 }
0x2b3d   : > { %v9104_v10 = vpop.eup %9103 }
0x2b3e   : > { %5982 = vrot.lane.b32.xlu0 %v9104_v10, %s9136_s18  ;;  %v8495_v10 = vpack.c.bf16 %v6111_v63, %v6110_v11 }
0x2b3f   : > { %v9106_v12 = vpop.eup %9105 }
0x2b40   : > { %5984 = vrot.lane.b32.xlu1 %v9106_v12, %s9136_s18  ;;  %v6403_v12 = vld [vmem:[%s10941_s11 + $0xe8] sm:$0xff] }
0x2b41   : > { %v9108_v0 = vpop.eup %9107  ;;  %v8523_v9 = vpack.c.bf16 %v6404_v58, %v6403_v12 }
0x2b42   : > { %5986 = vrot.lane.b32.xlu0 %v9108_v0, %s9136_s18  ;;  %v6415_v0 = vld [vmem:[%s10941_s11 + $0x148] sm:$0x1] }
0x2b43   : > { %v9110_v26 = vpop.eup %9109 }
0x2b44   : > { %5988 = vrot.lane.b32.xlu1 %v9110_v26, %s9136_s18  ;;  %v9140_v26 = vmov 0  }
0x2b45   : > { %v9112_v23 = vpop.eup %9111  ;;  %8647 = vset.pattern.permute.xlu1 %v9140_v26  ;;  %8648 = vset.pattern.permute.xlu0 %v9140_v26 }
0x2b46   : > { %5990 = vrot.lane.b32.xlu0 %v9112_v23, %s9136_s18  ;;  %v7291_v23 = vld [vmem:[%s10941_s11 + $0x138] ss:$0 sm:$0xff] }
0x2bb0   : > { %v5983_v28 = vpop.permute.xlu0 %5982 }
0x2bb1   : > { %v5997_v24 = vmul.f32 %v10700_v52, %v5983_v28  ;;  %v6397_v52 = vld [vmem:[%s10941_s11 + $0xb8] sm:$0xff] }
0x2bb2   : > { %v5985_v38 = vpop.permute.xlu1 %5984 }
0x2bb3   : > { %v5998_v25 = vmul.f32 %v10704_v34, %v5985_v38  ;;  %v6398_v34 = vld [vmem:[%s10941_s11 + $0xc0] sm:$0xff] }
0x2bb4   : > { %v5987_v53 = vpop.permute.xlu0 %5986  ;;  %v8511_v50 = vpack.c.bf16 %v6398_v34, %v6397_v52 }
0x2bb5   : > { %v6199_v21 = vcombine.low %v5997_v24, %v5998_v25  ;;  %v5999_v57 = vmul.f32 %v10708_v41, %v5987_v53  ;;  %v6399_v41 = vld [vmem:[%s10941_s11 + $0xc8] sm:$0xff] }
0x2bb6   : > { %v5989_v13 = vpop.permute.xlu1 %5988  ;;  %8512 = vmatprep.subr.bf16.mxu1 %v8511_v50 }
0x2bb7   : > { %v6000_v59 = vmul.f32 %v10710_v54, %v5989_v13  ;;  %v6207_v19 = vrot.slane %v6199_v21, %v10197_v20  ;;  %8514 = vmatpush3.bf16.msra.mxu1 %v8511_v50  ;;  %v6757_v13 = vld [vmem:[%s10939_s9 + $0x28] sm:$0xff]  ;;  %v6758_v21 = vld [vmem:[%s10939_s9 + $0x30] sm:$0xff]  ;;  %v6764_v50 = vld [vmem:[%s10939_s9 + $0x60] sm:$0xff] }
0x2bb8   : > { %v5991_v36 = vpop.permute.xlu0 %5990 }
0x2bb9   : > { %v6200_v18 = vcombine.low %v5999_v57, %v6000_v59  ;;  %v6001_v15 = vmul.f32 %v10715_v60, %v5991_v36  ;;  %v6400_v60 = vld [vmem:[%s10941_s11 + $0xd0] sm:$0xff]  ;;  %v6759_v57 = vld [vmem:[%s10939_s9 + $0x38] sm:$0xff]  ;;  %v8536_v59 = vpack.c.bf16 %v6758_v21, %v6757_v13 }
0x2bba   : > { %v8515_v56 = vpack.c.bf16 %v6400_v60, %v6399_v41 }
0x2bbb   : > { %v6214_v39 = vrot.slane %v6200_v18, %v10197_v20  ;;  %v6222_v54 = vrot.slane %v6001_v15, %v10197_v20  ;;  %v8519_v20 = vpack.c.bf16 %v6402_v35, %v6401_v7  ;;  %v6760_v18 = vld [vmem:[%s10939_s9 + $0x40] sm:$0xff]  ;;  %v6761_v15 = vld [vmem:[%s10939_s9 + $0x48] sm:$0xff] }
0x2bbc   : > { %8516 = vmatprep.subr.bf16.mxu1 %v8515_v56  ;;  %v8539_v36 = vpack.c.bf16 %v6760_v18, %v6759_v57 }
0x2bbd   : > { %v6215_v46 = vcombine.low %v6207_v19, %v6214_v39  ;;  %6225 = vrot.lane.b32.xlu0 %v6222_v54, %s9138_s16  ;;  %8518 = vmatpush3.bf16.msra.mxu1 %v8515_v56  ;;  %v6762_v19 = vld [vmem:[%s10939_s9 + $0x50] sm:$0xff]  ;;  %v6763_v54 = vld [vmem:[%s10939_s9 + $0x58] sm:$0xff] }
0x2bbe   : > { %8520 = vmatprep.subr.bf16.mxu1 %v8519_v20  ;;  %v8542_v39 = vpack.c.bf16 %v6762_v19, %v6761_v15  ;;  %v8545_v60 = vpack.c.bf16 %v6764_v50, %v6763_v54 }
0x2bbf   : > { %6223 = vrot.lane.b32.xlu1 %v6215_v46, %s9138_s16  ;;  %s531_s16 = scalar_lea.vmem %s10937_s7, %s10948_s22  ;;  %v6766_v46 = vld [vmem:[%s10939_s9 + $0x70] sm:$0x1] }
0x2bc0   : > { %v6667_v44 = vld [vmem:[%s531_s16] sm:$0x1] }
0x2bc1   : > { %8522 = vmatpush3.bf16.msra.mxu1 %v8519_v20 }
0x2bc2   : > { %8524 = vmatprep.subr.bf16.mxu1 %v8523_v9 }
0x2bc3   : > { %6585 = vperm.xlu1 %8647, %v6415_v0   ;;  %v6868_v0 = vld [vmem:[%s10941_s11 + $0x168] sm:$0xff] }
0x2bc5   : > { %8526 = vmatpush3.bf16.msra.mxu1 %v8523_v9 }
0x2bc6   : > { %8535 = vmatprep.subr.bf16.mxu1 %v9132_v2 }
0x2c2f   : > { %v6226_v62 = vpop.permute.xlu0 %6225 }
0x2c31   : > { %v6224_v14 = vpop.permute.xlu1 %6223 }
0x2c32   : > { %8129 = vmatprep.mubr.msk.f32.mxu0 %vm664_vm3, %v6224_v14 }
0x2c33   : > { %8130 = vmatmul.mubr.msk.f32.vlgmr.msra.gmra.mrb[72].mxu0 %vm664_vm3, %v6226_v62 }
0x2c34   : > { %8494 = vmatpush3.bf16.msra.mxu0 %v8491_v43  ;;  %8140 = vmatprep.mubr.msk.f32.mxu0 %vm664_vm3, %v10071_v51 }
0x2c35   : > { %8496 = vmatprep.subr.bf16.mxu0 %v8495_v10 }
0x2c38   : > { %8498 = vmatpush3.bf16.msra.mxu0 %v8495_v10 }
0x2c39   : > { %8527 = vmatprep.subr.bf16.mxu0 %v9132_v2 }
0x2c3b   : > { %8141 = vmatmul.mubr.msk.f32.vlgmr.msra.gmra.mrb[72].mxu0 %vm664_vm3, %v10069_v61  ;;  %v7287_v61 = vld [vmem:[%s10940_s10 + $0xa8] ss:$0 sm:$0xff] }
0x2c3c   : > { %8185 = vmatprep.mubr.msk.f32.mxu0 %vm9133_vm0, %v9134_v4 }
0x2c42   : > { %v6586_v17 = vpop.permute.xlu1 %6585 }
0x2d0e   : > { %v8142_v51 = vpop.f32.mrb[72].mxu0 }
0x2d0f   : > { %v6394_v30 = vadd.f32 %v8142_v51, %v7287_v61  ;;  %v6378_v8 = vpop.f32.mrb[73].mxu0 }
0x2d10   : > { %v6393_v29 = vadd.f32 %v7287_v61, %v6378_v8 }
0x2d11   : > { %v6396_v32 = vmax.f32 %v6394_v30, 0.0 }
0x2d12   : > { %v6395_v48 = vmax.f32 %v6393_v29, 0.0  ;;  %v6865_v29 = vld [vmem:[%s10941_s11 + $0x150] sm:$0xff] }
0x2d14   : > { %v8532_v5 = vpack.c.bf16 %v6396_v32, %v6395_v48  ;;  %8178 = vmatprep.mubr.msk.f32.mxu1 %vm6416_vm9, %v6395_v48  ;;  %v6867_v48 = vld [vmem:[%s10941_s11 + $0x160] sm:$0xff] }
0x2d15   : > { %8179 = vmatmul.mubr.msk.f32.vlgmr.msra.gmra.mrb[78].mxu1 %vm6416_vm9, %v6396_v32  ;;  %v6866_v32 = vld [vmem:[%s10941_s11 + $0x158] sm:$0xff]  ;;  %v8551_v26 = vpack.c.bf16 %v6868_v0, %v6867_v48 }
0x2d16   : > { %8211 = vmatprep.mubr.msk.f32.mxu1 %vm9133_vm0, %v9134_v4  ;;  %8537 = vmatpush3.bf16.msra.mxu1 %v8536_v59 }
0x2d17   : > { %8538 = vmatprep.subr.bf16.mxu1 %v9132_v2 }
0x2d1a   : > { %8540 = vmatpush3.bf16.msra.mxu1 %v8539_v36 }
0x2d1b   : > { %8541 = vmatprep.subr.bf16.mxu1 %v9132_v2 }
0x2d1e   : > { %8543 = vmatpush3.bf16.msra.mxu1 %v8542_v39 }
0x2d1f   : > { %8544 = vmatprep.subr.bf16.mxu1 %v9132_v2 }
0x2d22   : > { %8546 = vmatpush3.bf16.msra.mxu1 %v8545_v60 }
0x2de8   : > { %v8180_v6 = vpop.f32.mrb[78].mxu1 }
0x2de9   : > { %v6572_v22 = vadd.f32 %v8180_v6, %v6493_v1  ;;  %v6566_v55 = vpop.f32.mrb[79].mxu1 }
0x2dea   : > { %v6567_v3 = vadd.f32 %v6566_v55, %v6493_v1 }
0x2deb   : > { %v6580_v16 = vadd.f32 %v7291_v23, %v6572_v22 }
0x2dec   : > { %v6579_v49 = vadd.f32 %v7291_v23, %v6567_v3  ;;  %v6869_v3 = vld [vmem:[%s10941_s11 + $0x170] sm:$0x1] }
0x2ded   : > { %v6582_v47 = vmax.f32 %v6580_v16, 0.0 }
0x2dee   : > { %v6581_v33 = vmax.f32 %v6579_v49, 0.0 }
0x2df0   : > { %v8528_v31 = vpack.c.bf16 %v6582_v47, %v6581_v33 }
0x2df2   : > { %8530 = vmatpush3.bf16.xpose.msk.msra.mxu0 %vm9258_vm4, %v8528_v31  ;;  %vm6669_vm4 = vcmask 73728  }
0x2df3   : > { %8531 = vmatprep.subr.bf16.mxu0 %v9132_v2 }
0x2df9   : > { %8186 = vmatmul.mubr.msk.f32.vlgmr.msra.gmra.mrb[74].mxu0 %vm664_vm3, %v6414_v37 }
0x2dfa   : > { %8534 = vmatpush3.bf16.msk.msra.mxu0 %vm8533_vm12, %v8532_v5  ;;  %8192 = vmatprep.mubr.msk.f32.mxu0 %vm9133_vm0, %v9134_v4  ;;  %v8548_v5 = vpack.c.bf16 %v6866_v32, %v6865_v29 }
0x2dfb   : > { %8547 = vmatprep.subr.bf16.mxu0 %v9132_v2 }
0x2ecc   : > { %v6663_v40 = vpop.f32.mrb[74].mxu0 }
0x2ecd   : > { %v6664_v27 = vadd.f32 %v6663_v40, %v6586_v17  ;;  %v8187_v28 = vpop.f32.mrb[75].mxu0 }
0x2ecf   : > { %v6668_v38 = vmul.f32 %v6667_v44, %v6664_v27 }
0x2ed1   : > { %v6670_v45 = vsel %vm6669_vm4, %v6668_v38, -inf }
0x2ed2   : > { %6671 = vmax.xlane.f32.xlu0 %v6670_v45 }
0x2ee8   : > { %6849 = vrot.lane.b32.xlu0 %v6766_v46, %s9136_s18 }
0x2f5f   : > { %v6672_v42 = vpop.xlane.xlu0 %6671 }
0x2f60   : > { %v6673_v25 = vsub.f32 %v6668_v38, %v6672_v42 }
0x2f62   : > { %v6674_v43 = vmul.f32 1.442695, %v6673_v25 }
0x2f63   : > { %v6850_v9 = vpop.permute.xlu0 %6849 }
0x2f64   : > { %9113 = vpow2.f32 %v6674_v43 }
0x2f6e   : > { %v9114_v24 = vpop.eup %9113 }
0x2f6f   : > { %v6676_v53 = vsel %vm6669_vm4, %v9114_v24, 0.0 }
0x2f70   : > { %6677 = vadd.xlane.f32.xlu1 %v6676_v53 }
0x2ffd   : > { %v6678_v52 = vpop.xlane.xlu1 %6677 }
0x2ffe   : > { %9115 = vrcp.f32 %v6678_v52 }
0x3008   : > { %v9116_v34 = vpop.eup %9115 }
0x3009   : > { %v6680_v41 = vmul.f32 %v9116_v34, %v9114_v24 }
0x300b   : > { %8193 = vmatmul.mubr.msk.f32.vlgmr.msra.gmra.mrb[76].mxu0 %vm6681_vm13, %v6680_v41 }
0x300c   : > { %8222 = vmatprep.mubr.msk.f32.mxu0 %vm9133_vm0, %v9134_v4  ;;  %v6765_v4 = vld [vmem:[%s10939_s9 + $0x68] sm:$0x1]  ;;  %8549 = vmatpush3.bf16.msra.mxu0 %v8548_v5  ;;  %vm6945_vm0 = vcmask 0  }
0x300d   : > { %8550 = vmatprep.subr.bf16.mxu0 %v9132_v2 }
0x3010   : > { %8552 = vmatpush3.bf16.msra.mxu0 %v8551_v26 }
0x30de   : > { %v6753_v56 = vpop.f32.mrb[76].mxu0 }
0x30df   : > { %v6767_v7 = vmax.f32 %v6753_v56, 0.0  ;;  %v8194_v35 = vpop.f32.mrb[77].mxu0 }
0x30e1   : > { %8212 = vmatmul.mubr.msk.f32.vlgmr.msra.gmra.mrb[80].mxu1 %vm6416_vm9, %v6767_v7 }
0x31b4   : > { %v6837_v20 = vpop.f32.mrb[80].mxu1 }
0x31b5   : > { %v6838_v11 = vadd.f32 %v6837_v20, %v6765_v4  ;;  %v8213_v63 = vpop.f32.mrb[81].mxu1 }
0x31b7   : > { %v6841_v14 = vadd.f32 %v6838_v11, %v6766_v46 }
0x31b9   : > { %v6842_v10 = vsub.f32 0.0, %v6841_v14 }
0x31bb   : > { %v6843_v62 = vmul.f32 1.442695, %v6842_v10 }
0x31bd   : > { %9117 = vpow2.f32 %v6843_v62 }
0x31c7   : > { %v9118_v12 = vpop.eup %9117 }
0x31c8   : > { %v6845_v58 = vadd.f32 1.0, %v9118_v12 }
0x31ca   : > { %9119 = vrcp.f32 %v6845_v58 }
0x31d4   : > { %v9120_v61 = vpop.eup %9119 }
0x31d5   : > { %v6852_v51 = vmul.f32 %v9120_v61, %v6850_v9  ;;  %v6859_v23 = vsub.f32 1.0, %v9120_v61 }
0x31d7   : > { %6854 = vrot.lane.b32.xlu1 %v6852_v51, %s9136_s18 }
0x3249   : > { %v6855_v30 = vpop.permute.xlu1 %6854 }
0x324a   : > { %v6857_v8 = vadd.f32 %v6855_v30, %v6838_v11 }
0x324c   : > { %9121 = vtanh.f32 %v6857_v8 }
0x3256   : > { %v9122_v1 = vpop.eup %9121 }
0x3257   : > { %6861 = vrot.lane.b32.xlu0 %v9122_v1, %s9135_s17 }
0x32c9   : > { %v6862_v6 = vpop.permute.xlu0 %6861 }
0x32ca   : > { %v6864_v22 = vmul.f32 %v6862_v6, %v6859_v23 }
0x32cc   : > { %6871 = vrot.lane.b32.xlu1 %v6864_v22, %s9135_s17 }
0x333e   : > { %v6872_v55 = vpop.permute.xlu1 %6871 }
0x333f   : > { %8223 = vmatmul.mubr.msk.f32.vlgmr.msra.gmra.mrb[78].mxu0 %vm664_vm3, %v6872_v55 }
0x3412   : > { %v6941_v2 = vpop.f32.mrb[78].mxu0 }
0x3413   : > { %v6942_v16 = vadd.f32 %v6941_v2, %v6869_v3  ;;  %v8224_v49 = vpop.f32.mrb[79].mxu0 }
0x3415   : > { %6946 = vst.msk [vmem:[%s534_s20] sm:$0x1] %vm6945_vm0, %v6942_v16 }
0x3416 PF: > { %s22_s21 = sadd.s32 1, %s9130_s21  }
0x3417   : > { %p19_p4 = scmp.ge.s32.totalorder %s22_s21, 4  }
0x3419   :  { %21 = sbr.rel (!%p19_p4) target bundleno = 1 (0x1), region = 121 }

</bundles_post_ra>
